<compile_context>
chip_gen: v7x
topology: tpu7x:2x2x1
jax: 0.10.0
libtpu: 0.0.40
codegen_flags: <defaults>
</compile_context>

<pallas_src>
import numpy as np

import jax
import jax.numpy as jnp
from jax.experimental import pallas as pl
from jax.experimental.pallas import tpu as pltpu


# ----------------------------------------------------------------------------
# Fused whole-network kernel (one grid step == one sample)
# ----------------------------------------------------------------------------
def _cnn_kernel(x_ref, a1_ref, b1t_ref, a2_ref, b2t_ref, wlp_ref, blt_ref,
                feat_ref, logit_ref,
                xp1, y1s, hp1, x2p, y2s, hp2):
    f32 = jnp.float32

    # ---------------- conv1 (1->16, k=5, pad=2) + bias + ReLU ----------------
    # Zero-padded 32x32 input image in VMEM.
    xp1[...] = jnp.zeros_like(xp1)
    xp1[2:30, 2:30] = x_ref[0]
    # y1[h, w*16 + c] = sum_i  xp1[h+i, :] @ A1[i]   (5 MXU matmuls)
    acc1 = jnp.dot(xp1[0:28, :], a1_ref[0], preferred_element_type=f32)
    for i in range(1, 5):
        acc1 = acc1 + jnp.dot(xp1[i:i + 28, :], a1_ref[i],
                              preferred_element_type=f32)
    y1s[...] = jnp.maximum(acc1 + b1t_ref[...], 0.0)

    # ---------------- maxpool 2x2 -> padded conv2 input ----------------------
    # h-pool: max over row pairs (all in VMEM).
    for p in range(14):
        hp1[p:p + 1, :] = jnp.maximum(y1s[2 * p:2 * p + 1, :],
                                      y1s[2 * p + 1:2 * p + 2, :])
    # w-pool: max over adjacent 16-lane channel groups; write directly into the
    # zero-padded conv2 input x2p laid out as [h, w*16 + c] (shape 18 x 288).
    x2p[...] = jnp.zeros_like(x2p)
    hp = hp1[...]
    for q in range(14):
        x2p[2:16, 32 + 16 * q:48 + 16 * q] = jnp.maximum(
            hp[:, 32 * q:32 * q + 16], hp[:, 32 * q + 16:32 * q + 32])

    # ---------------- conv2 (16->32, k=5, pad=2) + bias + ReLU ---------------
    # y2[h, w*32 + c] = sum_i  x2p[h+i, :] @ A2[i]
    acc2 = jnp.dot(x2p[0:14, :], a2_ref[0], preferred_element_type=f32)
    for i in range(1, 5):
        acc2 = acc2 + jnp.dot(x2p[i:i + 14, :], a2_ref[i],
                              preferred_element_type=f32)
    y2s[...] = jnp.maximum(acc2 + b2t_ref[...], 0.0)

    # ---------------- maxpool 2x2 -> feature output ([h, w*32 + c]) ----------
    for p in range(7):
        hp2[p:p + 1, :] = jnp.maximum(y2s[2 * p:2 * p + 1, :],
                                      y2s[2 * p + 1:2 * p + 2, :])
    hq = hp2[...]
    for q in range(7):
        feat_ref[0, :, 32 * q:32 * q + 32] = jnp.maximum(
            hq[:, 64 * q:64 * q + 32], hq[:, 64 * q + 32:64 * q + 64])

    # ---------------- classifier (output padded to 128 lanes) ----------------
    acc = jnp.dot(feat_ref[0, 0:1, :], wlp_ref[0], preferred_element_type=f32)
    for h in range(1, 7):
        acc = acc + jnp.dot(feat_ref[0, h:h + 1, :], wlp_ref[h],
                            preferred_element_type=f32)
    logit_ref[0, :, :] = acc + blt_ref[...]


# ----------------------------------------------------------------------------
# One-time parameter prep (hoisted weight re-layouts)
# ----------------------------------------------------------------------------
def prepare_params(params):
    """Re-layout weights once so the kernel only does dense matmuls.

    conv(x)[h, w*C + c] = sum_i x_padded[h+i, :] @ A_i  where A_i is a banded
    matrix holding kernel row i of the conv weights at every output column.
    """
    w1, b1, w2, b2, wl, bl = params
    f32 = jnp.float32

    # conv1: A1[i, v, w*16 + c] = w1[c, 0, i, v - w]  for 0 <= v - w < 5
    s1 = np.zeros((5, 32, 28), np.float32)
    for j in range(5):
        for w in range(28):
            s1[j, w + j, w] = 1.0
    w1m = jnp.transpose(w1[:, 0, :, :], (1, 2, 0)).astype(f32)        # [i, j, c]
    a1 = jnp.einsum("jvw,ijc->ivwc", jnp.asarray(s1), w1m).reshape(5, 32, 448)
    b1t = jnp.tile(b1.astype(f32), 28).reshape(1, 448)

    # conv2: A2[i, v*16 + ci, w*32 + co] = w2[co, ci, i, v - w]
    s2 = np.zeros((5, 18, 14), np.float32)
    for j in range(5):
        for w in range(14):
            s2[j, w + j, w] = 1.0
    w2m = jnp.transpose(w2, (2, 3, 1, 0)).astype(f32)                 # [i, j, ci, co]
    a2 = jnp.einsum("jvw,ijpq->ivpwq", jnp.asarray(s2), w2m).reshape(5, 288, 448)
    b2t = jnp.tile(b2.astype(f32), 14).reshape(1, 448)

    # fc: re-index to the kernel's [h, w*32 + c] feature layout (== torch's
    # NCHW flatten) and pad the 10 outputs to 128 lanes for full-lane stores.
    wlp = jnp.transpose(wl.reshape(10, 32, 7, 7), (2, 3, 1, 0)).reshape(7, 224, 10)
    wlp = jnp.pad(wlp.astype(f32), ((0, 0), (0, 0), (0, 118)))
    blt = jnp.pad(bl.astype(f32), (0, 118)).reshape(1, 128)
    return a1, b1t, a2, b2t, wlp, blt


# ----------------------------------------------------------------------------
# Forward pass
# ----------------------------------------------------------------------------
@jax.jit
def cnn_forward(x_nchw, prepped):
    a1, b1t, a2, b2t, wlp, blt = prepped
    n = x_nchw.shape[0]
    x2d = x_nchw.reshape(n, 28, 28).astype(jnp.float32)

    feat_k, logit_k = pl.pallas_call(
        _cnn_kernel,
        out_shape=(jax.ShapeDtypeStruct((n, 7, 224), jnp.float32),
                   jax.ShapeDtypeStruct((n, 1, 128), jnp.float32)),
        grid=(n,),
        in_specs=[
            pl.BlockSpec((1, 28, 28), lambda i: (i, 0, 0)),      # image
            pl.BlockSpec((5, 32, 448), lambda i: (0, 0, 0)),     # conv1 banded W
            pl.BlockSpec((1, 448), lambda i: (0, 0)),            # conv1 bias (tiled)
            pl.BlockSpec((5, 288, 448), lambda i: (0, 0, 0)),    # conv2 banded W
            pl.BlockSpec((1, 448), lambda i: (0, 0)),            # conv2 bias (tiled)
            pl.BlockSpec((7, 224, 128), lambda i: (0, 0, 0)),    # fc weight (padded)
            pl.BlockSpec((1, 128), lambda i: (0, 0)),            # fc bias (padded)
        ],
        out_specs=(
            pl.BlockSpec((1, 7, 224), lambda i: (i, 0, 0)),      # features
            pl.BlockSpec((1, 1, 128), lambda i: (i, 0, 0)),      # logits (padded)
        ),
        scratch_shapes=[
            pltpu.VMEM((32, 32), jnp.float32),    # padded conv1 input
            pltpu.VMEM((28, 448), jnp.float32),   # conv1 output
            pltpu.VMEM((14, 448), jnp.float32),   # conv1 h-pooled
            pltpu.VMEM((18, 288), jnp.float32),   # padded conv2 input
            pltpu.VMEM((14, 448), jnp.float32),   # conv2 output
            pltpu.VMEM((7, 448), jnp.float32),    # conv2 h-pooled
        ],
        compiler_params=pltpu.CompilerParams(
            dimension_semantics=("parallel",)),
    )(x2d, a1, b1t, a2, b2t, wlp, blt)

    # Tiny trace-time reorder to torch's NCHW flatten order, and drop the
    # 118 zero logit lanes.
    feat = feat_k.reshape(n, 7, 7, 32).transpose(0, 3, 1, 2).reshape(n, 1568)
    logits = logit_k.reshape(n, 128)[:, :10]
    return logits, feat


# ----------------------------------------------------------------------------
# Pure-JAX reference (correctness check only)
# ----------------------------------------------------------------------------
def ref_forward(x, params):
    w1, b1, w2, b2, wl, bl = params

    def block(x, w, b):
        y = jax.lax.conv_general_dilated(
            x, w, window_strides=(1, 1), padding=((2, 2), (2, 2)),
            dimension_numbers=("NCHW", "OIHW", "NCHW"))
        y = jax.nn.relu(y + b[None, :, None, None])
        n, c, h, ww = y.shape
        return y.reshape(n, c, h // 2, 2, ww // 2, 2).max(axis=(3, 5))

    y = block(x, w1, b1)
    y = block(y, w2, b2)
    feat = y.reshape(y.shape[0], -1)
    logits = feat @ wl.T + bl
    return logits, feat


# ----------------------------------------------------------------------------
# Deterministic parameter init (shapes from CNN.__init__)
# ----------------------------------------------------------------------------
def init_params(key):
    k = jax.random.split(key, 6)
    w1 = jax.random.normal(k[0], (16, 1, 5, 5), jnp.float32) * 0.2       # conv1
    b1 = jax.random.normal(k[1], (16,), jnp.float32) * 0.1
    w2 = jax.random.normal(k[2], (32, 16, 5, 5), jnp.float32) * 0.05     # conv2
    b2 = jax.random.normal(k[3], (32,), jnp.float32) * 0.1
    wl = jax.random.normal(k[4], (10, 32 * 7 * 7), jnp.float32) * 0.025  # out
    bl = jax.random.normal(k[5], (10,), jnp.float32) * 0.1
    return w1, b1, w2, b2, wl, bl


if __name__ == "__main__":
    key = jax.random.PRNGKey(0)
    kp, kx = jax.random.split(key)
    params = init_params(kp)
    prepped = prepare_params(params)          # one-time weight re-layout

    # MNIST-like input implied by the module: [N, 1, 28, 28], small batch.
    x = jax.random.normal(kx, (2, 1, 28, 28), jnp.float32)

    logits, feat = jax.block_until_ready(cnn_forward(x, prepped))
    ref_logits, ref_feat = ref_forward(x, params)

    assert logits.shape == (2, 10) and feat.shape == (2, 32 * 7 * 7)
    assert jnp.allclose(feat, ref_feat, rtol=1e-2, atol=1e-2)
    assert jnp.allclose(logits, ref_logits, rtol=1e-2, atol=1e-2)

    print("KERNEL_OK")
</pallas_src>

<mosaic_0001>
module attributes {stable_mosaic.version = 11 : i64} {
  func.func @_cnn_kernel(%arg0: i32, %arg1: memref<1x28x28xf32, #tpu.memory_space<vmem>>, %arg2: memref<5x32x448xf32, #tpu.memory_space<vmem>>, %arg3: memref<1x448xf32, #tpu.memory_space<vmem>>, %arg4: memref<5x288x448xf32, #tpu.memory_space<vmem>>, %arg5: memref<1x448xf32, #tpu.memory_space<vmem>>, %arg6: memref<7x224x128xf32, #tpu.memory_space<vmem>>, %arg7: memref<1x128xf32, #tpu.memory_space<vmem>>, %arg8: memref<1x7x224xf32, #tpu.memory_space<vmem>>, %arg9: memref<1x1x128xf32, #tpu.memory_space<vmem>>, %arg10: memref<32x32xf32, #tpu.memory_space<vmem>>, %arg11: memref<28x448xf32, #tpu.memory_space<vmem>>, %arg12: memref<14x448xf32, #tpu.memory_space<vmem>>, %arg13: memref<18x288xf32, #tpu.memory_space<vmem>>, %arg14: memref<14x448xf32, #tpu.memory_space<vmem>>, %arg15: memref<7x448xf32, #tpu.memory_space<vmem>>) attributes {dimension_semantics = [#tpu.dimension_semantics<parallel>], iteration_bounds = array<i64: 2>, scalar_prefetch = 0 : i64, scratch_operands = 6 : i64, tpu.core_type = #tpu.core_type<tc>, window_params = [{transform_indices = @transform_0, window_bounds = array<i64: 1, 28, 28>}, {pipeline_mode = #tpu.pipeline_mode<synchronous>, transform_indices = @transform_1, window_bounds = array<i64: 5, 32, 448>}, {pipeline_mode = #tpu.pipeline_mode<synchronous>, transform_indices = @transform_2, window_bounds = array<i64: 1, 448>}, {pipeline_mode = #tpu.pipeline_mode<synchronous>, transform_indices = @transform_3, window_bounds = array<i64: 5, 288, 448>}, {pipeline_mode = #tpu.pipeline_mode<synchronous>, transform_indices = @transform_4, window_bounds = array<i64: 1, 448>}, {pipeline_mode = #tpu.pipeline_mode<synchronous>, transform_indices = @transform_5, window_bounds = array<i64: 7, 224, 128>}, {pipeline_mode = #tpu.pipeline_mode<synchronous>, transform_indices = @transform_6, window_bounds = array<i64: 1, 128>}, {transform_indices = @transform_7, window_bounds = array<i64: 1, 7, 224>}, {transform_indices = @transform_8, window_bounds = array<i64: 1, 1, 128>}]} {
    %cst = arith.constant 0.000000e+00 : f32
    %0 = vector.broadcast %cst : f32 to vector<32x32xf32>
    %c0 = arith.constant 0 : index
    %c0_0 = arith.constant 0 : index
    %1 = vector.load %arg10[%c0, %c0_0] : memref<32x32xf32, #tpu.memory_space<vmem>>, vector<32x32xf32>
    tpu.vector_store %arg10[%c0, %c0_0], %0 {strides = array<i32>} : memref<32x32xf32, #tpu.memory_space<vmem>>, vector<32x32xf32>,
    %c0_1 = arith.constant 0 : index
    %c0_2 = arith.constant 0 : index
    %c0_3 = arith.constant 0 : index
    %2 = vector.load %arg1[%c0_1, %c0_2, %c0_3] : memref<1x28x28xf32, #tpu.memory_space<vmem>>, vector<1x28x28xf32>
    %3 = vector.shape_cast %2 : vector<1x28x28xf32> to vector<28x28xf32>
    %c2 = arith.constant 2 : index
    %c2_4 = arith.constant 2 : index
    %4 = vector.load %arg10[%c2, %c2_4] : memref<32x32xf32, #tpu.memory_space<vmem>>, vector<28x28xf32>
    tpu.vector_store %arg10[%c2, %c2_4], %3 {strides = array<i32>} : memref<32x32xf32, #tpu.memory_space<vmem>>, vector<28x28xf32>,
    %c0_5 = arith.constant 0 : index
    %c0_6 = arith.constant 0 : index
    %5 = vector.load %arg10[%c0_5, %c0_6] : memref<32x32xf32, #tpu.memory_space<vmem>>, vector<28x32xf32>
    %c0_7 = arith.constant 0 : index
    %c0_8 = arith.constant 0 : index
    %c0_9 = arith.constant 0 : index
    %6 = vector.load %arg2[%c0_7, %c0_8, %c0_9] : memref<5x32x448xf32, #tpu.memory_space<vmem>>, vector<1x32x448xf32>
    %7 = vector.shape_cast %6 : vector<1x32x448xf32> to vector<32x448xf32>
    %cst_10 = arith.constant dense<0.000000e+00> : vector<28x448xf32>
    %8 = tpu.matmul %5, %7, %cst_10 {dimension_numbers = #tpu.dot_dimension_numbers<[1], [0], [0], [1], [0, 0, 1, 1], [], []>} : vector<28x32xf32>, vector<32x448xf32>, vector<28x448xf32> -> vector<28x448xf32>
    %c1 = arith.constant 1 : index
    %c0_11 = arith.constant 0 : index
    %9 = vector.load %arg10[%c1, %c0_11] : memref<32x32xf32, #tpu.memory_space<vmem>>, vector<28x32xf32>
    %c1_12 = arith.constant 1 : index
    %c0_13 = arith.constant 0 : index
    %c0_14 = arith.constant 0 : index
    %10 = vector.load %arg2[%c1_12, %c0_13, %c0_14] : memref<5x32x448xf32, #tpu.memory_space<vmem>>, vector<1x32x448xf32>
    %11 = vector.shape_cast %10 : vector<1x32x448xf32> to vector<32x448xf32>
    %cst_15 = arith.constant dense<0.000000e+00> : vector<28x448xf32>
    %12 = tpu.matmul %9, %11, %cst_15 {dimension_numbers = #tpu.dot_dimension_numbers<[1], [0], [0], [1], [0, 0, 1, 1], [], []>} : vector<28x32xf32>, vector<32x448xf32>, vector<28x448xf32> -> vector<28x448xf32>
    %13 = arith.addf %8, %12 : vector<28x448xf32>
    %c2_16 = arith.constant 2 : index
    %c0_17 = arith.constant 0 : index
    %14 = vector.load %arg10[%c2_16, %c0_17] : memref<32x32xf32, #tpu.memory_space<vmem>>, vector<28x32xf32>
    %c2_18 = arith.constant 2 : index
    %c0_19 = arith.constant 0 : index
    %c0_20 = arith.constant 0 : index
    %15 = vector.load %arg2[%c2_18, %c0_19, %c0_20] : memref<5x32x448xf32, #tpu.memory_space<vmem>>, vector<1x32x448xf32>
    %16 = vector.shape_cast %15 : vector<1x32x448xf32> to vector<32x448xf32>
    %cst_21 = arith.constant dense<0.000000e+00> : vector<28x448xf32>
    %17 = tpu.matmul %14, %16, %cst_21 {dimension_numbers = #tpu.dot_dimension_numbers<[1], [0], [0], [1], [0, 0, 1, 1], [], []>} : vector<28x32xf32>, vector<32x448xf32>, vector<28x448xf32> -> vector<28x448xf32>
    %18 = arith.addf %13, %17 : vector<28x448xf32>
    %c3 = arith.constant 3 : index
    %c0_22 = arith.constant 0 : index
    %19 = vector.load %arg10[%c3, %c0_22] : memref<32x32xf32, #tpu.memory_space<vmem>>, vector<28x32xf32>
    %c3_23 = arith.constant 3 : index
    %c0_24 = arith.constant 0 : index
    %c0_25 = arith.constant 0 : index
    %20 = vector.load %arg2[%c3_23, %c0_24, %c0_25] : memref<5x32x448xf32, #tpu.memory_space<vmem>>, vector<1x32x448xf32>
    %21 = vector.shape_cast %20 : vector<1x32x448xf32> to vector<32x448xf32>
    %cst_26 = arith.constant dense<0.000000e+00> : vector<28x448xf32>
    %22 = tpu.matmul %19, %21, %cst_26 {dimension_numbers = #tpu.dot_dimension_numbers<[1], [0], [0], [1], [0, 0, 1, 1], [], []>} : vector<28x32xf32>, vector<32x448xf32>, vector<28x448xf32> -> vector<28x448xf32>
    %23 = arith.addf %18, %22 : vector<28x448xf32>
    %c4 = arith.constant 4 : index
    %c0_27 = arith.constant 0 : index
    %24 = vector.load %arg10[%c4, %c0_27] : memref<32x32xf32, #tpu.memory_space<vmem>>, vector<28x32xf32>
    %c4_28 = arith.constant 4 : index
    %c0_29 = arith.constant 0 : index
    %c0_30 = arith.constant 0 : index
    %25 = vector.load %arg2[%c4_28, %c0_29, %c0_30] : memref<5x32x448xf32, #tpu.memory_space<vmem>>, vector<1x32x448xf32>
    %26 = vector.shape_cast %25 : vector<1x32x448xf32> to vector<32x448xf32>
    %cst_31 = arith.constant dense<0.000000e+00> : vector<28x448xf32>
    %27 = tpu.matmul %24, %26, %cst_31 {dimension_numbers = #tpu.dot_dimension_numbers<[1], [0], [0], [1], [0, 0, 1, 1], [], []>} : vector<28x32xf32>, vector<32x448xf32>, vector<28x448xf32> -> vector<28x448xf32>
    %28 = arith.addf %23, %27 : vector<28x448xf32>
    %c0_32 = arith.constant 0 : index
    %c0_33 = arith.constant 0 : index
    %29 = vector.load %arg3[%c0_32, %c0_33] : memref<1x448xf32, #tpu.memory_space<vmem>>, vector<1x448xf32>
    %30 = vector.broadcast %29 : vector<1x448xf32> to vector<28x448xf32>
    %31 = arith.addf %28, %30 : vector<28x448xf32>
    %cst_34 = arith.constant 0.000000e+00 : f32
    %32 = vector.broadcast %cst_34 : f32 to vector<28x448xf32>
    %33 = arith.maximumf %31, %32 : vector<28x448xf32>
    %c0_35 = arith.constant 0 : index
    %c0_36 = arith.constant 0 : index
    %34 = vector.load %arg11[%c0_35, %c0_36] : memref<28x448xf32, #tpu.memory_space<vmem>>, vector<28x448xf32>
    tpu.vector_store %arg11[%c0_35, %c0_36], %33 {strides = array<i32>} : memref<28x448xf32, #tpu.memory_space<vmem>>, vector<28x448xf32>,
    %c0_37 = arith.constant 0 : index
    %c0_38 = arith.constant 0 : index
    %35 = vector.load %arg11[%c0_37, %c0_38] : memref<28x448xf32, #tpu.memory_space<vmem>>, vector<1x448xf32>
    %c1_39 = arith.constant 1 : index
    %c0_40 = arith.constant 0 : index
    %36 = vector.load %arg11[%c1_39, %c0_40] : memref<28x448xf32, #tpu.memory_space<vmem>>, vector<1x448xf32>
    %37 = arith.maximumf %35, %36 : vector<1x448xf32>
    %c0_41 = arith.constant 0 : index
    %c0_42 = arith.constant 0 : index
    %38 = vector.load %arg12[%c0_41, %c0_42] : memref<14x448xf32, #tpu.memory_space<vmem>>, vector<1x448xf32>
    tpu.vector_store %arg12[%c0_41, %c0_42], %37 {strides = array<i32>} : memref<14x448xf32, #tpu.memory_space<vmem>>, vector<1x448xf32>,
    %c2_43 = arith.constant 2 : index
    %c0_44 = arith.constant 0 : index
    %39 = vector.load %arg11[%c2_43, %c0_44] : memref<28x448xf32, #tpu.memory_space<vmem>>, vector<1x448xf32>
    %c3_45 = arith.constant 3 : index
    %c0_46 = arith.constant 0 : index
    %40 = vector.load %arg11[%c3_45, %c0_46] : memref<28x448xf32, #tpu.memory_space<vmem>>, vector<1x448xf32>
    %41 = arith.maximumf %39, %40 : vector<1x448xf32>
    %c1_47 = arith.constant 1 : index
    %c0_48 = arith.constant 0 : index
    %42 = vector.load %arg12[%c1_47, %c0_48] : memref<14x448xf32, #tpu.memory_space<vmem>>, vector<1x448xf32>
    tpu.vector_store %arg12[%c1_47, %c0_48], %41 {strides = array<i32>} : memref<14x448xf32, #tpu.memory_space<vmem>>, vector<1x448xf32>,
    %c4_49 = arith.constant 4 : index
    %c0_50 = arith.constant 0 : index
    %43 = vector.load %arg11[%c4_49, %c0_50] : memref<28x448xf32, #tpu.memory_space<vmem>>, vector<1x448xf32>
    %c5 = arith.constant 5 : index
    %c0_51 = arith.constant 0 : index
    %44 = vector.load %arg11[%c5, %c0_51] : memref<28x448xf32, #tpu.memory_space<vmem>>, vector<1x448xf32>
    %45 = arith.maximumf %43, %44 : vector<1x448xf32>
    %c2_52 = arith.constant 2 : index
    %c0_53 = arith.constant 0 : index
    %46 = vector.load %arg12[%c2_52, %c0_53] : memref<14x448xf32, #tpu.memory_space<vmem>>, vector<1x448xf32>
    tpu.vector_store %arg12[%c2_52, %c0_53], %45 {strides = array<i32>} : memref<14x448xf32, #tpu.memory_space<vmem>>, vector<1x448xf32>,
    %c6 = arith.constant 6 : index
    %c0_54 = arith.constant 0 : index
    %47 = vector.load %arg11[%c6, %c0_54] : memref<28x448xf32, #tpu.memory_space<vmem>>, vector<1x448xf32>
    %c7 = arith.constant 7 : index
    %c0_55 = arith.constant 0 : index
    %48 = vector.load %arg11[%c7, %c0_55] : memref<28x448xf32, #tpu.memory_space<vmem>>, vector<1x448xf32>
    %49 = arith.maximumf %47, %48 : vector<1x448xf32>
    %c3_56 = arith.constant 3 : index
    %c0_57 = arith.constant 0 : index
    %50 = vector.load %arg12[%c3_56, %c0_57] : memref<14x448xf32, #tpu.memory_space<vmem>>, vector<1x448xf32>
    tpu.vector_store %arg12[%c3_56, %c0_57], %49 {strides = array<i32>} : memref<14x448xf32, #tpu.memory_space<vmem>>, vector<1x448xf32>,
    %c8 = arith.constant 8 : index
    %c0_58 = arith.constant 0 : index
    %51 = vector.load %arg11[%c8, %c0_58] : memref<28x448xf32, #tpu.memory_space<vmem>>, vector<1x448xf32>
    %c9 = arith.constant 9 : index
    %c0_59 = arith.constant 0 : index
    %52 = vector.load %arg11[%c9, %c0_59] : memref<28x448xf32, #tpu.memory_space<vmem>>, vector<1x448xf32>
    %53 = arith.maximumf %51, %52 : vector<1x448xf32>
    %c4_60 = arith.constant 4 : index
    %c0_61 = arith.constant 0 : index
    %54 = vector.load %arg12[%c4_60, %c0_61] : memref<14x448xf32, #tpu.memory_space<vmem>>, vector<1x448xf32>
    tpu.vector_store %arg12[%c4_60, %c0_61], %53 {strides = array<i32>} : memref<14x448xf32, #tpu.memory_space<vmem>>, vector<1x448xf32>,
    %c10 = arith.constant 10 : index
    %c0_62 = arith.constant 0 : index
    %55 = vector.load %arg11[%c10, %c0_62] : memref<28x448xf32, #tpu.memory_space<vmem>>, vector<1x448xf32>
    %c11 = arith.constant 11 : index
    %c0_63 = arith.constant 0 : index
    %56 = vector.load %arg11[%c11, %c0_63] : memref<28x448xf32, #tpu.memory_space<vmem>>, vector<1x448xf32>
    %57 = arith.maximumf %55, %56 : vector<1x448xf32>
    %c5_64 = arith.constant 5 : index
    %c0_65 = arith.constant 0 : index
    %58 = vector.load %arg12[%c5_64, %c0_65] : memref<14x448xf32, #tpu.memory_space<vmem>>, vector<1x448xf32>
    tpu.vector_store %arg12[%c5_64, %c0_65], %57 {strides = array<i32>} : memref<14x448xf32, #tpu.memory_space<vmem>>, vector<1x448xf32>,
    %c12 = arith.constant 12 : index
    %c0_66 = arith.constant 0 : index
    %59 = vector.load %arg11[%c12, %c0_66] : memref<28x448xf32, #tpu.memory_space<vmem>>, vector<1x448xf32>
    %c13 = arith.constant 13 : index
    %c0_67 = arith.constant 0 : index
    %60 = vector.load %arg11[%c13, %c0_67] : memref<28x448xf32, #tpu.memory_space<vmem>>, vector<1x448xf32>
    %61 = arith.maximumf %59, %60 : vector<1x448xf32>
    %c6_68 = arith.constant 6 : index
    %c0_69 = arith.constant 0 : index
    %62 = vector.load %arg12[%c6_68, %c0_69] : memref<14x448xf32, #tpu.memory_space<vmem>>, vector<1x448xf32>
    tpu.vector_store %arg12[%c6_68, %c0_69], %61 {strides = array<i32>} : memref<14x448xf32, #tpu.memory_space<vmem>>, vector<1x448xf32>,
    %c14 = arith.constant 14 : index
    %c0_70 = arith.constant 0 : index
    %63 = vector.load %arg11[%c14, %c0_70] : memref<28x448xf32, #tpu.memory_space<vmem>>, vector<1x448xf32>
    %c15 = arith.constant 15 : index
    %c0_71 = arith.constant 0 : index
    %64 = vector.load %arg11[%c15, %c0_71] : memref<28x448xf32, #tpu.memory_space<vmem>>, vector<1x448xf32>
    %65 = arith.maximumf %63, %64 : vector<1x448xf32>
    %c7_72 = arith.constant 7 : index
    %c0_73 = arith.constant 0 : index
    %66 = vector.load %arg12[%c7_72, %c0_73] : memref<14x448xf32, #tpu.memory_space<vmem>>, vector<1x448xf32>
    tpu.vector_store %arg12[%c7_72, %c0_73], %65 {strides = array<i32>} : memref<14x448xf32, #tpu.memory_space<vmem>>, vector<1x448xf32>,
    %c16 = arith.constant 16 : index
    %c0_74 = arith.constant 0 : index
    %67 = vector.load %arg11[%c16, %c0_74] : memref<28x448xf32, #tpu.memory_space<vmem>>, vector<1x448xf32>
    %c17 = arith.constant 17 : index
    %c0_75 = arith.constant 0 : index
    %68 = vector.load %arg11[%c17, %c0_75] : memref<28x448xf32, #tpu.memory_space<vmem>>, vector<1x448xf32>
    %69 = arith.maximumf %67, %68 : vector<1x448xf32>
    %c8_76 = arith.constant 8 : index
    %c0_77 = arith.constant 0 : index
    %70 = vector.load %arg12[%c8_76, %c0_77] : memref<14x448xf32, #tpu.memory_space<vmem>>, vector<1x448xf32>
    tpu.vector_store %arg12[%c8_76, %c0_77], %69 {strides = array<i32>} : memref<14x448xf32, #tpu.memory_space<vmem>>, vector<1x448xf32>,
    %c18 = arith.constant 18 : index
    %c0_78 = arith.constant 0 : index
    %71 = vector.load %arg11[%c18, %c0_78] : memref<28x448xf32, #tpu.memory_space<vmem>>, vector<1x448xf32>
    %c19 = arith.constant 19 : index
    %c0_79 = arith.constant 0 : index
    %72 = vector.load %arg11[%c19, %c0_79] : memref<28x448xf32, #tpu.memory_space<vmem>>, vector<1x448xf32>
    %73 = arith.maximumf %71, %72 : vector<1x448xf32>
    %c9_80 = arith.constant 9 : index
    %c0_81 = arith.constant 0 : index
    %74 = vector.load %arg12[%c9_80, %c0_81] : memref<14x448xf32, #tpu.memory_space<vmem>>, vector<1x448xf32>
    tpu.vector_store %arg12[%c9_80, %c0_81], %73 {strides = array<i32>} : memref<14x448xf32, #tpu.memory_space<vmem>>, vector<1x448xf32>,
    %c20 = arith.constant 20 : index
    %c0_82 = arith.constant 0 : index
    %75 = vector.load %arg11[%c20, %c0_82] : memref<28x448xf32, #tpu.memory_space<vmem>>, vector<1x448xf32>
    %c21 = arith.constant 21 : index
    %c0_83 = arith.constant 0 : index
    %76 = vector.load %arg11[%c21, %c0_83] : memref<28x448xf32, #tpu.memory_space<vmem>>, vector<1x448xf32>
    %77 = arith.maximumf %75, %76 : vector<1x448xf32>
    %c10_84 = arith.constant 10 : index
    %c0_85 = arith.constant 0 : index
    %78 = vector.load %arg12[%c10_84, %c0_85] : memref<14x448xf32, #tpu.memory_space<vmem>>, vector<1x448xf32>
    tpu.vector_store %arg12[%c10_84, %c0_85], %77 {strides = array<i32>} : memref<14x448xf32, #tpu.memory_space<vmem>>, vector<1x448xf32>,
    %c22 = arith.constant 22 : index
    %c0_86 = arith.constant 0 : index
    %79 = vector.load %arg11[%c22, %c0_86] : memref<28x448xf32, #tpu.memory_space<vmem>>, vector<1x448xf32>
    %c23 = arith.constant 23 : index
    %c0_87 = arith.constant 0 : index
    %80 = vector.load %arg11[%c23, %c0_87] : memref<28x448xf32, #tpu.memory_space<vmem>>, vector<1x448xf32>
    %81 = arith.maximumf %79, %80 : vector<1x448xf32>
    %c11_88 = arith.constant 11 : index
    %c0_89 = arith.constant 0 : index
    %82 = vector.load %arg12[%c11_88, %c0_89] : memref<14x448xf32, #tpu.memory_space<vmem>>, vector<1x448xf32>
    tpu.vector_store %arg12[%c11_88, %c0_89], %81 {strides = array<i32>} : memref<14x448xf32, #tpu.memory_space<vmem>>, vector<1x448xf32>,
    %c24 = arith.constant 24 : index
    %c0_90 = arith.constant 0 : index
    %83 = vector.load %arg11[%c24, %c0_90] : memref<28x448xf32, #tpu.memory_space<vmem>>, vector<1x448xf32>
    %c25 = arith.constant 25 : index
    %c0_91 = arith.constant 0 : index
    %84 = vector.load %arg11[%c25, %c0_91] : memref<28x448xf32, #tpu.memory_space<vmem>>, vector<1x448xf32>
    %85 = arith.maximumf %83, %84 : vector<1x448xf32>
    %c12_92 = arith.constant 12 : index
    %c0_93 = arith.constant 0 : index
    %86 = vector.load %arg12[%c12_92, %c0_93] : memref<14x448xf32, #tpu.memory_space<vmem>>, vector<1x448xf32>
    tpu.vector_store %arg12[%c12_92, %c0_93], %85 {strides = array<i32>} : memref<14x448xf32, #tpu.memory_space<vmem>>, vector<1x448xf32>,
    %c26 = arith.constant 26 : index
    %c0_94 = arith.constant 0 : index
    %87 = vector.load %arg11[%c26, %c0_94] : memref<28x448xf32, #tpu.memory_space<vmem>>, vector<1x448xf32>
    %c27 = arith.constant 27 : index
    %c0_95 = arith.constant 0 : index
    %88 = vector.load %arg11[%c27, %c0_95] : memref<28x448xf32, #tpu.memory_space<vmem>>, vector<1x448xf32>
    %89 = arith.maximumf %87, %88 : vector<1x448xf32>
    %c13_96 = arith.constant 13 : index
    %c0_97 = arith.constant 0 : index
    %90 = vector.load %arg12[%c13_96, %c0_97] : memref<14x448xf32, #tpu.memory_space<vmem>>, vector<1x448xf32>
    tpu.vector_store %arg12[%c13_96, %c0_97], %89 {strides = array<i32>} : memref<14x448xf32, #tpu.memory_space<vmem>>, vector<1x448xf32>,
    %cst_98 = arith.constant 0.000000e+00 : f32
    %91 = vector.broadcast %cst_98 : f32 to vector<18x288xf32>
    %c0_99 = arith.constant 0 : index
    %c0_100 = arith.constant 0 : index
    %92 = vector.load %arg13[%c0_99, %c0_100] : memref<18x288xf32, #tpu.memory_space<vmem>>, vector<18x288xf32>
    tpu.vector_store %arg13[%c0_99, %c0_100], %91 {strides = array<i32>} : memref<18x288xf32, #tpu.memory_space<vmem>>, vector<18x288xf32>,
    %c0_101 = arith.constant 0 : index
    %c0_102 = arith.constant 0 : index
    %93 = vector.load %arg12[%c0_101, %c0_102] : memref<14x448xf32, #tpu.memory_space<vmem>>, vector<14x448xf32>
    %94 = vector.extract_strided_slice %93 {offsets = [0, 0], sizes = [14, 16], strides = [1, 1]} : vector<14x448xf32> to vector<14x16xf32>
    %95 = vector.extract_strided_slice %93 {offsets = [0, 16], sizes = [14, 16], strides = [1, 1]} : vector<14x448xf32> to vector<14x16xf32>
    %96 = arith.maximumf %94, %95 : vector<14x16xf32>
    %c2_103 = arith.constant 2 : index
    %c32 = arith.constant 32 : index
    %97 = vector.load %arg13[%c2_103, %c32] : memref<18x288xf32, #tpu.memory_space<vmem>>, vector<14x16xf32>
    tpu.vector_store %arg13[%c2_103, %c32], %96 {strides = array<i32>} : memref<18x288xf32, #tpu.memory_space<vmem>>, vector<14x16xf32>,
    %98 = vector.extract_strided_slice %93 {offsets = [0, 32], sizes = [14, 16], strides = [1, 1]} : vector<14x448xf32> to vector<14x16xf32>
    %99 = vector.extract_strided_slice %93 {offsets = [0, 48], sizes = [14, 16], strides = [1, 1]} : vector<14x448xf32> to vector<14x16xf32>
    %100 = arith.maximumf %98, %99 : vector<14x16xf32>
    %c2_104 = arith.constant 2 : index
    %c48 = arith.constant 48 : index
    %101 = vector.load %arg13[%c2_104, %c48] : memref<18x288xf32, #tpu.memory_space<vmem>>, vector<14x16xf32>
    tpu.vector_store %arg13[%c2_104, %c48], %100 {strides = array<i32>} : memref<18x288xf32, #tpu.memory_space<vmem>>, vector<14x16xf32>,
    %102 = vector.extract_strided_slice %93 {offsets = [0, 64], sizes = [14, 16], strides = [1, 1]} : vector<14x448xf32> to vector<14x16xf32>
    %103 = vector.extract_strided_slice %93 {offsets = [0, 80], sizes = [14, 16], strides = [1, 1]} : vector<14x448xf32> to vector<14x16xf32>
    %104 = arith.maximumf %102, %103 : vector<14x16xf32>
    %c2_105 = arith.constant 2 : index
    %c64 = arith.constant 64 : index
    %105 = vector.load %arg13[%c2_105, %c64] : memref<18x288xf32, #tpu.memory_space<vmem>>, vector<14x16xf32>
    tpu.vector_store %arg13[%c2_105, %c64], %104 {strides = array<i32>} : memref<18x288xf32, #tpu.memory_space<vmem>>, vector<14x16xf32>,
    %106 = vector.extract_strided_slice %93 {offsets = [0, 96], sizes = [14, 16], strides = [1, 1]} : vector<14x448xf32> to vector<14x16xf32>
    %107 = vector.extract_strided_slice %93 {offsets = [0, 112], sizes = [14, 16], strides = [1, 1]} : vector<14x448xf32> to vector<14x16xf32>
    %108 = arith.maximumf %106, %107 : vector<14x16xf32>
    %c2_106 = arith.constant 2 : index
    %c80 = arith.constant 80 : index
    %109 = vector.load %arg13[%c2_106, %c80] : memref<18x288xf32, #tpu.memory_space<vmem>>, vector<14x16xf32>
    tpu.vector_store %arg13[%c2_106, %c80], %108 {strides = array<i32>} : memref<18x288xf32, #tpu.memory_space<vmem>>, vector<14x16xf32>,
    %110 = vector.extract_strided_slice %93 {offsets = [0, 128], sizes = [14, 16], strides = [1, 1]} : vector<14x448xf32> to vector<14x16xf32>
    %111 = vector.extract_strided_slice %93 {offsets = [0, 144], sizes = [14, 16], strides = [1, 1]} : vector<14x448xf32> to vector<14x16xf32>
    %112 = arith.maximumf %110, %111 : vector<14x16xf32>
    %c2_107 = arith.constant 2 : index
    %c96 = arith.constant 96 : index
    %113 = vector.load %arg13[%c2_107, %c96] : memref<18x288xf32, #tpu.memory_space<vmem>>, vector<14x16xf32>
    tpu.vector_store %arg13[%c2_107, %c96], %112 {strides = array<i32>} : memref<18x288xf32, #tpu.memory_space<vmem>>, vector<14x16xf32>,
    %114 = vector.extract_strided_slice %93 {offsets = [0, 160], sizes = [14, 16], strides = [1, 1]} : vector<14x448xf32> to vector<14x16xf32>
    %115 = vector.extract_strided_slice %93 {offsets = [0, 176], sizes = [14, 16], strides = [1, 1]} : vector<14x448xf32> to vector<14x16xf32>
    %116 = arith.maximumf %114, %115 : vector<14x16xf32>
    %c2_108 = arith.constant 2 : index
    %c112 = arith.constant 112 : index
    %117 = vector.load %arg13[%c2_108, %c112] : memref<18x288xf32, #tpu.memory_space<vmem>>, vector<14x16xf32>
    tpu.vector_store %arg13[%c2_108, %c112], %116 {strides = array<i32>} : memref<18x288xf32, #tpu.memory_space<vmem>>, vector<14x16xf32>,
    %118 = vector.extract_strided_slice %93 {offsets = [0, 192], sizes = [14, 16], strides = [1, 1]} : vector<14x448xf32> to vector<14x16xf32>
    %119 = vector.extract_strided_slice %93 {offsets = [0, 208], sizes = [14, 16], strides = [1, 1]} : vector<14x448xf32> to vector<14x16xf32>
    %120 = arith.maximumf %118, %119 : vector<14x16xf32>
    %c2_109 = arith.constant 2 : index
    %c128 = arith.constant 128 : index
    %121 = vector.load %arg13[%c2_109, %c128] : memref<18x288xf32, #tpu.memory_space<vmem>>, vector<14x16xf32>
    tpu.vector_store %arg13[%c2_109, %c128], %120 {strides = array<i32>} : memref<18x288xf32, #tpu.memory_space<vmem>>, vector<14x16xf32>,
    %122 = vector.extract_strided_slice %93 {offsets = [0, 224], sizes = [14, 16], strides = [1, 1]} : vector<14x448xf32> to vector<14x16xf32>
    %123 = vector.extract_strided_slice %93 {offsets = [0, 240], sizes = [14, 16], strides = [1, 1]} : vector<14x448xf32> to vector<14x16xf32>
    %124 = arith.maximumf %122, %123 : vector<14x16xf32>
    %c2_110 = arith.constant 2 : index
    %c144 = arith.constant 144 : index
    %125 = vector.load %arg13[%c2_110, %c144] : memref<18x288xf32, #tpu.memory_space<vmem>>, vector<14x16xf32>
    tpu.vector_store %arg13[%c2_110, %c144], %124 {strides = array<i32>} : memref<18x288xf32, #tpu.memory_space<vmem>>, vector<14x16xf32>,
    %126 = vector.extract_strided_slice %93 {offsets = [0, 256], sizes = [14, 16], strides = [1, 1]} : vector<14x448xf32> to vector<14x16xf32>
    %127 = vector.extract_strided_slice %93 {offsets = [0, 272], sizes = [14, 16], strides = [1, 1]} : vector<14x448xf32> to vector<14x16xf32>
    %128 = arith.maximumf %126, %127 : vector<14x16xf32>
    %c2_111 = arith.constant 2 : index
    %c160 = arith.constant 160 : index
    %129 = vector.load %arg13[%c2_111, %c160] : memref<18x288xf32, #tpu.memory_space<vmem>>, vector<14x16xf32>
    tpu.vector_store %arg13[%c2_111, %c160], %128 {strides = array<i32>} : memref<18x288xf32, #tpu.memory_space<vmem>>, vector<14x16xf32>,
    %130 = vector.extract_strided_slice %93 {offsets = [0, 288], sizes = [14, 16], strides = [1, 1]} : vector<14x448xf32> to vector<14x16xf32>
    %131 = vector.extract_strided_slice %93 {offsets = [0, 304], sizes = [14, 16], strides = [1, 1]} : vector<14x448xf32> to vector<14x16xf32>
    %132 = arith.maximumf %130, %131 : vector<14x16xf32>
    %c2_112 = arith.constant 2 : index
    %c176 = arith.constant 176 : index
    %133 = vector.load %arg13[%c2_112, %c176] : memref<18x288xf32, #tpu.memory_space<vmem>>, vector<14x16xf32>
    tpu.vector_store %arg13[%c2_112, %c176], %132 {strides = array<i32>} : memref<18x288xf32, #tpu.memory_space<vmem>>, vector<14x16xf32>,
    %134 = vector.extract_strided_slice %93 {offsets = [0, 320], sizes = [14, 16], strides = [1, 1]} : vector<14x448xf32> to vector<14x16xf32>
    %135 = vector.extract_strided_slice %93 {offsets = [0, 336], sizes = [14, 16], strides = [1, 1]} : vector<14x448xf32> to vector<14x16xf32>
    %136 = arith.maximumf %134, %135 : vector<14x16xf32>
    %c2_113 = arith.constant 2 : index
    %c192 = arith.constant 192 : index
    %137 = vector.load %arg13[%c2_113, %c192] : memref<18x288xf32, #tpu.memory_space<vmem>>, vector<14x16xf32>
    tpu.vector_store %arg13[%c2_113, %c192], %136 {strides = array<i32>} : memref<18x288xf32, #tpu.memory_space<vmem>>, vector<14x16xf32>,
    %138 = vector.extract_strided_slice %93 {offsets = [0, 352], sizes = [14, 16], strides = [1, 1]} : vector<14x448xf32> to vector<14x16xf32>
    %139 = vector.extract_strided_slice %93 {offsets = [0, 368], sizes = [14, 16], strides = [1, 1]} : vector<14x448xf32> to vector<14x16xf32>
    %140 = arith.maximumf %138, %139 : vector<14x16xf32>
    %c2_114 = arith.constant 2 : index
    %c208 = arith.constant 208 : index
    %141 = vector.load %arg13[%c2_114, %c208] : memref<18x288xf32, #tpu.memory_space<vmem>>, vector<14x16xf32>
    tpu.vector_store %arg13[%c2_114, %c208], %140 {strides = array<i32>} : memref<18x288xf32, #tpu.memory_space<vmem>>, vector<14x16xf32>,
    %142 = vector.extract_strided_slice %93 {offsets = [0, 384], sizes = [14, 16], strides = [1, 1]} : vector<14x448xf32> to vector<14x16xf32>
    %143 = vector.extract_strided_slice %93 {offsets = [0, 400], sizes = [14, 16], strides = [1, 1]} : vector<14x448xf32> to vector<14x16xf32>
    %144 = arith.maximumf %142, %143 : vector<14x16xf32>
    %c2_115 = arith.constant 2 : index
    %c224 = arith.constant 224 : index
    %145 = vector.load %arg13[%c2_115, %c224] : memref<18x288xf32, #tpu.memory_space<vmem>>, vector<14x16xf32>
    tpu.vector_store %arg13[%c2_115, %c224], %144 {strides = array<i32>} : memref<18x288xf32, #tpu.memory_space<vmem>>, vector<14x16xf32>,
    %146 = vector.extract_strided_slice %93 {offsets = [0, 416], sizes = [14, 16], strides = [1, 1]} : vector<14x448xf32> to vector<14x16xf32>
    %147 = vector.extract_strided_slice %93 {offsets = [0, 432], sizes = [14, 16], strides = [1, 1]} : vector<14x448xf32> to vector<14x16xf32>
    %148 = arith.maximumf %146, %147 : vector<14x16xf32>
    %c2_116 = arith.constant 2 : index
    %c240 = arith.constant 240 : index
    %149 = vector.load %arg13[%c2_116, %c240] : memref<18x288xf32, #tpu.memory_space<vmem>>, vector<14x16xf32>
    tpu.vector_store %arg13[%c2_116, %c240], %148 {strides = array<i32>} : memref<18x288xf32, #tpu.memory_space<vmem>>, vector<14x16xf32>,
    %c0_117 = arith.constant 0 : index
    %c0_118 = arith.constant 0 : index
    %150 = vector.load %arg13[%c0_117, %c0_118] : memref<18x288xf32, #tpu.memory_space<vmem>>, vector<14x288xf32>
    %c0_119 = arith.constant 0 : index
    %c0_120 = arith.constant 0 : index
    %c0_121 = arith.constant 0 : index
    %151 = vector.load %arg4[%c0_119, %c0_120, %c0_121] : memref<5x288x448xf32, #tpu.memory_space<vmem>>, vector<1x288x448xf32>
    %152 = vector.shape_cast %151 : vector<1x288x448xf32> to vector<288x448xf32>
    %cst_122 = arith.constant dense<0.000000e+00> : vector<14x448xf32>
    %153 = tpu.matmul %150, %152, %cst_122 {dimension_numbers = #tpu.dot_dimension_numbers<[1], [0], [0], [1], [0, 0, 1, 1], [], []>} : vector<14x288xf32>, vector<288x448xf32>, vector<14x448xf32> -> vector<14x448xf32>
    %c1_123 = arith.constant 1 : index
    %c0_124 = arith.constant 0 : index
    %154 = vector.load %arg13[%c1_123, %c0_124] : memref<18x288xf32, #tpu.memory_space<vmem>>, vector<14x288xf32>
    %c1_125 = arith.constant 1 : index
    %c0_126 = arith.constant 0 : index
    %c0_127 = arith.constant 0 : index
    %155 = vector.load %arg4[%c1_125, %c0_126, %c0_127] : memref<5x288x448xf32, #tpu.memory_space<vmem>>, vector<1x288x448xf32>
    %156 = vector.shape_cast %155 : vector<1x288x448xf32> to vector<288x448xf32>
    %cst_128 = arith.constant dense<0.000000e+00> : vector<14x448xf32>
    %157 = tpu.matmul %154, %156, %cst_128 {dimension_numbers = #tpu.dot_dimension_numbers<[1], [0], [0], [1], [0, 0, 1, 1], [], []>} : vector<14x288xf32>, vector<288x448xf32>, vector<14x448xf32> -> vector<14x448xf32>
    %158 = arith.addf %153, %157 : vector<14x448xf32>
    %c2_129 = arith.constant 2 : index
    %c0_130 = arith.constant 0 : index
    %159 = vector.load %arg13[%c2_129, %c0_130] : memref<18x288xf32, #tpu.memory_space<vmem>>, vector<14x288xf32>
    %c2_131 = arith.constant 2 : index
    %c0_132 = arith.constant 0 : index
    %c0_133 = arith.constant 0 : index
    %160 = vector.load %arg4[%c2_131, %c0_132, %c0_133] : memref<5x288x448xf32, #tpu.memory_space<vmem>>, vector<1x288x448xf32>
    %161 = vector.shape_cast %160 : vector<1x288x448xf32> to vector<288x448xf32>
    %cst_134 = arith.constant dense<0.000000e+00> : vector<14x448xf32>
    %162 = tpu.matmul %159, %161, %cst_134 {dimension_numbers = #tpu.dot_dimension_numbers<[1], [0], [0], [1], [0, 0, 1, 1], [], []>} : vector<14x288xf32>, vector<288x448xf32>, vector<14x448xf32> -> vector<14x448xf32>
    %163 = arith.addf %158, %162 : vector<14x448xf32>
    %c3_135 = arith.constant 3 : index
    %c0_136 = arith.constant 0 : index
    %164 = vector.load %arg13[%c3_135, %c0_136] : memref<18x288xf32, #tpu.memory_space<vmem>>, vector<14x288xf32>
    %c3_137 = arith.constant 3 : index
    %c0_138 = arith.constant 0 : index
    %c0_139 = arith.constant 0 : index
    %165 = vector.load %arg4[%c3_137, %c0_138, %c0_139] : memref<5x288x448xf32, #tpu.memory_space<vmem>>, vector<1x288x448xf32>
    %166 = vector.shape_cast %165 : vector<1x288x448xf32> to vector<288x448xf32>
    %cst_140 = arith.constant dense<0.000000e+00> : vector<14x448xf32>
    %167 = tpu.matmul %164, %166, %cst_140 {dimension_numbers = #tpu.dot_dimension_numbers<[1], [0], [0], [1], [0, 0, 1, 1], [], []>} : vector<14x288xf32>, vector<288x448xf32>, vector<14x448xf32> -> vector<14x448xf32>
    %168 = arith.addf %163, %167 : vector<14x448xf32>
    %c4_141 = arith.constant 4 : index
    %c0_142 = arith.constant 0 : index
    %169 = vector.load %arg13[%c4_141, %c0_142] : memref<18x288xf32, #tpu.memory_space<vmem>>, vector<14x288xf32>
    %c4_143 = arith.constant 4 : index
    %c0_144 = arith.constant 0 : index
    %c0_145 = arith.constant 0 : index
    %170 = vector.load %arg4[%c4_143, %c0_144, %c0_145] : memref<5x288x448xf32, #tpu.memory_space<vmem>>, vector<1x288x448xf32>
    %171 = vector.shape_cast %170 : vector<1x288x448xf32> to vector<288x448xf32>
    %cst_146 = arith.constant dense<0.000000e+00> : vector<14x448xf32>
    %172 = tpu.matmul %169, %171, %cst_146 {dimension_numbers = #tpu.dot_dimension_numbers<[1], [0], [0], [1], [0, 0, 1, 1], [], []>} : vector<14x288xf32>, vector<288x448xf32>, vector<14x448xf32> -> vector<14x448xf32>
    %173 = arith.addf %168, %172 : vector<14x448xf32>
    %c0_147 = arith.constant 0 : index
    %c0_148 = arith.constant 0 : index
    %174 = vector.load %arg5[%c0_147, %c0_148] : memref<1x448xf32, #tpu.memory_space<vmem>>, vector<1x448xf32>
    %175 = vector.broadcast %174 : vector<1x448xf32> to vector<14x448xf32>
    %176 = arith.addf %173, %175 : vector<14x448xf32>
    %cst_149 = arith.constant 0.000000e+00 : f32
    %177 = vector.broadcast %cst_149 : f32 to vector<14x448xf32>
    %178 = arith.maximumf %176, %177 : vector<14x448xf32>
    %c0_150 = arith.constant 0 : index
    %c0_151 = arith.constant 0 : index
    %179 = vector.load %arg14[%c0_150, %c0_151] : memref<14x448xf32, #tpu.memory_space<vmem>>, vector<14x448xf32>
    tpu.vector_store %arg14[%c0_150, %c0_151], %178 {strides = array<i32>} : memref<14x448xf32, #tpu.memory_space<vmem>>, vector<14x448xf32>,
    %c0_152 = arith.constant 0 : index
    %c0_153 = arith.constant 0 : index
    %180 = vector.load %arg14[%c0_152, %c0_153] : memref<14x448xf32, #tpu.memory_space<vmem>>, vector<1x448xf32>
    %c1_154 = arith.constant 1 : index
    %c0_155 = arith.constant 0 : index
    %181 = vector.load %arg14[%c1_154, %c0_155] : memref<14x448xf32, #tpu.memory_space<vmem>>, vector<1x448xf32>
    %182 = arith.maximumf %180, %181 : vector<1x448xf32>
    %c0_156 = arith.constant 0 : index
    %c0_157 = arith.constant 0 : index
    %183 = vector.load %arg15[%c0_156, %c0_157] : memref<7x448xf32, #tpu.memory_space<vmem>>, vector<1x448xf32>
    tpu.vector_store %arg15[%c0_156, %c0_157], %182 {strides = array<i32>} : memref<7x448xf32, #tpu.memory_space<vmem>>, vector<1x448xf32>,
    %c2_158 = arith.constant 2 : index
    %c0_159 = arith.constant 0 : index
    %184 = vector.load %arg14[%c2_158, %c0_159] : memref<14x448xf32, #tpu.memory_space<vmem>>, vector<1x448xf32>
    %c3_160 = arith.constant 3 : index
    %c0_161 = arith.constant 0 : index
    %185 = vector.load %arg14[%c3_160, %c0_161] : memref<14x448xf32, #tpu.memory_space<vmem>>, vector<1x448xf32>
    %186 = arith.maximumf %184, %185 : vector<1x448xf32>
    %c1_162 = arith.constant 1 : index
    %c0_163 = arith.constant 0 : index
    %187 = vector.load %arg15[%c1_162, %c0_163] : memref<7x448xf32, #tpu.memory_space<vmem>>, vector<1x448xf32>
    tpu.vector_store %arg15[%c1_162, %c0_163], %186 {strides = array<i32>} : memref<7x448xf32, #tpu.memory_space<vmem>>, vector<1x448xf32>,
    %c4_164 = arith.constant 4 : index
    %c0_165 = arith.constant 0 : index
    %188 = vector.load %arg14[%c4_164, %c0_165] : memref<14x448xf32, #tpu.memory_space<vmem>>, vector<1x448xf32>
    %c5_166 = arith.constant 5 : index
    %c0_167 = arith.constant 0 : index
    %189 = vector.load %arg14[%c5_166, %c0_167] : memref<14x448xf32, #tpu.memory_space<vmem>>, vector<1x448xf32>
    %190 = arith.maximumf %188, %189 : vector<1x448xf32>
    %c2_168 = arith.constant 2 : index
    %c0_169 = arith.constant 0 : index
    %191 = vector.load %arg15[%c2_168, %c0_169] : memref<7x448xf32, #tpu.memory_space<vmem>>, vector<1x448xf32>
    tpu.vector_store %arg15[%c2_168, %c0_169], %190 {strides = array<i32>} : memref<7x448xf32, #tpu.memory_space<vmem>>, vector<1x448xf32>,
    %c6_170 = arith.constant 6 : index
    %c0_171 = arith.constant 0 : index
    %192 = vector.load %arg14[%c6_170, %c0_171] : memref<14x448xf32, #tpu.memory_space<vmem>>, vector<1x448xf32>
    %c7_172 = arith.constant 7 : index
    %c0_173 = arith.constant 0 : index
    %193 = vector.load %arg14[%c7_172, %c0_173] : memref<14x448xf32, #tpu.memory_space<vmem>>, vector<1x448xf32>
    %194 = arith.maximumf %192, %193 : vector<1x448xf32>
    %c3_174 = arith.constant 3 : index
    %c0_175 = arith.constant 0 : index
    %195 = vector.load %arg15[%c3_174, %c0_175] : memref<7x448xf32, #tpu.memory_space<vmem>>, vector<1x448xf32>
    tpu.vector_store %arg15[%c3_174, %c0_175], %194 {strides = array<i32>} : memref<7x448xf32, #tpu.memory_space<vmem>>, vector<1x448xf32>,
    %c8_176 = arith.constant 8 : index
    %c0_177 = arith.constant 0 : index
    %196 = vector.load %arg14[%c8_176, %c0_177] : memref<14x448xf32, #tpu.memory_space<vmem>>, vector<1x448xf32>
    %c9_178 = arith.constant 9 : index
    %c0_179 = arith.constant 0 : index
    %197 = vector.load %arg14[%c9_178, %c0_179] : memref<14x448xf32, #tpu.memory_space<vmem>>, vector<1x448xf32>
    %198 = arith.maximumf %196, %197 : vector<1x448xf32>
    %c4_180 = arith.constant 4 : index
    %c0_181 = arith.constant 0 : index
    %199 = vector.load %arg15[%c4_180, %c0_181] : memref<7x448xf32, #tpu.memory_space<vmem>>, vector<1x448xf32>
    tpu.vector_store %arg15[%c4_180, %c0_181], %198 {strides = array<i32>} : memref<7x448xf32, #tpu.memory_space<vmem>>, vector<1x448xf32>,
    %c10_182 = arith.constant 10 : index
    %c0_183 = arith.constant 0 : index
    %200 = vector.load %arg14[%c10_182, %c0_183] : memref<14x448xf32, #tpu.memory_space<vmem>>, vector<1x448xf32>
    %c11_184 = arith.constant 11 : index
    %c0_185 = arith.constant 0 : index
    %201 = vector.load %arg14[%c11_184, %c0_185] : memref<14x448xf32, #tpu.memory_space<vmem>>, vector<1x448xf32>
    %202 = arith.maximumf %200, %201 : vector<1x448xf32>
    %c5_186 = arith.constant 5 : index
    %c0_187 = arith.constant 0 : index
    %203 = vector.load %arg15[%c5_186, %c0_187] : memref<7x448xf32, #tpu.memory_space<vmem>>, vector<1x448xf32>
    tpu.vector_store %arg15[%c5_186, %c0_187], %202 {strides = array<i32>} : memref<7x448xf32, #tpu.memory_space<vmem>>, vector<1x448xf32>,
    %c12_188 = arith.constant 12 : index
    %c0_189 = arith.constant 0 : index
    %204 = vector.load %arg14[%c12_188, %c0_189] : memref<14x448xf32, #tpu.memory_space<vmem>>, vector<1x448xf32>
    %c13_190 = arith.constant 13 : index
    %c0_191 = arith.constant 0 : index
    %205 = vector.load %arg14[%c13_190, %c0_191] : memref<14x448xf32, #tpu.memory_space<vmem>>, vector<1x448xf32>
    %206 = arith.maximumf %204, %205 : vector<1x448xf32>
    %c6_192 = arith.constant 6 : index
    %c0_193 = arith.constant 0 : index
    %207 = vector.load %arg15[%c6_192, %c0_193] : memref<7x448xf32, #tpu.memory_space<vmem>>, vector<1x448xf32>
    tpu.vector_store %arg15[%c6_192, %c0_193], %206 {strides = array<i32>} : memref<7x448xf32, #tpu.memory_space<vmem>>, vector<1x448xf32>,
    %c0_194 = arith.constant 0 : index
    %c0_195 = arith.constant 0 : index
    %208 = vector.load %arg15[%c0_194, %c0_195] : memref<7x448xf32, #tpu.memory_space<vmem>>, vector<7x448xf32>
    %209 = vector.extract_strided_slice %208 {offsets = [0, 0], sizes = [7, 32], strides = [1, 1]} : vector<7x448xf32> to vector<7x32xf32>
    %210 = vector.extract_strided_slice %208 {offsets = [0, 32], sizes = [7, 32], strides = [1, 1]} : vector<7x448xf32> to vector<7x32xf32>
    %211 = arith.maximumf %209, %210 : vector<7x32xf32>
    %c0_196 = arith.constant 0 : index
    %c0_197 = arith.constant 0 : index
    %c0_198 = arith.constant 0 : index
    %212 = vector.load %arg8[%c0_196, %c0_197, %c0_198] : memref<1x7x224xf32, #tpu.memory_space<vmem>>, vector<1x7x32xf32>
    %213 = vector.shape_cast %212 : vector<1x7x32xf32> to vector<7x32xf32>
    %214 = vector.shape_cast %211 : vector<7x32xf32> to vector<1x7x32xf32>
    tpu.vector_store %arg8[%c0_196, %c0_197, %c0_198], %214 {strides = array<i32>} : memref<1x7x224xf32, #tpu.memory_space<vmem>>, vector<1x7x32xf32>,
    %215 = vector.extract_strided_slice %208 {offsets = [0, 64], sizes = [7, 32], strides = [1, 1]} : vector<7x448xf32> to vector<7x32xf32>
    %216 = vector.extract_strided_slice %208 {offsets = [0, 96], sizes = [7, 32], strides = [1, 1]} : vector<7x448xf32> to vector<7x32xf32>
    %217 = arith.maximumf %215, %216 : vector<7x32xf32>
    %c0_199 = arith.constant 0 : index
    %c0_200 = arith.constant 0 : index
    %c32_201 = arith.constant 32 : index
    %218 = vector.load %arg8[%c0_199, %c0_200, %c32_201] : memref<1x7x224xf32, #tpu.memory_space<vmem>>, vector<1x7x32xf32>
    %219 = vector.shape_cast %218 : vector<1x7x32xf32> to vector<7x32xf32>
    %220 = vector.shape_cast %217 : vector<7x32xf32> to vector<1x7x32xf32>
    tpu.vector_store %arg8[%c0_199, %c0_200, %c32_201], %220 {strides = array<i32>} : memref<1x7x224xf32, #tpu.memory_space<vmem>>, vector<1x7x32xf32>,
    %221 = vector.extract_strided_slice %208 {offsets = [0, 128], sizes = [7, 32], strides = [1, 1]} : vector<7x448xf32> to vector<7x32xf32>
    %222 = vector.extract_strided_slice %208 {offsets = [0, 160], sizes = [7, 32], strides = [1, 1]} : vector<7x448xf32> to vector<7x32xf32>
    %223 = arith.maximumf %221, %222 : vector<7x32xf32>
    %c0_202 = arith.constant 0 : index
    %c0_203 = arith.constant 0 : index
    %c64_204 = arith.constant 64 : index
    %224 = vector.load %arg8[%c0_202, %c0_203, %c64_204] : memref<1x7x224xf32, #tpu.memory_space<vmem>>, vector<1x7x32xf32>
    %225 = vector.shape_cast %224 : vector<1x7x32xf32> to vector<7x32xf32>
    %226 = vector.shape_cast %223 : vector<7x32xf32> to vector<1x7x32xf32>
    tpu.vector_store %arg8[%c0_202, %c0_203, %c64_204], %226 {strides = array<i32>} : memref<1x7x224xf32, #tpu.memory_space<vmem>>, vector<1x7x32xf32>,
    %227 = vector.extract_strided_slice %208 {offsets = [0, 192], sizes = [7, 32], strides = [1, 1]} : vector<7x448xf32> to vector<7x32xf32>
    %228 = vector.extract_strided_slice %208 {offsets = [0, 224], sizes = [7, 32], strides = [1, 1]} : vector<7x448xf32> to vector<7x32xf32>
    %229 = arith.maximumf %227, %228 : vector<7x32xf32>
    %c0_205 = arith.constant 0 : index
    %c0_206 = arith.constant 0 : index
    %c96_207 = arith.constant 96 : index
    %230 = vector.load %arg8[%c0_205, %c0_206, %c96_207] : memref<1x7x224xf32, #tpu.memory_space<vmem>>, vector<1x7x32xf32>
    %231 = vector.shape_cast %230 : vector<1x7x32xf32> to vector<7x32xf32>
    %232 = vector.shape_cast %229 : vector<7x32xf32> to vector<1x7x32xf32>
    tpu.vector_store %arg8[%c0_205, %c0_206, %c96_207], %232 {strides = array<i32>} : memref<1x7x224xf32, #tpu.memory_space<vmem>>, vector<1x7x32xf32>,
    %233 = vector.extract_strided_slice %208 {offsets = [0, 256], sizes = [7, 32], strides = [1, 1]} : vector<7x448xf32> to vector<7x32xf32>
    %234 = vector.extract_strided_slice %208 {offsets = [0, 288], sizes = [7, 32], strides = [1, 1]} : vector<7x448xf32> to vector<7x32xf32>
    %235 = arith.maximumf %233, %234 : vector<7x32xf32>
    %c0_208 = arith.constant 0 : index
    %c0_209 = arith.constant 0 : index
    %c128_210 = arith.constant 128 : index
    %236 = vector.load %arg8[%c0_208, %c0_209, %c128_210] : memref<1x7x224xf32, #tpu.memory_space<vmem>>, vector<1x7x32xf32>
    %237 = vector.shape_cast %236 : vector<1x7x32xf32> to vector<7x32xf32>
    %238 = vector.shape_cast %235 : vector<7x32xf32> to vector<1x7x32xf32>
    tpu.vector_store %arg8[%c0_208, %c0_209, %c128_210], %238 {strides = array<i32>} : memref<1x7x224xf32, #tpu.memory_space<vmem>>, vector<1x7x32xf32>,
    %239 = vector.extract_strided_slice %208 {offsets = [0, 320], sizes = [7, 32], strides = [1, 1]} : vector<7x448xf32> to vector<7x32xf32>
    %240 = vector.extract_strided_slice %208 {offsets = [0, 352], sizes = [7, 32], strides = [1, 1]} : vector<7x448xf32> to vector<7x32xf32>
    %241 = arith.maximumf %239, %240 : vector<7x32xf32>
    %c0_211 = arith.constant 0 : index
    %c0_212 = arith.constant 0 : index
    %c160_213 = arith.constant 160 : index
    %242 = vector.load %arg8[%c0_211, %c0_212, %c160_213] : memref<1x7x224xf32, #tpu.memory_space<vmem>>, vector<1x7x32xf32>
    %243 = vector.shape_cast %242 : vector<1x7x32xf32> to vector<7x32xf32>
    %244 = vector.shape_cast %241 : vector<7x32xf32> to vector<1x7x32xf32>
    tpu.vector_store %arg8[%c0_211, %c0_212, %c160_213], %244 {strides = array<i32>} : memref<1x7x224xf32, #tpu.memory_space<vmem>>, vector<1x7x32xf32>,
    %245 = vector.extract_strided_slice %208 {offsets = [0, 384], sizes = [7, 32], strides = [1, 1]} : vector<7x448xf32> to vector<7x32xf32>
    %246 = vector.extract_strided_slice %208 {offsets = [0, 416], sizes = [7, 32], strides = [1, 1]} : vector<7x448xf32> to vector<7x32xf32>
    %247 = arith.maximumf %245, %246 : vector<7x32xf32>
    %c0_214 = arith.constant 0 : index
    %c0_215 = arith.constant 0 : index
    %c192_216 = arith.constant 192 : index
    %248 = vector.load %arg8[%c0_214, %c0_215, %c192_216] : memref<1x7x224xf32, #tpu.memory_space<vmem>>, vector<1x7x32xf32>
    %249 = vector.shape_cast %248 : vector<1x7x32xf32> to vector<7x32xf32>
    %250 = vector.shape_cast %247 : vector<7x32xf32> to vector<1x7x32xf32>
    tpu.vector_store %arg8[%c0_214, %c0_215, %c192_216], %250 {strides = array<i32>} : memref<1x7x224xf32, #tpu.memory_space<vmem>>, vector<1x7x32xf32>,
    %c0_217 = arith.constant 0 : index
    %c0_218 = arith.constant 0 : index
    %c0_219 = arith.constant 0 : index
    %251 = vector.load %arg8[%c0_217, %c0_218, %c0_219] : memref<1x7x224xf32, #tpu.memory_space<vmem>>, vector<1x1x224xf32>
    %252 = vector.shape_cast %251 : vector<1x1x224xf32> to vector<1x224xf32>
    %c0_220 = arith.constant 0 : index
    %c0_221 = arith.constant 0 : index
    %c0_222 = arith.constant 0 : index
    %253 = vector.load %arg6[%c0_220, %c0_221, %c0_222] : memref<7x224x128xf32, #tpu.memory_space<vmem>>, vector<1x224x128xf32>
    %254 = vector.shape_cast %253 : vector<1x224x128xf32> to vector<224x128xf32>
    %cst_223 = arith.constant dense<0.000000e+00> : vector<1x128xf32>
    %255 = tpu.matmul %252, %254, %cst_223 {dimension_numbers = #tpu.dot_dimension_numbers<[1], [0], [0], [1], [0, 0, 1, 1], [], []>} : vector<1x224xf32>, vector<224x128xf32>, vector<1x128xf32> -> vector<1x128xf32>
    %c0_224 = arith.constant 0 : index
    %c1_225 = arith.constant 1 : index
    %c0_226 = arith.constant 0 : index
    %256 = vector.load %arg8[%c0_224, %c1_225, %c0_226] : memref<1x7x224xf32, #tpu.memory_space<vmem>>, vector<1x1x224xf32>
    %257 = vector.shape_cast %256 : vector<1x1x224xf32> to vector<1x224xf32>
    %c1_227 = arith.constant 1 : index
    %c0_228 = arith.constant 0 : index
    %c0_229 = arith.constant 0 : index
    %258 = vector.load %arg6[%c1_227, %c0_228, %c0_229] : memref<7x224x128xf32, #tpu.memory_space<vmem>>, vector<1x224x128xf32>
    %259 = vector.shape_cast %258 : vector<1x224x128xf32> to vector<224x128xf32>
    %cst_230 = arith.constant dense<0.000000e+00> : vector<1x128xf32>
    %260 = tpu.matmul %257, %259, %cst_230 {dimension_numbers = #tpu.dot_dimension_numbers<[1], [0], [0], [1], [0, 0, 1, 1], [], []>} : vector<1x224xf32>, vector<224x128xf32>, vector<1x128xf32> -> vector<1x128xf32>
    %261 = arith.addf %255, %260 : vector<1x128xf32>
    %c0_231 = arith.constant 0 : index
    %c2_232 = arith.constant 2 : index
    %c0_233 = arith.constant 0 : index
    %262 = vector.load %arg8[%c0_231, %c2_232, %c0_233] : memref<1x7x224xf32, #tpu.memory_space<vmem>>, vector<1x1x224xf32>
    %263 = vector.shape_cast %262 : vector<1x1x224xf32> to vector<1x224xf32>
    %c2_234 = arith.constant 2 : index
    %c0_235 = arith.constant 0 : index
    %c0_236 = arith.constant 0 : index
    %264 = vector.load %arg6[%c2_234, %c0_235, %c0_236] : memref<7x224x128xf32, #tpu.memory_space<vmem>>, vector<1x224x128xf32>
    %265 = vector.shape_cast %264 : vector<1x224x128xf32> to vector<224x128xf32>
    %cst_237 = arith.constant dense<0.000000e+00> : vector<1x128xf32>
    %266 = tpu.matmul %263, %265, %cst_237 {dimension_numbers = #tpu.dot_dimension_numbers<[1], [0], [0], [1], [0, 0, 1, 1], [], []>} : vector<1x224xf32>, vector<224x128xf32>, vector<1x128xf32> -> vector<1x128xf32>
    %267 = arith.addf %261, %266 : vector<1x128xf32>
    %c0_238 = arith.constant 0 : index
    %c3_239 = arith.constant 3 : index
    %c0_240 = arith.constant 0 : index
    %268 = vector.load %arg8[%c0_238, %c3_239, %c0_240] : memref<1x7x224xf32, #tpu.memory_space<vmem>>, vector<1x1x224xf32>
    %269 = vector.shape_cast %268 : vector<1x1x224xf32> to vector<1x224xf32>
    %c3_241 = arith.constant 3 : index
    %c0_242 = arith.constant 0 : index
    %c0_243 = arith.constant 0 : index
    %270 = vector.load %arg6[%c3_241, %c0_242, %c0_243] : memref<7x224x128xf32, #tpu.memory_space<vmem>>, vector<1x224x128xf32>
    %271 = vector.shape_cast %270 : vector<1x224x128xf32> to vector<224x128xf32>
    %cst_244 = arith.constant dense<0.000000e+00> : vector<1x128xf32>
    %272 = tpu.matmul %269, %271, %cst_244 {dimension_numbers = #tpu.dot_dimension_numbers<[1], [0], [0], [1], [0, 0, 1, 1], [], []>} : vector<1x224xf32>, vector<224x128xf32>, vector<1x128xf32> -> vector<1x128xf32>
    %273 = arith.addf %267, %272 : vector<1x128xf32>
    %c0_245 = arith.constant 0 : index
    %c4_246 = arith.constant 4 : index
    %c0_247 = arith.constant 0 : index
    %274 = vector.load %arg8[%c0_245, %c4_246, %c0_247] : memref<1x7x224xf32, #tpu.memory_space<vmem>>, vector<1x1x224xf32>
    %275 = vector.shape_cast %274 : vector<1x1x224xf32> to vector<1x224xf32>
    %c4_248 = arith.constant 4 : index
    %c0_249 = arith.constant 0 : index
    %c0_250 = arith.constant 0 : index
    %276 = vector.load %arg6[%c4_248, %c0_249, %c0_250] : memref<7x224x128xf32, #tpu.memory_space<vmem>>, vector<1x224x128xf32>
    %277 = vector.shape_cast %276 : vector<1x224x128xf32> to vector<224x128xf32>
    %cst_251 = arith.constant dense<0.000000e+00> : vector<1x128xf32>
    %278 = tpu.matmul %275, %277, %cst_251 {dimension_numbers = #tpu.dot_dimension_numbers<[1], [0], [0], [1], [0, 0, 1, 1], [], []>} : vector<1x224xf32>, vector<224x128xf32>, vector<1x128xf32> -> vector<1x128xf32>
    %279 = arith.addf %273, %278 : vector<1x128xf32>
    %c0_252 = arith.constant 0 : index
    %c5_253 = arith.constant 5 : index
    %c0_254 = arith.constant 0 : index
    %280 = vector.load %arg8[%c0_252, %c5_253, %c0_254] : memref<1x7x224xf32, #tpu.memory_space<vmem>>, vector<1x1x224xf32>
    %281 = vector.shape_cast %280 : vector<1x1x224xf32> to vector<1x224xf32>
    %c5_255 = arith.constant 5 : index
    %c0_256 = arith.constant 0 : index
    %c0_257 = arith.constant 0 : index
    %282 = vector.load %arg6[%c5_255, %c0_256, %c0_257] : memref<7x224x128xf32, #tpu.memory_space<vmem>>, vector<1x224x128xf32>
    %283 = vector.shape_cast %282 : vector<1x224x128xf32> to vector<224x128xf32>
    %cst_258 = arith.constant dense<0.000000e+00> : vector<1x128xf32>
    %284 = tpu.matmul %281, %283, %cst_258 {dimension_numbers = #tpu.dot_dimension_numbers<[1], [0], [0], [1], [0, 0, 1, 1], [], []>} : vector<1x224xf32>, vector<224x128xf32>, vector<1x128xf32> -> vector<1x128xf32>
    %285 = arith.addf %279, %284 : vector<1x128xf32>
    %c0_259 = arith.constant 0 : index
    %c6_260 = arith.constant 6 : index
    %c0_261 = arith.constant 0 : index
    %286 = vector.load %arg8[%c0_259, %c6_260, %c0_261] : memref<1x7x224xf32, #tpu.memory_space<vmem>>, vector<1x1x224xf32>
    %287 = vector.shape_cast %286 : vector<1x1x224xf32> to vector<1x224xf32>
    %c6_262 = arith.constant 6 : index
    %c0_263 = arith.constant 0 : index
    %c0_264 = arith.constant 0 : index
    %288 = vector.load %arg6[%c6_262, %c0_263, %c0_264] : memref<7x224x128xf32, #tpu.memory_space<vmem>>, vector<1x224x128xf32>
    %289 = vector.shape_cast %288 : vector<1x224x128xf32> to vector<224x128xf32>
    %cst_265 = arith.constant dense<0.000000e+00> : vector<1x128xf32>
    %290 = tpu.matmul %287, %289, %cst_265 {dimension_numbers = #tpu.dot_dimension_numbers<[1], [0], [0], [1], [0, 0, 1, 1], [], []>} : vector<1x224xf32>, vector<224x128xf32>, vector<1x128xf32> -> vector<1x128xf32>
    %291 = arith.addf %285, %290 : vector<1x128xf32>
    %c0_266 = arith.constant 0 : index
    %c0_267 = arith.constant 0 : index
    %292 = vector.load %arg7[%c0_266, %c0_267] : memref<1x128xf32, #tpu.memory_space<vmem>>, vector<1x128xf32>
    %293 = arith.addf %291, %292 : vector<1x128xf32>
    %c0_268 = arith.constant 0 : index
    %c0_269 = arith.constant 0 : index
    %c0_270 = arith.constant 0 : index
    %294 = vector.load %arg9[%c0_268, %c0_269, %c0_270] : memref<1x1x128xf32, #tpu.memory_space<vmem>>, vector<1x1x128xf32>
    %295 = vector.shape_cast %294 : vector<1x1x128xf32> to vector<1x128xf32>
    %296 = vector.shape_cast %293 : vector<1x128xf32> to vector<1x1x128xf32>
    tpu.vector_store %arg9[%c0_268, %c0_269, %c0_270], %296 {strides = array<i32>} : memref<1x1x128xf32, #tpu.memory_space<vmem>>, vector<1x1x128xf32>,
    return
  }
  func.func @transform_0(%arg0: i32) -> (i32, i32, i32) {
    %c0_i32 = arith.constant 0 : i32
    %c0_i32_0 = arith.constant 0 : i32
    %c0_i32_1 = arith.constant 0 : i32
    return %arg0, %c0_i32, %c0_i32_0 : i32, i32, i32
  }
  func.func @transform_1(%arg0: i32) -> (i32, i32, i32) {
    %c0_i32 = arith.constant 0 : i32
    %c0_i32_0 = arith.constant 0 : i32
    %c0_i32_1 = arith.constant 0 : i32
    %c0_i32_2 = arith.constant 0 : i32
    return %c0_i32, %c0_i32_0, %c0_i32_1 : i32, i32, i32
  }
  func.func @transform_2(%arg0: i32) -> (i32, i32) {
    %c0_i32 = arith.constant 0 : i32
    %c0_i32_0 = arith.constant 0 : i32
    %c0_i32_1 = arith.constant 0 : i32
    return %c0_i32, %c0_i32_0 : i32, i32
  }
  func.func @transform_3(%arg0: i32) -> (i32, i32, i32) {
    %c0_i32 = arith.constant 0 : i32
    %c0_i32_0 = arith.constant 0 : i32
    %c0_i32_1 = arith.constant 0 : i32
    %c0_i32_2 = arith.constant 0 : i32
    return %c0_i32, %c0_i32_0, %c0_i32_1 : i32, i32, i32
  }
  func.func @transform_4(%arg0: i32) -> (i32, i32) {
    %c0_i32 = arith.constant 0 : i32
    %c0_i32_0 = arith.constant 0 : i32
    %c0_i32_1 = arith.constant 0 : i32
    return %c0_i32, %c0_i32_0 : i32, i32
  }
  func.func @transform_5(%arg0: i32) -> (i32, i32, i32) {
    %c0_i32 = arith.constant 0 : i32
    %c0_i32_0 = arith.constant 0 : i32
    %c0_i32_1 = arith.constant 0 : i32
    %c0_i32_2 = arith.constant 0 : i32
    return %c0_i32, %c0_i32_0, %c0_i32_1 : i32, i32, i32
  }
  func.func @transform_6(%arg0: i32) -> (i32, i32) {
    %c0_i32 = arith.constant 0 : i32
    %c0_i32_0 = arith.constant 0 : i32
    %c0_i32_1 = arith.constant 0 : i32
    return %c0_i32, %c0_i32_0 : i32, i32
  }
  func.func @transform_7(%arg0: i32) -> (i32, i32, i32) {
    %c0_i32 = arith.constant 0 : i32
    %c0_i32_0 = arith.constant 0 : i32
    %c0_i32_1 = arith.constant 0 : i32
    return %arg0, %c0_i32, %c0_i32_0 : i32, i32, i32
  }
  func.func @transform_8(%arg0: i32) -> (i32, i32, i32) {
    %c0_i32 = arith.constant 0 : i32
    %c0_i32_0 = arith.constant 0 : i32
    %c0_i32_1 = arith.constant 0 : i32
    return %arg0, %c0_i32, %c0_i32_0 : i32, i32, i32
  }
}

</mosaic_0001>

<bundles_post_ra>
// kernel: cnn_forward.1
= control target key start
LH: loop header
LB: loop body
LE: loop exit
PB: predicated region body
PF: predicated region fallthrough
CT: control target
= control target key end

     0   :  { %s8106_s0 = inlined_call_operand.vmem [shape: f32[2,28,28], index: 0, kind: input, shape index: {}]   ;;  %s8107_s1 = inlined_call_operand.hbm [shape: f32[5,32,448], index: 1, kind: input, shape index: {}]   ;;  %s8108_s2 = inlined_call_operand.hbm [shape: f32[1,448], index: 2, kind: input, shape index: {}]   ;;  %s8109_s3 = inlined_call_operand.hbm [shape: f32[5,288,448], index: 3, kind: input, shape index: {}]   ;;  %s8110_s4 = inlined_call_operand.hbm [shape: f32[1,448], index: 4, kind: input, shape index: {}]   ;;  %s8111_s5 = inlined_call_operand.hbm [shape: f32[7,224,128], index: 5, kind: input, shape index: {}]   ;;  %s8112_s6 = inlined_call_operand.hbm [shape: f32[1,128], index: 6, kind: input, shape index: {}]   ;;  %s8113_s7 = inlined_call_operand.vmem [shape: f32[2,7,224], index: 7, kind: output, shape index: {0}]   ;;  %s8114_s8 = inlined_call_operand.hbm [shape: f32[2,1,128], index: 8, kind: output, shape index: {1}]  }
   0x1   :  { %8122 = sst [smem:[#allocation29_spill]] %s8108_s2 }
   0x2   :  { %8123 = sst [smem:[#allocation30_spill]] %s8110_s4 }
   0x3   :  { %14 = vsyncpa [#allocation9], 0 }
   0x4   :  { %15 = vsyncpa [#allocation12], 0 }
   0x5   :  { %16 = vsyncpa [#allocation15], 0 }
   0x6   :  { %17 = vsyncpa [#allocation18], 0 }
   0x7   :  { %18 = vsyncpa [#allocation10], 0 }
   0x8   :  { %20 = vsyncpa [#allocation10 + $0x1], 0  ;;  %s7226_s27 = smov 0   ;;  %s7228_s28 = smov 0  }
   0x9   :  { %s7230_s29 = smov 0   ;;  %s7232_s30 = smov 0  }
   0xa LB: > { %8124 = sst [smem:[#allocation25_spill]] %s7154_s29  ;;  %s7247_s9 = sadd.s32 4294967295, %s7158_s30   ;;  %s7158_s30 = sphi %s7232_s30, %s8149_s30   ;;  %s7154_s29 = sphi %s7230_s29, %s8151_s29   ;;  %s7150_s28 = sphi %s7228_s28, %s8153_s28   ;;  %s7146_s27 = sphi %s7226_s27, %s8152_s27  }
   0xb   : > { %s5468_s10 = sadd.s32 4294967294, %s7158_s30   ;;  %s7251_s11 = sadd.s32 1, %s7158_s30  }
   0xc   : > { %8125 = sst [smem:[#allocation26_spill]] %s7251_s11  ;;  %s211_s12 = sadd.s32 1, %s7154_s29 }
   0xd   : > { %s208_s13 = ssub.s32 %s7158_s30, %s7251_s11  ;;  %p221_p0 = scmp.ne.s32.totalorder %s7154_s29, %s7150_s28 }
   0xe   : > { %p209_p1 = scmp.eq.s32.totalorder %s208_s13, 0  ;;  %p222_p2 = scmp.eq.s32.totalorder %s7247_s9, 1 }
   0xf   : > { %p227_p3 = scmp.ne.s32.totalorder %s7150_s28, %s7146_s27  ;;  %p228_p4 = scmp.eq.s32.totalorder %s5468_s10, 1 }
  0x10   : > { %s7262_s14 = scalar_select %p209_p1, %s7154_s29, %s211_s12  }
  0x11   : > { %p7264_p5 = por %p222_p2, %p221_p0  ;;  %p7268_p6 = por %p228_p4, %p227_p3 }
  0x12   : > { %8126 = sst [smem:[#allocation27_spill]] %s7262_s14  ;;  %p5469_p7 = scmp.ge.s32.totalorder %s7158_s30, 1 }
  0x13   : > { %s8127_s15 = scalar_select %p7264_p5, 1, 0 }
  0x14   : > { %s8128_s16 = scalar_select %p7268_p6, 1, 0 }
  0x15   : > { %p235_p8 = scmp.lt.s32.totalorder %s7158_s30, 3  ;;  %p8115_p9 = scmp.eq.s32.totalorder %s7247_s9, 0 }
  0x16   : > { %8129 = sst [smem:[#allocation28_spill]] %s8128_s16  ;;  %s7160_s18 = smov [#allocation11]  }
  0x17   : > { %p7275_p10 = pnand %p5469_p7, %p235_p8  ;;  %s261_s19 = sshll.u32 %s7160_s18, 4  ;;  %s262_s19 = int_to_ptr.vmem [resolvable:$true] %s261_s19 }
  0x18   : > { %s7161_s20 = smov [#allocation14]   ;;  %s7162_s23 = smov [#allocation8]  }
  0x19   : > { %s8130_s17 = scalar_select %p7275_p10, 1, 0 }
  0x1a   : > { %p6822_p11 = pneg %p7275_p10  ;;  %s285_s21 = sshll.u32 %s7161_s20, 4  ;;  %s7287_s21 = int_to_ptr.vmem [resolvable:$true] %s285_s21 }
  0x1b   : > { %s247_s24 = sshll.u32 %s7162_s23, 4  ;;  %s8132_s2 = sld [smem:[#allocation29_spill]]  ;;  %s7289_s24 = int_to_ptr.vmem [resolvable:$true] %s247_s24 }
  0x1c   : > { %p7283_p12 = pnand %p8115_p9, %p6822_p11 }
  0x1e   : > { %p7299_p0 = pneg %p7283_p12 }
  0x21   : > { %s6912_s10 = scalar_lea.hbm %s8132_s2, 64 }
  0x22   : > { %p6913_p13 = scmp.ne.s32.totalorder %s8132_s2, %s6912_s10  ;;  %p6919_p3 = scmp.lt.u32.totalorder %s6912_s10, %s8132_s2 }
  0x24   : > { %p6915_p1 = pnand %p7299_p0, %p6913_p13 }
  0x26   : > { %p6916_p2 = pneg %p6915_p1 }
  0x28   : > { %p6921_p4 = pnand %p6919_p3, %p6916_p2 }
  0x2a   : > { %6924 = shalt.err (!%p6921_p4)
}
  0x2b   : > { %s6925_s25 = scalar_lea.vmem %s262_s19, 64  ;;  %p6933_p9 = scmp.lt.s32.totalorder %s262_s19, %s262_s19 }
  0x2c   : > { %p6926_p7 = scmp.ne.s32.totalorder %s262_s19, %s6925_s25  ;;  %p6934_p6 = scmp.lt.s32.totalorder %s6925_s25, %s6925_s25 }
  0x2e   : > { %p6928_p8 = pnand %p6926_p7, %p7299_p0  ;;  %p6935_p5 = por %p6934_p6, %p6933_p9 }
  0x30   : > { %p6929_p11 = pneg %p6928_p8 }
  0x32   : > { %p6936_p10 = pnand %p6935_p5, %p6929_p11 }
  0x34   : > { %6939 = shalt.err (!%p6936_p10)
}
  0x35   : > { %6828 = dma.hbm_to_vmem [thread:$0]  (!%p7283_p12), %s8132_s2, 64, %s262_s19, [#allocation12]  }
  0x36   : > { %s8134_s4 = sld [smem:[#allocation30_spill]] }
  0x3c   : > { %s6940_s20 = scalar_lea.hbm %s8134_s4, 64 }
  0x3d   : > { %p6941_p13 = scmp.ne.s32.totalorder %s8134_s4, %s6940_s20  ;;  %p6947_p5 = scmp.lt.u32.totalorder %s6940_s20, %s8134_s4 }
  0x3f   : > { %p6943_p1 = pnand %p6941_p13, %p7299_p0 }
  0x41   : > { %p6944_p6 = pneg %p6943_p1 }
  0x43   : > { %p6949_p9 = pnand %p6947_p5, %p6944_p6 }
  0x45   : > { %6952 = shalt.err (!%p6949_p9)
}
  0x46   : > { %s6953_s19 = scalar_lea.vmem %s7287_s21, 64  ;;  %p6961_p4 = scmp.lt.s32.totalorder %s7287_s21, %s7287_s21 }
  0x47   : > { %p6954_p10 = scmp.ne.s32.totalorder %s7287_s21, %s6953_s19  ;;  %p6962_p7 = scmp.lt.s32.totalorder %s6953_s19, %s6953_s19 }
  0x49   : > { %p6956_p2 = pnand %p6954_p10, %p7299_p0  ;;  %p6963_p8 = por %p6962_p7, %p6961_p4 }
  0x4b   : > { %p6957_p3 = pneg %p6956_p2 }
  0x4d   : > { %p6964_p11 = pnand %p6963_p8, %p6957_p3 }
  0x4f   : > { %6967 = shalt.err (!%p6964_p11)
}
  0x50   : > { %6834 = dma.hbm_to_vmem [thread:$0]  (!%p7283_p12), %s8134_s4, 64, %s7287_s21, [#allocation15]  }
  0x51   : > { %s6968_s10 = scalar_lea.hbm %s8107_s1, 10240 }
  0x52   : > { %p6969_p13 = scmp.ne.s32.totalorder %s8107_s1, %s6968_s10  ;;  %p6975_p5 = scmp.lt.u32.totalorder %s6968_s10, %s8107_s1 }
  0x54   : > { %p6971_p1 = pnand %p6969_p13, %p7299_p0 }
  0x56   : > { %p6972_p6 = pneg %p6971_p1 }
  0x58   : > { %p6977_p9 = pnand %p6975_p5, %p6972_p6 }
  0x5a   : > { %6980 = shalt.err (!%p6977_p9)
}
  0x5b   : > { %s6981_s21 = scalar_lea.vmem %s7289_s24, 10240  ;;  %p6989_p4 = scmp.lt.s32.totalorder %s7289_s24, %s7289_s24 }
  0x5c   : > { %p6982_p10 = scmp.ne.s32.totalorder %s7289_s24, %s6981_s21  ;;  %p6990_p7 = scmp.lt.s32.totalorder %s6981_s21, %s6981_s21 }
  0x5e   : > { %p6984_p2 = pnand %p6982_p10, %p7299_p0  ;;  %p6991_p8 = por %p6990_p7, %p6989_p4 }
  0x60   : > { %p6985_p3 = pneg %p6984_p2 }
  0x62   : > { %p6992_p11 = pnand %p6991_p8, %p6985_p3 }
  0x64   : > { %6995 = shalt.err (!%p6992_p11)
}
  0x65   : > { %s7163_s19 = smov 512   ;;  %s7164_s29 = smov 32  }
  0x66   : > { %6825 = dma.hbm_to_vmem [thread:$0]  (!%p7283_p12), %s8107_s1, 10240, %s7289_s24, [#allocation9], %s7163_s19, %s7163_s19, %s7164_s29  }
  0x67   : > { %s7165_s12 = smov [#allocation13]   ;;  %s7166_s13 = smov [#allocation16]  }
  0x68   : > { %s271_s10 = sshll.u32 %s7165_s12, 4  ;;  %s295_s20 = sshll.u32 %s7166_s13, 4  ;;  %s272_s10 = int_to_ptr.vmem [resolvable:$true] %s271_s10  ;;  %s296_s20 = int_to_ptr.vmem [resolvable:$true] %s295_s20 }
  0x69   : > { %s6996_s21 = scalar_lea.hbm %s8109_s3, 92160 }
  0x6a   : > { %p6997_p13 = scmp.ne.s32.totalorder %s8109_s3, %s6996_s21  ;;  %p7003_p5 = scmp.lt.u32.totalorder %s6996_s21, %s8109_s3 }
  0x6c   : > { %p6999_p1 = pnand %p6997_p13, %p7299_p0 }
  0x6e   : > { %p7000_p6 = pneg %p6999_p1 }
  0x70   : > { %p7005_p9 = pnand %p7003_p5, %p7000_p6 }
  0x72   : > { %7008 = shalt.err (!%p7005_p9)
}
  0x73   : > { %s7009_s24 = scalar_lea.vmem %s272_s10, 92160  ;;  %p7017_p4 = scmp.lt.s32.totalorder %s272_s10, %s272_s10 }
  0x74   : > { %p7010_p10 = scmp.ne.s32.totalorder %s272_s10, %s7009_s24  ;;  %p7018_p7 = scmp.lt.s32.totalorder %s7009_s24, %s7009_s24 }
  0x76   : > { %p7012_p2 = pnand %p7010_p10, %p7299_p0  ;;  %p7019_p8 = por %p7018_p7, %p7017_p4 }
  0x78   : > { %p7013_p3 = pneg %p7012_p2 }
  0x7a   : > { %p7020_p11 = pnand %p7019_p8, %p7013_p3 }
  0x7c   : > { %7023 = shalt.err (!%p7020_p11)
}
  0x7d   : > { %6831 = dma.hbm_to_vmem [thread:$0]  (!%p7283_p12), %s8109_s3, 92160, %s272_s10, [#allocation12], %s7163_s19, %s7163_s19, %s7164_s29  }
  0x7e   : > { %s7024_s14 = scalar_lea.hbm %s8111_s5, 25088 }
  0x7f   : > { %p7025_p13 = scmp.ne.s32.totalorder %s8111_s5, %s7024_s14  ;;  %p7031_p5 = scmp.lt.u32.totalorder %s7024_s14, %s8111_s5 }
  0x81   : > { %p7027_p1 = pnand %p7025_p13, %p7299_p0 }
  0x83   : > { %p7028_p6 = pneg %p7027_p1 }
  0x85   : > { %p7033_p9 = pnand %p7031_p5, %p7028_p6 }
  0x87   : > { %7036 = shalt.err (!%p7033_p9)
}
  0x88   : > { %s7037_s25 = scalar_lea.vmem %s296_s20, 25088  ;;  %p7045_p4 = scmp.lt.s32.totalorder %s296_s20, %s296_s20 }
  0x89   : > { %p7038_p10 = scmp.ne.s32.totalorder %s296_s20, %s7037_s25  ;;  %p7046_p7 = scmp.lt.s32.totalorder %s7037_s25, %s7037_s25 }
  0x8b   : > { %p7040_p2 = pnand %p7038_p10, %p7299_p0  ;;  %p7047_p8 = por %p7046_p7, %p7045_p4 }
  0x8d   : > { %p7041_p3 = pneg %p7040_p2 }
  0x8f   : > { %p7048_p11 = pnand %p7047_p8, %p7041_p3 }
  0x91   : > { %7051 = shalt.err (!%p7048_p11)
}
  0x92   : > { %s7167_s19 = smov 128   ;;  %s7168_s29 = smov 8  }
  0x93   : > { %6837 = dma.hbm_to_vmem [thread:$0]  (!%p7283_p12), %s8111_s5, 25088, %s296_s20, [#allocation15], %s7167_s19, %s7167_s19, %s7168_s29  }
  0x94   : > { %s7169_s24 = smov [#allocation17]   ;;  %s7052_s16 = scalar_lea.hbm %s8112_s6, 16 }
  0x95   : > { %s309_s2 = sshll.u32 %s7169_s24, 4  ;;  %p7053_p13 = scmp.ne.s32.totalorder %s8112_s6, %s7052_s16  ;;  %s310_s2 = int_to_ptr.vmem [resolvable:$true] %s309_s2 }
  0x96   : > { %p7059_p5 = scmp.lt.u32.totalorder %s7052_s16, %s8112_s6 }
  0x97   : > { %p7055_p1 = pnand %p7053_p13, %p7299_p0 }
  0x99   : > { %p7056_p6 = pneg %p7055_p1 }
  0x9b   : > { %p7061_p9 = pnand %p7059_p5, %p7056_p6 }
  0x9d   : > { %7064 = shalt.err (!%p7061_p9)
}
  0x9e   : > { %s7065_s20 = scalar_lea.vmem %s310_s2, 16  ;;  %s7072_s23 = scalar_lea.vmem %s310_s2, 32 }
  0x9f   : > { %p7066_p10 = scmp.ne.s32.totalorder %s310_s2, %s7065_s20  ;;  %p7073_p4 = scmp.lt.s32.totalorder %s310_s2, %s310_s2 }
  0xa0   : > { %p7074_p7 = scmp.lt.s32.totalorder %s7072_s23, %s7065_s20 }
  0xa1   : > { %p7068_p2 = pnand %p7066_p10, %p7299_p0 }
  0xa2   : > { %p7075_p8 = por %p7074_p7, %p7073_p4 }
  0xa3   : > { %p7069_p3 = pneg %p7068_p2 }
  0xa5   : > { %p7076_p11 = pnand %p7075_p8, %p7069_p3 }
  0xa7   : > { %7079 = shalt.err (!%p7076_p11)
}
  0xa8   : > { %6840 = dma.hbm_to_vmem [thread:$0]  (!%p7283_p12), %s8112_s6, 16, %s310_s2, [#allocation18]  }
  0xa9   : > { %p8135_p13 = scmp.ne.s32.totalorder %s8130_s17, 0 }
  0xaa   : > { %p8136_p1 = scmp.eq.s32.totalorder (!%p8135_p13), %s7247_s9, 0 }
  0xab   : > { %330 = sbr.rel (%p8135_p13) target bundleno = 2160 (0x870), region = 48 }
  0xb2   : > { %7125 = dma.done.wait (%p8136_p1), [#allocation9], 10240   ;;  %p8137_p0 = pmov %p8136_p1 }
  0xb4   : > { %7127 = vsyncadd (%p8137_p0), [#allocation9], 4294957056  ;;  %p8138_p6 = pmov %p8137_p0 }
  0xb5   : > { %p8139_p5 = pmov %p8137_p0 }
  0xb6   : > { %7129 = dma.done.wait (%p8138_p6), [#allocation12], 92224  }
  0xb7   : > { %7131 = vsyncadd (%p8139_p5), [#allocation12], 4294875072  ;;  %p8140_p9 = pmov %p8137_p0 }
  0xb8   : > { %p8141_p12 = pmov %p8137_p0 }
  0xb9   : > { %7133 = dma.done.wait (%p8140_p9), [#allocation15], 25152  }
  0xba   : > { %7135 = vsyncadd (%p8141_p12), [#allocation15], 4294942144  ;;  %p8142_p10 = pmov %p8137_p0 }
  0xbb   : > { %p8143_p2 = pmov %p8137_p0 }
  0xbc   : > { %7137 = dma.done.wait (%p8142_p10), [#allocation18], 16  }
  0xbd   : > { %7139 = vsyncadd (%p8143_p2), [#allocation18], 4294967280  ;;  %p388_p3 = scmp.lt.s32.totalorder %s7247_s9, 1  ;;  %vm398_vm0 = vcmask 261120   ;;  %v7170_v0 = vmov 0.0   ;;  %s7171_s21 = smov 2  }
  0xbe   : > { %399 = vst.msk [vmem:[#allocation2] sm:$0xff] %vm398_vm0, %v7170_v0  ;;  %400 = vst.msk [vmem:[#allocation2 + $0x8] sm:$0xff] %vm398_vm0, %v7170_v0  ;;  %546 = vmatprep.mubr.f32.mxu1 %v7170_v0  ;;  %947 = vmatprep.mubr.f32.mxu0 %v7170_v0  ;;  %v455_v5 = vld [vmem:[#allocation8 + $0x88] sm:$0xff]  ;;  %v454_v10 = vld [vmem:[#allocation8 + $0x80] sm:$0xff]  ;;  %vm423_vm1 = vcmask 244752   ;;  %vm427_vm2 = vcmask 240656  }
  0xbf   : > { %401 = vst.msk [vmem:[#allocation2 + $0x10] sm:$0xff] %vm398_vm0, %v7170_v0  ;;  %402 = vst.msk [vmem:[#allocation2 + $0x18] sm:$0xff] %vm398_vm0, %v7170_v0  ;;  %s7457_s17 = scalar_select %p388_p3, %s7247_s9, 1  ;;  %v459_v6 = vld [vmem:[#allocation8 + $0xa8] sm:$0xff]  ;;  %v458_v12 = vld [vmem:[#allocation8 + $0xa0] sm:$0xff]  ;;  %vm1588_vm3 = vcmask 523264  }
  0xc0   : > { %1717 = vst [vmem:[#allocation5] sm:$0xff] %v7170_v0  ;;  %1718 = vst [vmem:[#allocation5 + $0x8] sm:$0xff] %v7170_v0  ;;  %v5566_v7 = vpack.c.bf16 %v459_v6, %v455_v5  ;;  %v856_v8 = vld [vmem:[#allocation8 + $0x108] sm:$0xff]  ;;  %v855_v13 = vld [vmem:[#allocation8 + $0x100] sm:$0xff]  ;;  %v5568_v15 = vpack.c.bf16 %v458_v12, %v454_v10  ;;  %vm1601_vm5 = vcmask 519168   ;;  %s7172_s24 = smov 112  }
  0xc1   : > { %1719 = vst.msk [vmem:[#allocation5 + $0x10] sm:$0xff] %vm398_vm0, %v7170_v0  ;;  %1720 = vst [vmem:[#allocation5 + $0x18] sm:$0xff] %v7170_v0  ;;  %s5564_s22 = sshll.u32 %s7457_s17, 5  ;;  %v860_v9 = vld [vmem:[#allocation8 + $0x128] sm:$0xff]  ;;  %v859_v14 = vld [vmem:[#allocation8 + $0x120] sm:$0xff]  ;;  %s7173_s2 = smov 64  }
  0xc2   : > { %1721 = vst [vmem:[#allocation5 + $0x20] sm:$0xff] %v7170_v0  ;;  %1722 = vst.msk [vmem:[#allocation5 + $0x28] sm:$0xff] %vm398_vm0, %v7170_v0  ;;  %s392_s10 = scalar_lea.vmem %s8106_s0, %s5564_s22  ;;  %v5598_v11 = vpack.c.bf16 %v860_v9, %v856_v8  ;;  %5567 = vmatprep.subr.bf16.mxu1 %v5566_v7  ;;  %v5600_v16 = vpack.c.bf16 %v859_v14, %v855_v13  ;;  %v463_v17 = vld [vmem:[#allocation8 + $0xc8] sm:$0xff]  ;;  %v462_v22 = vld [vmem:[#allocation8 + $0xc0] sm:$0xff]  ;;  %s7174_s4 = smov 48   ;;  %vm1747_vm6 = vcmask 1041408  }
  0xc3   : > { %1723 = vst [vmem:[#allocation5 + $0x30] sm:$0x3] %v7170_v0  ;;  %1724 = vst [vmem:[#allocation5 + $0x38] sm:$0x3] %v7170_v0  ;;  %v403_v1 = vld [vmem:[%s392_s10] sm:$0xff]  ;;  %v405_v2 = vld [vmem:[%s392_s10 + $0x10] sm:$0xff]  ;;  %5569 = vmatpush1.bf16.msra.mxu1 %v5568_v15 }
  0xc4   : > { %v404_v3 = vld [vmem:[%s392_s10 + $0x8] sm:$0xff]  ;;  %411 = vrot.lane.b32.xlu0 %v403_v1, %s7171_s21  ;;  %415 = vrot.lane.b32.xlu1 %v405_v2, %s7171_s21  ;;  %v406_v4 = vld [vmem:[%s392_s10 + $0x18] sm:$0xf]  ;;  %v467_v18 = vld [vmem:[#allocation8 + $0xe8] sm:$0xff]  ;;  %s7175_s11 = smov 32   ;;  %s7176_s16 = smov 16  }
  0xc5   : > { %v864_v19 = vld [vmem:[#allocation8 + $0x148] sm:$0xff]  ;;  %v5570_v20 = vpack.c.bf16 %v467_v18, %v463_v17  ;;  %v466_v23 = vld [vmem:[#allocation8 + $0xe0] sm:$0xff]  ;;  %5599 = vmatprep.subr.bf16.mxu0 %v5598_v11  ;;  %v457_v28 = vld [vmem:[#allocation8 + $0x98] sm:$0xff]  ;;  %s7177_s14 = smov 96   ;;  %s7178_s26 = smov 80   ;;  %vm1828_vm7 = vcmask 130050  }
  0xc6   : > { %v868_v21 = vld [vmem:[#allocation8 + $0x168] sm:$0xff]  ;;  %v5572_v25 = vpack.c.bf16 %v466_v23, %v462_v22  ;;  %v863_v26 = vld [vmem:[#allocation8 + $0x140] sm:$0xff]  ;;  %5601 = vmatpush1.bf16.msra.mxu0 %v5600_v16  ;;  %v461_v30 = vld [vmem:[#allocation8 + $0xb8] sm:$0xff]  ;;  %vm1838_vm8 = vcmask 261250   ;;  %vm1757_vm9 = vcmask 392450   ;;  %vm1767_vm10 = vcmask 523650  }
  0xc7   : > { %v5602_v24 = vpack.c.bf16 %v868_v21, %v864_v19  ;;  %v867_v27 = vld [vmem:[#allocation8 + $0x160] sm:$0xff]  ;;  %5571 = vmatprep.subr.bf16.mxu1 %v5570_v20  ;;  %v5574_v31 = vpack.c.bf16 %v461_v30, %v457_v28  ;;  %v1083_v32 = vld [vmem:[#allocation8 + $0x188] sm:$0xff]  ;;  %v456_v37 = vld [vmem:[#allocation8 + $0x90] sm:$0xff]  ;;  %vm1773_vm11 = vcmask 654850   ;;  %vm1830_vm12 = vcmask 130048   ;;  %s5565_s12 = sshll.u32 %s7457_s17, 4 }
  0xc8   : > { %413 = vrot.lane.b32.xlu0 %v404_v3, %s7171_s21  ;;  %417 = vrot.lane.b32.xlu1 %v406_v4, %s7171_s21  ;;  %v5604_v29 = vpack.c.bf16 %v867_v27, %v863_v26  ;;  %v1087_v33 = vld [vmem:[#allocation8 + $0x1a8] sm:$0xff]  ;;  %v460_v38 = vld [vmem:[#allocation8 + $0xb0] sm:$0xff]  ;;  %v465_v41 = vld [vmem:[#allocation8 + $0xd8] sm:$0xff]  ;;  %vm1840_vm13 = vcmask 261248   ;;  %vm1783_vm14 = vcmask 786050   ;;  %vm1759_vm15 = vcmask 392448   ;;  %s7919_s23 = scalar_lea.vmem %s8113_s7, %s5565_s12 }
  0xc9   : > { %5603 = vmatprep.subr.bf16.mxu0 %v5602_v24  ;;  %5573 = vmatpush1.bf16.msra.mxu1 %v5572_v25  ;;  %v5614_v34 = vpack.c.bf16 %v1087_v33, %v1083_v32  ;;  %v469_v42 = vld [vmem:[#allocation8 + $0xf8] sm:$0xff]  ;;  %v1082_v43 = vld [vmem:[#allocation8 + $0x180] sm:$0xff]  ;;  %v5576_v45 = vpack.c.bf16 %v460_v38, %v456_v37  ;;  %v464_v46 = vld [vmem:[#allocation8 + $0xd0] sm:$0xff]  ;;  %s386_s25 = sand.u32 1, %s7150_s28   ;;  %s5561_s19 = sshll.u32 %s7247_s9, 4 }
  0xca   : > { %5605 = vmatpush1.bf16.msra.mxu0 %v5604_v29  ;;  %5575 = vmatprep.subr.bf16.mxu1 %v5574_v31  ;;  %v1086_v44 = vld [vmem:[#allocation8 + $0x1a0] sm:$0xff]  ;;  %v5578_v47 = vpack.c.bf16 %v469_v42, %v465_v41  ;;  %v468_v48 = vld [vmem:[#allocation8 + $0xf0] sm:$0xff]  ;;  %v1091_v49 = vld [vmem:[#allocation8 + $0x1c8] sm:$0xff]  ;;  %s387_s17 = scalar_lea.vmem [#allocation19], %s386_s25  ;;  %s8064_s10 = scalar_lea.hbm %s8114_s8, %s5561_s19 }
  0xcb   : > { %5615 = vmatprep.subr.bf16.mxu0 %v5614_v34  ;;  %v1095_v50 = vld [vmem:[#allocation8 + $0x1e8] sm:$0xff]  ;;  %v5616_v53 = vpack.c.bf16 %v1086_v44, %v1082_v43  ;;  %v1090_v54 = vld [vmem:[#allocation8 + $0x1c0] sm:$0xff]  ;;  %v5580_v58 = vpack.c.bf16 %v468_v48, %v464_v46  ;;  %v436_v24 = vld [vmem:[#allocation8 + $0x18] sm:$0xff]  ;;  %s5328_s22 = sshll.u32 %s387_s17, 4  ;;  %s5313_s21 = scalar_lea.sflag [#allocation10], %s386_s25  ;;  %s8066_s22 = int_to_ptr.vmem [resolvable:$true] %s5328_s22 }
  0xcc   : > { %v1094_v55 = vld [vmem:[#allocation8 + $0x1e0] sm:$0xff]  ;;  %v434_v56 = vld [vmem:[#allocation8 + $0x8] sm:$0xff]  ;;  %v5618_v59 = vpack.c.bf16 %v1095_v50, %v1091_v49  ;;  %v440_v25 = vld [vmem:[#allocation8 + $0x38] sm:$0xff]  ;;  %p8146_p7 = scmp.ne.s32.totalorder %s8127_s15, 0  ;;  %s7180_s9 = smov [#allocation19]  }
  0xcd   : > { %v438_v57 = vld [vmem:[#allocation8 + $0x28] sm:$0xff]  ;;  %v5620_v63 = vpack.c.bf16 %v1094_v55, %v1090_v54  ;;  %v433_v7 = vld [vmem:[#allocation8] sm:$0xff]  ;;  %v5590_v30 = vpack.c.bf16 %v440_v25, %v436_v24  ;;  %v435_v32 = vld [vmem:[#allocation8 + $0x10] sm:$0xff] }
  0xce   : > { %v1310_v60 = vld [vmem:[#allocation8 + $0x208] sm:$0xff]  ;;  %v5582_v1 = vpack.c.bf16 %v438_v57, %v434_v56  ;;  %v437_v8 = vld [vmem:[#allocation8 + $0x20] sm:$0xff]  ;;  %v439_v33 = vld [vmem:[#allocation8 + $0x30] sm:$0xff] }
  0xcf   : > { %v1314_v2 = vld [vmem:[#allocation8 + $0x228] sm:$0xff]  ;;  %v1309_v12 = vld [vmem:[#allocation8 + $0x200] sm:$0xff]  ;;  %v5584_v14 = vpack.c.bf16 %v437_v8, %v433_v7  ;;  %v5592_v37 = vpack.c.bf16 %v439_v33, %v435_v32  ;;  %v447_v42 = vld [vmem:[#allocation8 + $0x70] sm:$0xff] }
  0xd0   : > { %v5630_v4 = vpack.c.bf16 %v1314_v2, %v1310_v60  ;;  %v442_v10 = vld [vmem:[#allocation8 + $0x48] sm:$0xff]  ;;  %v1313_v13 = vld [vmem:[#allocation8 + $0x220] sm:$0xff]  ;;  %v858_v43 = vld [vmem:[#allocation8 + $0x118] sm:$0xff] }
  0xd1   : > { %v446_v11 = vld [vmem:[#allocation8 + $0x68] sm:$0xff]  ;;  %v441_v16 = vld [vmem:[#allocation8 + $0x40] sm:$0xff]  ;;  %v5632_v20 = vpack.c.bf16 %v1313_v13, %v1309_v12  ;;  %v862_v44 = vld [vmem:[#allocation8 + $0x138] sm:$0xff] }
  0xd2   : > { %v5586_v15 = vpack.c.bf16 %v446_v11, %v442_v10  ;;  %v445_v17 = vld [vmem:[#allocation8 + $0x60] sm:$0xff]  ;;  %v1318_v18 = vld [vmem:[#allocation8 + $0x248] sm:$0xff]  ;;  %v5606_v48 = vpack.c.bf16 %v862_v44, %v858_v43  ;;  %v866_v54 = vld [vmem:[#allocation8 + $0x158] sm:$0xff] }
  0xd3   : > { %v1322_v21 = vld [vmem:[#allocation8 + $0x268] sm:$0xff]  ;;  %v1317_v22 = vld [vmem:[#allocation8 + $0x240] sm:$0xff]  ;;  %v5588_v26 = vpack.c.bf16 %v445_v17, %v441_v16  ;;  %v870_v57 = vld [vmem:[#allocation8 + $0x178] sm:$0xff] }
  0xd4   : > { %v1321_v23 = vld [vmem:[#allocation8 + $0x260] sm:$0xff]  ;;  %v5634_v27 = vpack.c.bf16 %v1322_v21, %v1318_v18  ;;  %v865_v60 = vld [vmem:[#allocation8 + $0x150] sm:$0xff]  ;;  %v1093_v8 = vld [vmem:[#allocation8 + $0x1d8] sm:$0xff] }
  0xd5   : > { %v5636_v29 = vpack.c.bf16 %v1321_v23, %v1317_v22  ;;  %v1088_v7 = vld [vmem:[#allocation8 + $0x1b0] sm:$0xff]  ;;  %v1324_v21 = vld [vmem:[#allocation8 + $0x278] sm:$0xff] }
  0xd6   : > { %v1092_v12 = vld [vmem:[#allocation8 + $0x1d0] sm:$0xff] }
  0xd7   : > { %v1096_v13 = vld [vmem:[#allocation8 + $0x1f0] sm:$0xff] }
  0xd8   : > { %v5628_v16 = vpack.c.bf16 %v1096_v13, %v1092_v12  ;;  %v1311_v18 = vld [vmem:[#allocation8 + $0x210] sm:$0xff] }
  0xd9   : > { %v1319_v23 = vld [vmem:[#allocation8 + $0x250] sm:$0xff] }
  0xda   : > { %v1323_v24 = vld [vmem:[#allocation8 + $0x270] sm:$0xff] }
 0x136   : > { %v412_v35 = vpop.permute.xlu0 %411  ;;  %v416_v36 = vpop.permute.xlu1 %415 }
 0x137   : > { %424 = vst.msk [vmem:[#allocation2 + $0x2] sm:$0xff] %vm423_vm1, %v412_v35  ;;  %426 = vst.msk [vmem:[#allocation2 + $0x12] sm:$0xff] %vm423_vm1, %v416_v36  ;;  %v444_v35 = vld [vmem:[#allocation8 + $0x58] sm:$0xff] }
 0x138   : > { %v448_v36 = vld [vmem:[#allocation8 + $0x78] sm:$0xff] }
 0x139   : > { %v5594_v38 = vpack.c.bf16 %v448_v36, %v444_v35 }
 0x13a   : > { %v414_v39 = vpop.permute.xlu0 %413  ;;  %v418_v40 = vpop.permute.xlu1 %417 }
 0x13b   : > { %425 = vst.msk [vmem:[#allocation2 + $0xa] sm:$0xff] %vm423_vm1, %v414_v39  ;;  %v443_v39 = vld [vmem:[#allocation8 + $0x50] sm:$0xff]  ;;  %vm1808_vm1 = vcmask 917250  }
 0x13c   : > { %428 = vst.msk [vmem:[#allocation2 + $0x1a] sm:$0xf] %vm427_vm2, %v418_v40  ;;  %vm1769_vm2 = vcmask 523648  }
 0x13e   : > { %v449_v51 = vld [vmem:[#allocation2 + $0x1] sm:$0xff]  ;;  %v7477_v3 = vld [vmem:[#allocation2 + $0x12] sm:$0xff] }
 0x13f   : > { %v7463_v52 = vld [vmem:[#allocation2 + $0x2] sm:$0xff]  ;;  %5488 = vmatmul.mubr.msk.f32.vlgmr.msra.gmra.mrb[0].mxu1 %vm398_vm0, %v449_v51 }
 0x140   : > { %5504 = vmatmul.mubr.msk.f32.vlgmr.msra.gmra.mrb[0].mxu0 %vm398_vm0, %v7463_v52  ;;  %5577 = vmatpush1.bf16.msra.mxu1 %v5576_v45  ;;  %v429_v40 = vld [vmem:[#allocation2] sm:$0xff]  ;;  %v5596_v45 = vpack.c.bf16 %v447_v42, %v443_v39 }
 0x141   : > { %552 = vmatprep.mubr.f32.mxu1 %v7170_v0  ;;  %953 = vmatprep.mubr.f32.mxu0 %v7170_v0 }
 0x142   : > { %5579 = vmatprep.subr.bf16.mxu1 %v5578_v47  ;;  %v450_v61 = vld [vmem:[#allocation2 + $0x9] sm:$0xff]  ;;  %5617 = vmatpush1.bf16.msra.mxu0 %v5616_v53  ;;  %v451_v5 = vld [vmem:[#allocation2 + $0x11] sm:$0xff] }
 0x143   : > { %v7470_v62 = vld [vmem:[#allocation2 + $0xa] sm:$0xff]  ;;  %5489 = vmatmul.mubr.msk.f32.gmra.mrb[2].mxu1 %vm398_vm0, %v450_v61  ;;  %5619 = vmatprep.subr.bf16.mxu0 %v5618_v59  ;;  %v7484_v6 = vld [vmem:[#allocation2 + $0x1a] sm:$0xf]  ;;  %v5610_v59 = vpack.c.bf16 %v870_v57, %v866_v54 }
 0x144   : > { %5505 = vmatmul.mubr.msk.f32.gmra.mrb[2].mxu0 %vm398_vm0, %v7470_v62  ;;  %558 = vmatprep.mubr.f32.mxu1 %v7170_v0  ;;  %v452_v9 = vld [vmem:[#allocation2 + $0x19] sm:$0xf]  ;;  %v7491_v19 = vld [vmem:[#allocation2 + $0x3] sm:$0xff]  ;;  %v7498_v28 = vld [vmem:[#allocation2 + $0xb] sm:$0xff] }
 0x145   : > { %959 = vmatprep.mubr.f32.mxu0 %v7170_v0  ;;  %5581 = vmatpush1.bf16.msra.mxu1 %v5580_v58  ;;  %v7505_v31 = vld [vmem:[#allocation2 + $0x13] sm:$0xff]  ;;  %v7512_v34 = vld [vmem:[#allocation2 + $0x1b] sm:$0xf]  ;;  %v7519_v41 = vld [vmem:[#allocation2 + $0x4] sm:$0xff] }
 0x146   : > { %5621 = vmatpush1.bf16.msra.mxu0 %v5620_v63  ;;  %5583 = vmatprep.subr.bf16.mxu1 %v5582_v1  ;;  %v430_v46 = vld [vmem:[#allocation2 + $0x8] sm:$0xff]  ;;  %v431_v49 = vld [vmem:[#allocation2 + $0x10] sm:$0xff]  ;;  %v861_v53 = vld [vmem:[#allocation8 + $0x130] sm:$0xff] }
 0x147   : > { %5490 = vmatmul.mubr.msk.f32.gmra.mrb[4].mxu1 %vm398_vm0, %v451_v5  ;;  %5631 = vmatprep.subr.bf16.mxu0 %v5630_v4  ;;  %v7526_v47 = vld [vmem:[#allocation2 + $0xc] sm:$0xff]  ;;  %v7533_v50 = vld [vmem:[#allocation2 + $0x14] sm:$0xff]  ;;  %v7540_v56 = vld [vmem:[#allocation2 + $0x1c] sm:$0xf] }
 0x148   : > { %5506 = vmatmul.mubr.msk.f32.gmra.mrb[4].mxu0 %vm398_vm0, %v7477_v3  ;;  %564 = vmatprep.mubr.f32.mxu1 %v7170_v0  ;;  %v432_v55 = vld [vmem:[#allocation2 + $0x18] sm:$0xf]  ;;  %v1085_v63 = vld [vmem:[#allocation8 + $0x198] sm:$0xff] }
 0x149   : > { %965 = vmatprep.mubr.f32.mxu0 %v7170_v0  ;;  %v1089_v1 = vld [vmem:[#allocation8 + $0x1b8] sm:$0xff] }
 0x14a   : > { %v5622_v4 = vpack.c.bf16 %v1089_v1, %v1085_v63 }
 0x14b   : > { %5491 = vmatmul.mubr.msk.f32.gmra.mrb[6].mxu1 %vm398_vm0, %v452_v9 }
 0x14c   : > { %5507 = vmatmul.mubr.msk.f32.gmra.mrb[6].mxu0 %vm398_vm0, %v7484_v6  ;;  %635 = vmatprep.mubr.f32.mxu1 %v7170_v0 }
 0x14d   : > { %1174 = vmatprep.mubr.f32.mxu0 %v7170_v0 }
 0x14f   : > { %5492 = vmatmul.mubr.msk.f32.vlgmr.msra.gmra.mrb[8].mxu1 %vm398_vm0, %v449_v51  ;;  %v857_v51 = vld [vmem:[#allocation8 + $0x110] sm:$0xff] }
 0x150   : > { %5512 = vmatmul.mubr.msk.f32.vlgmr.msra.gmra.mrb[0].mxu0 %vm398_vm0, %v7491_v19  ;;  %5585 = vmatpush1.bf16.msra.mxu1 %v5584_v14  ;;  %v5608_v58 = vpack.c.bf16 %v861_v53, %v857_v51  ;;  %v1312_v14 = vld [vmem:[#allocation8 + $0x218] sm:$0xff] }
 0x151   : > { %641 = vmatprep.mubr.f32.mxu1 %v7170_v0  ;;  %1180 = vmatprep.mubr.f32.mxu0 %v7170_v0 }
 0x152   : > { %5587 = vmatprep.subr.bf16.mxu1 %v5586_v15  ;;  %5633 = vmatpush1.bf16.msra.mxu0 %v5632_v20  ;;  %v1316_v15 = vld [vmem:[#allocation8 + $0x238] sm:$0xff] }
 0x153   : > { %5493 = vmatmul.mubr.msk.f32.gmra.mrb[10].mxu1 %vm398_vm0, %v450_v61  ;;  %5635 = vmatprep.subr.bf16.mxu0 %v5634_v27  ;;  %v869_v61 = vld [vmem:[#allocation8 + $0x170] sm:$0xff]  ;;  %v5638_v17 = vpack.c.bf16 %v1316_v15, %v1312_v14  ;;  %v1320_v20 = vld [vmem:[#allocation8 + $0x258] sm:$0xff] }
 0x154   : > { %5513 = vmatmul.mubr.msk.f32.gmra.mrb[2].mxu0 %vm398_vm0, %v7498_v28  ;;  %647 = vmatprep.mubr.f32.mxu1 %v7170_v0  ;;  %v5612_v2 = vpack.c.bf16 %v869_v61, %v865_v60 }
 0x155   : > { %1186 = vmatprep.mubr.f32.mxu0 %v7170_v0  ;;  %5589 = vmatpush1.bf16.msra.mxu1 %v5588_v26  ;;  %v1531_v26 = vld [vmem:[#allocation11] sm:$0xf] }
 0x156   : > { %5637 = vmatpush1.bf16.msra.mxu0 %v5636_v29  ;;  %5591 = vmatprep.subr.bf16.mxu1 %v5590_v30 }
 0x157   : > { %5494 = vmatmul.mubr.msk.f32.gmra.mrb[12].mxu1 %vm398_vm0, %v451_v5  ;;  %v1084_v5 = vld [vmem:[#allocation8 + $0x190] sm:$0xff] }
 0x158   : > { %5514 = vmatmul.mubr.msk.f32.gmra.mrb[4].mxu0 %vm398_vm0, %v7505_v31  ;;  %653 = vmatprep.mubr.f32.mxu1 %v7170_v0  ;;  %v5624_v10 = vpack.c.bf16 %v1088_v7, %v1084_v5 }
 0x159   : > { %1192 = vmatprep.mubr.f32.mxu0 %v7170_v0 }
 0x15b   : > { %5495 = vmatmul.mubr.msk.f32.gmra.mrb[14].mxu1 %vm398_vm0, %v452_v9  ;;  %v1097_v9 = vld [vmem:[#allocation8 + $0x1f8] sm:$0xff] }
 0x15c   : > { %5515 = vmatmul.mubr.msk.f32.gmra.mrb[6].mxu0 %vm398_vm0, %v7512_v34  ;;  %736 = vmatprep.mubr.f32.mxu1 %v7170_v0  ;;  %v5626_v11 = vpack.c.bf16 %v1097_v9, %v1093_v8 }
 0x15d   : > { %1401 = vmatprep.mubr.f32.mxu0 %v7170_v0 }
 0x15f   : > { %5496 = vmatmul.mubr.msk.f32.vlgmr.msra.gmra.mrb[0].mxu1 %vm398_vm0, %v429_v40 }
 0x160   : > { %5520 = vmatmul.mubr.msk.f32.vlgmr.msra.gmra.mrb[0].mxu0 %vm398_vm0, %v7519_v41  ;;  %5593 = vmatpush1.bf16.msra.mxu1 %v5592_v37 }
 0x161   : > { %742 = vmatprep.mubr.f32.mxu1 %v7170_v0  ;;  %1407 = vmatprep.mubr.f32.mxu0 %v7170_v0 }
 0x162   : > { %5595 = vmatprep.subr.bf16.mxu1 %v5594_v38 }
 0x163   : > { %5497 = vmatmul.mubr.msk.f32.gmra.mrb[2].mxu1 %vm398_vm0, %v430_v46 }
 0x164   : > { %5521 = vmatmul.mubr.msk.f32.gmra.mrb[2].mxu0 %vm398_vm0, %v7526_v47  ;;  %748 = vmatprep.mubr.f32.mxu1 %v7170_v0 }
 0x165   : > { %1413 = vmatprep.mubr.f32.mxu0 %v7170_v0  ;;  %5597 = vmatpush1.bf16.msra.mxu1 %v5596_v45 }
 0x166   : > { %5607 = vmatprep.subr.bf16.mxu1 %v5606_v48 }
 0x167   : > { %5498 = vmatmul.mubr.msk.f32.gmra.mrb[4].mxu1 %vm398_vm0, %v431_v49 }
 0x168   : > { %5522 = vmatmul.mubr.msk.f32.gmra.mrb[4].mxu0 %vm398_vm0, %v7533_v50  ;;  %754 = vmatprep.mubr.f32.mxu1 %v7170_v0 }
 0x169   : > { %1419 = vmatprep.mubr.f32.mxu0 %v7170_v0 }
 0x16b   : > { %5499 = vmatmul.mubr.msk.f32.gmra.mrb[6].mxu1 %vm398_vm0, %v432_v55 }
 0x16c   : > { %5523 = vmatmul.mubr.msk.f32.gmra.mrb[6].mxu0 %vm398_vm0, %v7540_v56  ;;  %825 = vmatprep.mubr.f32.mxu1 %v7170_v0 }
 0x16f   : > { %5500 = vmatmul.mubr.msk.f32.vlgmr.msra.gmra.mrb[8].mxu1 %vm398_vm0, %v429_v40 }
 0x170   : > { %5609 = vmatpush1.bf16.msra.mxu1 %v5608_v58  ;;  %831 = vmatprep.mubr.f32.mxu1 %v7170_v0 }
 0x171   : > { %5611 = vmatprep.subr.bf16.mxu1 %v5610_v59 }
 0x173   : > { %5501 = vmatmul.mubr.msk.f32.gmra.mrb[10].mxu1 %vm398_vm0, %v430_v46 }
 0x174   : > { %837 = vmatprep.mubr.f32.mxu1 %v7170_v0  ;;  %5613 = vmatpush1.bf16.msra.mxu1 %v5612_v2 }
 0x175   : > { %5623 = vmatprep.subr.bf16.mxu1 %v5622_v4 }
 0x177   : > { %5502 = vmatmul.mubr.msk.f32.gmra.mrb[12].mxu1 %vm398_vm0, %v431_v49 }
 0x178   : > { %843 = vmatprep.mubr.f32.mxu1 %v7170_v0 }
 0x17b   : > { %5503 = vmatmul.mubr.msk.f32.gmra.mrb[14].mxu1 %vm398_vm0, %v432_v55 }
 0x17c   : > { %1036 = vmatprep.mubr.f32.mxu1 %v7170_v0 }
 0x17f   : > { %5508 = vmatmul.mubr.msk.f32.vlgmr.msra.gmra.mrb[8].mxu1 %vm398_vm0, %v7463_v52  ;;  %v1315_v52 = vld [vmem:[#allocation8 + $0x230] sm:$0xff] }
 0x180   : > { %5625 = vmatpush1.bf16.msra.mxu1 %v5624_v10  ;;  %1042 = vmatprep.mubr.f32.mxu1 %v7170_v0  ;;  %v5640_v22 = vpack.c.bf16 %v1315_v52, %v1311_v18 }
 0x181   : > { %5627 = vmatprep.subr.bf16.mxu1 %v5626_v11 }
 0x183   : > { %5509 = vmatmul.mubr.msk.f32.gmra.mrb[10].mxu1 %vm398_vm0, %v7470_v62  ;;  %v5642_v62 = vpack.c.bf16 %v1324_v21, %v1320_v20 }
 0x184   : > { %1048 = vmatprep.mubr.f32.mxu1 %v7170_v0  ;;  %5629 = vmatpush1.bf16.msra.mxu1 %v5628_v16 }
 0x185   : > { %5639 = vmatprep.subr.bf16.mxu1 %v5638_v17 }
 0x187   : > { %5510 = vmatmul.mubr.msk.f32.gmra.mrb[12].mxu1 %vm398_vm0, %v7477_v3  ;;  %v5644_v3 = vpack.c.bf16 %v1323_v24, %v1319_v23 }
 0x188   : > { %1054 = vmatprep.mubr.f32.mxu1 %v7170_v0 }
 0x18b   : > { %5511 = vmatmul.mubr.msk.f32.gmra.mrb[14].mxu1 %vm398_vm0, %v7484_v6  ;;  %v1533_v6 = vlaneseq }
 0x18c   : > { %1263 = vmatprep.mubr.f32.mxu1 %v7170_v0 }
 0x18d   : > { %vm7614_vm4 = vcmp.lt.s32.totalorder %v1533_v6, 448 }
 0x18f   : > { %5516 = vmatmul.mubr.msk.f32.vlgmr.msra.gmra.mrb[8].mxu1 %vm398_vm0, %v7491_v19  ;;  %v7590_v19 = vshrl.u32 %v1533_v6, 7 }
 0x190   : > { %5641 = vmatpush1.bf16.msra.mxu1 %v5640_v22  ;;  %1269 = vmatprep.mubr.f32.mxu1 %v7170_v0 }
 0x191   : > { %5643 = vmatprep.subr.bf16.mxu1 %v5642_v62  ;;  %v7593_v25 = vsub.s32 0, %v7590_v19  ;;  %v7596_v27 = vsub.s32 1, %v7590_v19  ;;  %v1543_v11 = vsub.s32 2, %v7590_v19  ;;  %v1547_v12 = vsub.s32 3, %v7590_v19 }
 0x193   : > { %5517 = vmatmul.mubr.msk.f32.gmra.mrb[10].mxu1 %vm398_vm0, %v7498_v28  ;;  %v1536_v28 = vrot.slane %v1531_v26, %v7593_v25  ;;  %v1544_v13 = vrot.slane %v1531_v26, %v1543_v11  ;;  %v7606_v14 = vrot.slane %v1531_v26, %v1547_v12 }
 0x194   : > { %1275 = vmatprep.mubr.f32.mxu1 %v7170_v0  ;;  %5645 = vmatpush1.bf16.msra.mxu1 %v5644_v3 }
 0x197   : > { %5518 = vmatmul.mubr.msk.f32.gmra.mrb[12].mxu1 %vm398_vm0, %v7505_v31  ;;  %v1540_v31 = vrot.slane %v1531_v26, %v7596_v27 }
 0x198   : > { %1281 = vmatprep.mubr.f32.mxu1 %v7170_v0 }
 0x19b   : > { %5519 = vmatmul.mubr.msk.f32.gmra.mrb[14].mxu1 %vm398_vm0, %v7512_v34 }
 0x19c   : > { %1490 = vmatprep.mubr.f32.mxu1 %v7170_v0 }
 0x19f   : > { %5524 = vmatmul.mubr.msk.f32.vlgmr.msra.gmra.mrb[8].mxu1 %vm398_vm0, %v7519_v41 }
 0x1a0   : > { %1496 = vmatprep.mubr.f32.mxu1 %v7170_v0 }
 0x1a3   : > { %5525 = vmatmul.mubr.msk.f32.gmra.mrb[10].mxu1 %vm398_vm0, %v7526_v47 }
 0x1a4   : > { %1502 = vmatprep.mubr.f32.mxu1 %v7170_v0 }
 0x1a7   : > { %5526 = vmatmul.mubr.msk.f32.gmra.mrb[12].mxu1 %vm398_vm0, %v7533_v50 }
 0x1a8   : > { %1508 = vmatprep.mubr.f32.mxu1 %v7170_v0 }
 0x1ab   : > { %5527 = vmatmul.mubr.msk.f32.gmra.mrb[14].mxu1 %vm398_vm0, %v7540_v56 }
 0x232   : > { %v738_v29 = vpop.f32.mrb[0].mxu1 }
 0x233   : > { %v1403_v30 = vpop.f32.mrb[0].mxu0  ;;  %v740_v33 = vpop.f32.mrb[1].mxu1 }
 0x234   : > { %v6660_v32 = vadd.f32 %v1403_v30, %v738_v29  ;;  %v1405_v34 = vpop.f32.mrb[1].mxu0 }
 0x235   : > { %v6661_v35 = vadd.f32 %v1405_v34, %v740_v33 }
 0x236   : > { %v1553_v36 = vadd.f32 %v6660_v32, %v1536_v28  ;;  %v744_v38 = vpop.f32.mrb[2].mxu1  ;;  %v4512_v32 = vld [vmem:[#allocation16 + $0x10] sm:$0xff] }
 0x237   : > { %v1554_v37 = vadd.f32 %v6661_v35, %v1540_v31  ;;  %v1409_v39 = vpop.f32.mrb[2].mxu0  ;;  %v746_v42 = vpop.f32.mrb[3].mxu1 }
 0x238   : > { %v1569_v40 = vmax.f32 %v1553_v36, 0.0  ;;  %v6662_v41 = vadd.f32 %v1409_v39, %v744_v38  ;;  %v1411_v43 = vpop.f32.mrb[3].mxu0 }
 0x239   : > { %v1570_v44 = vmax.f32 %v1554_v37, 0.0  ;;  %v6663_v45 = vadd.f32 %v1411_v43, %v746_v42 }
 0x23a   : > { %1585 = vst [vmem:[#allocation3] sm:$0xff] %v1569_v40  ;;  %v1557_v46 = vadd.f32 %v6662_v41, %v1536_v28  ;;  %v750_v48 = vpop.f32.mrb[4].mxu1 }
 0x23b   : > { %1586 = vst [vmem:[#allocation3 + $0x8] sm:$0xff] %v1570_v44  ;;  %v1558_v47 = vadd.f32 %v6663_v45, %v1540_v31  ;;  %v1415_v49 = vpop.f32.mrb[4].mxu0  ;;  %v752_v53 = vpop.f32.mrb[5].mxu1 }
 0x23c   : > { %v1573_v50 = vmax.f32 %v1557_v46, 0.0  ;;  %v6664_v51 = vadd.f32 %v1415_v49, %v750_v48  ;;  %v1417_v54 = vpop.f32.mrb[5].mxu0 }
 0x23d   : > { %v1574_v55 = vmax.f32 %v1558_v47, 0.0  ;;  %v6665_v56 = vadd.f32 %v1417_v54, %v752_v53 }
 0x23e   : > { %1590 = vst [vmem:[#allocation3 + $0x20] sm:$0xff] %v1573_v50  ;;  %v1561_v57 = vadd.f32 %v6664_v51, %v1536_v28  ;;  %v756_v59 = vpop.f32.mrb[6].mxu1 }
 0x23f   : > { %1591 = vst [vmem:[#allocation3 + $0x28] sm:$0xff] %v1574_v55  ;;  %v1562_v58 = vadd.f32 %v6665_v56, %v1540_v31  ;;  %v1421_v60 = vpop.f32.mrb[6].mxu0  ;;  %v758_v1 = vpop.f32.mrb[7].mxu1 }
 0x240   : > { %v1577_v61 = vmax.f32 %v1561_v57, 0.0  ;;  %v6666_v63 = vadd.f32 %v1421_v60, %v756_v59  ;;  %v1423_v2 = vpop.f32.mrb[7].mxu0 }
 0x241   : > { %v1578_v4 = vmax.f32 %v1562_v58, 0.0  ;;  %v6667_v5 = vadd.f32 %v1423_v2, %v758_v1 }
 0x242   : > { %1594 = vst [vmem:[#allocation3 + $0x40] sm:$0xff] %v1577_v61  ;;  %v1565_v7 = vadd.f32 %v6666_v63, %v1536_v28 }
 0x243   : > { %1595 = vst [vmem:[#allocation3 + $0x48] sm:$0xff] %v1578_v4  ;;  %v1566_v8 = vadd.f32 %v6667_v5, %v1540_v31 }
 0x244   : > { %v1581_v9 = vmax.f32 %v1565_v7, 0.0 }
 0x245   : > { %v1582_v10 = vmax.f32 %v1566_v8, 0.0 }
 0x246   : > { %1598 = vst [vmem:[#allocation3 + $0x60] sm:$0xf] %v1581_v9 }
 0x247   : > { %1599 = vst [vmem:[#allocation3 + $0x68] sm:$0xf] %v1582_v10 }
 0x272   : > { %v1492_v15 = vpop.f32.mrb[8].mxu1 }
 0x273   : > { %v1555_v16 = vadd.f32 %v1544_v13, %v1492_v15  ;;  %v1494_v17 = vpop.f32.mrb[9].mxu1 }
 0x274   : > { %v1556_v18 = vadd.f32 %v7606_v14, %v1494_v17 }
 0x275   : > { %v1571_v52 = vmax.f32 %v1555_v16, 0.0 }
 0x276   : > { %v1572_v20 = vmax.f32 %v1556_v18, 0.0  ;;  %v1498_v21 = vpop.f32.mrb[10].mxu1 }
 0x277   : > { %1587 = vst [vmem:[#allocation3 + $0x10] sm:$0xff] %v1571_v52  ;;  %v1559_v22 = vadd.f32 %v1544_v13, %v1498_v21  ;;  %v1500_v62 = vpop.f32.mrb[11].mxu1 }
 0x278   : > { %1589 = vst.msk [vmem:[#allocation3 + $0x18] sm:$0xff] %vm1588_vm3, %v1572_v20  ;;  %v1560_v23 = vadd.f32 %v7606_v14, %v1500_v62 }
 0x279   : > { %v1575_v24 = vmax.f32 %v1559_v22, 0.0 }
 0x27a   : > { %v1576_v3 = vmax.f32 %v1560_v23, 0.0  ;;  %v1504_v26 = vpop.f32.mrb[12].mxu1 }
 0x27b   : > { %1592 = vst [vmem:[#allocation3 + $0x30] sm:$0xff] %v1575_v24  ;;  %v1563_v28 = vadd.f32 %v1544_v13, %v1504_v26  ;;  %v1506_v29 = vpop.f32.mrb[13].mxu1 }
 0x27c   : > { %1593 = vst.msk [vmem:[#allocation3 + $0x38] sm:$0xff] %vm1588_vm3, %v1576_v3  ;;  %v1564_v30 = vadd.f32 %v7606_v14, %v1506_v29 }
 0x27d   : > { %v1579_v31 = vmax.f32 %v1563_v28, 0.0 }
 0x27e   : > { %v1580_v33 = vmax.f32 %v1564_v30, 0.0  ;;  %v1510_v34 = vpop.f32.mrb[14].mxu1 }
 0x27f   : > { %v1603_v35 = vld [vmem:[#allocation3] ss:$8 sm:$0xf]  ;;  %v1605_v36 = vld [vmem:[#allocation3 + $0x1] ss:$8 sm:$0xf]  ;;  %v1567_v60 = vadd.f32 %v1544_v13, %v1510_v34 }
 0x280   : > { %1596 = vst [vmem:[#allocation3 + $0x50] sm:$0xff] %v1579_v31  ;;  %v1614_v37 = vld [vmem:[#allocation3 + $0x2] ss:$8 sm:$0xf]  ;;  %1597 = vst.msk [vmem:[#allocation3 + $0x58] sm:$0xff] %vm1588_vm3, %v1580_v33  ;;  %v1606_v39 = vmax.f32 %v1603_v35, %v1605_v36  ;;  %v1512_v15 = vpop.f32.mrb[15].mxu1 }
 0x281   : > { %v1616_v38 = vld [vmem:[#allocation3 + $0x3] ss:$8 sm:$0xf]  ;;  %v1622_v40 = vld [vmem:[#allocation3 + $0x4] ss:$8 sm:$0xf]  ;;  %v1568_v17 = vadd.f32 %v7606_v14, %v1512_v15 }
 0x282   : > { %v1624_v41 = vld [vmem:[#allocation3 + $0x5] ss:$8 sm:$0xf]  ;;  %v1617_v42 = vmax.f32 %v1614_v37, %v1616_v38  ;;  %v1630_v43 = vld [vmem:[#allocation3 + $0x6] ss:$8 sm:$0xf] }
 0x283   : > { %v1632_v44 = vld [vmem:[#allocation3 + $0x7] ss:$8 sm:$0xf]  ;;  %1611 = vst.msk [vmem:[#allocation4] ss:$8 sm:$0xf] %vm7614_vm4, %v1606_v39  ;;  %v1625_v6 = vmax.f32 %v1622_v40, %v1624_v41 }
 0x284   : > { %v1638_v45 = vld [vmem:[#allocation3 + $0x20] ss:$8 sm:$0xf]  ;;  %v1640_v46 = vld [vmem:[#allocation3 + $0x21] ss:$8 sm:$0xf]  ;;  %v1633_v47 = vmax.f32 %v1630_v43, %v1632_v44 }
 0x285   : > { %1619 = vst.msk [vmem:[#allocation4 + $0x1] ss:$8 sm:$0xf] %vm7614_vm4, %v1617_v42  ;;  %v1646_v48 = vld [vmem:[#allocation3 + $0x22] ss:$8 sm:$0xf]  ;;  %v1641_v50 = vmax.f32 %v1638_v45, %v1640_v46 }
 0x286   : > { %v1648_v49 = vld [vmem:[#allocation3 + $0x23] ss:$8 sm:$0xf]  ;;  %1627 = vst.msk [vmem:[#allocation4 + $0x2] ss:$8 sm:$0xf] %vm7614_vm4, %v1625_v6 }
 0x287   : > { %v1654_v51 = vld [vmem:[#allocation3 + $0x24] ss:$8 sm:$0xf]  ;;  %v1656_v53 = vld [vmem:[#allocation3 + $0x25] ss:$8 sm:$0xf]  ;;  %v1649_v54 = vmax.f32 %v1646_v48, %v1648_v49 }
 0x288   : > { %1635 = vst.msk [vmem:[#allocation4 + $0x3] ss:$8 sm:$0xf] %vm7614_vm4, %v1633_v47  ;;  %v1662_v55 = vld [vmem:[#allocation3 + $0x26] ss:$8 sm:$0xf]  ;;  %v1657_v57 = vmax.f32 %v1654_v51, %v1656_v53 }
 0x289   : > { %v1664_v56 = vld [vmem:[#allocation3 + $0x27] ss:$8 sm:$0xf]  ;;  %1643 = vst.msk [vmem:[#allocation4 + $0x4] ss:$8 sm:$0xf] %vm7614_vm4, %v1641_v50 }
 0x28a   : > { %v1670_v58 = vld [vmem:[#allocation3 + $0x40] ss:$8 sm:$0xf]  ;;  %v1672_v59 = vld [vmem:[#allocation3 + $0x41] ss:$8 sm:$0xf]  ;;  %v1665_v61 = vmax.f32 %v1662_v55, %v1664_v56 }
 0x28b   : > { %1651 = vst.msk [vmem:[#allocation4 + $0x5] ss:$8 sm:$0xf] %vm7614_vm4, %v1649_v54  ;;  %v1678_v63 = vld [vmem:[#allocation3 + $0x42] ss:$8 sm:$0xf]  ;;  %v1673_v2 = vmax.f32 %v1670_v58, %v1672_v59 }
 0x28c   : > { %v1680_v1 = vld [vmem:[#allocation3 + $0x43] ss:$8 sm:$0xf]  ;;  %1659 = vst.msk [vmem:[#allocation4 + $0x6] ss:$8 sm:$0xf] %vm7614_vm4, %v1657_v57 }
 0x28d   : > { %v1686_v4 = vld [vmem:[#allocation3 + $0x44] ss:$8 sm:$0xf]  ;;  %v1688_v5 = vld [vmem:[#allocation3 + $0x45] ss:$8 sm:$0xf]  ;;  %v1681_v7 = vmax.f32 %v1678_v63, %v1680_v1 }
 0x28e   : > { %1667 = vst.msk [vmem:[#allocation4 + $0x7] ss:$8 sm:$0xf] %vm7614_vm4, %v1665_v61  ;;  %v1694_v8 = vld [vmem:[#allocation3 + $0x46] ss:$8 sm:$0xf]  ;;  %v1689_v10 = vmax.f32 %v1686_v4, %v1688_v5 }
 0x28f   : > { %v1696_v9 = vld [vmem:[#allocation3 + $0x47] ss:$8 sm:$0xf]  ;;  %1675 = vst.msk [vmem:[#allocation4 + $0x20] ss:$8 sm:$0xf] %vm7614_vm4, %v1673_v2 }
 0x290   : > { %v1583_v13 = vmax.f32 %v1567_v60, 0.0  ;;  %1683 = vst.msk [vmem:[#allocation4 + $0x21] ss:$8 sm:$0xf] %vm7614_vm4, %v1681_v7  ;;  %v1697_v16 = vmax.f32 %v1694_v8, %v1696_v9  ;;  %v1584_v18 = vmax.f32 %v1568_v17, 0.0  ;;  %v2074_v33 = vld [vmem:[#allocation13 + $0x488] sm:$0xff] }
 0x291   : > { %1691 = vst.msk [vmem:[#allocation4 + $0x22] ss:$8 sm:$0xf] %vm7614_vm4, %v1689_v10  ;;  %v2078_v34 = vld [vmem:[#allocation13 + $0x4a8] sm:$0xff]  ;;  %v2076_v35 = vld [vmem:[#allocation13 + $0x498] sm:$0xff]  ;;  %v2073_v39 = vld [vmem:[#allocation13 + $0x480] sm:$0xff] }
 0x292   : > { %1600 = vst [vmem:[#allocation3 + $0x70] sm:$0xf] %v1583_v13  ;;  %1699 = vst.msk [vmem:[#allocation4 + $0x23] ss:$8 sm:$0xf] %vm7614_vm4, %v1697_v16  ;;  %v5646_v36 = vpack.c.bf16 %v2078_v34, %v2074_v33  ;;  %v2080_v37 = vld [vmem:[#allocation13 + $0x4b8] sm:$0xff] }
 0x293   : > { %1602 = vst.msk [vmem:[#allocation3 + $0x78] sm:$0xf] %vm1601_vm5, %v1584_v18  ;;  %v5718_v38 = vpack.c.bf16 %v2080_v37, %v2076_v35  ;;  %v2077_v40 = vld [vmem:[#allocation13 + $0x4a0] sm:$0xff]  ;;  %v2075_v41 = vld [vmem:[#allocation13 + $0x490] sm:$0xff]  ;;  %v2082_v44 = vld [vmem:[#allocation13 + $0x4c8] sm:$0xff]  ;;  %vm1775_vm5 = vcmask 654848  }
 0x294   : > { %5647 = vmatprep.subr.bf16.mxu0 %v5646_v36  ;;  %v5648_v42 = vpack.c.bf16 %v2077_v40, %v2073_v39  ;;  %v2079_v43 = vld [vmem:[#allocation13 + $0x4b0] sm:$0xff]  ;;  %v2086_v6 = vld [vmem:[#allocation13 + $0x4e8] sm:$0xff]  ;;  %v2084_v47 = vld [vmem:[#allocation13 + $0x4d8] sm:$0xff] }
 0x295   : > { %v7644_v52 = vld [vmem:[#allocation4 + $0x8] sm:$0xff]  ;;  %v7648_v20 = vld [vmem:[#allocation4 + $0x10] sm:$0xff]  ;;  %v7652_v14 = vld [vmem:[#allocation4] sm:$0xff]  ;;  %5719 = vmatprep.subr.bf16.mxu1 %v5718_v38  ;;  %v5720_v45 = vpack.c.bf16 %v2079_v43, %v2075_v41  ;;  %v5650_v46 = vpack.c.bf16 %v2086_v6, %v2082_v44 }
 0x296   : > { %1789 = vrot.lane.b32.xlu0 %v7644_v52, %s7172_s24  ;;  %v7660_v26 = vld [vmem:[#allocation4 + $0x18] sm:$0xff]  ;;  %v2088_v48 = vld [vmem:[#allocation13 + $0x4f8] sm:$0xff]  ;;  %5649 = vmatpush1.bf16.msra.mxu0 %v5648_v42  ;;  %v2081_v50 = vld [vmem:[#allocation13 + $0x4c0] sm:$0xff] }
 0x297   : > { %v5722_v49 = vpack.c.bf16 %v2088_v48, %v2084_v47  ;;  %5721 = vmatpush1.bf16.msra.mxu1 %v5720_v45  ;;  %5651 = vmatprep.subr.bf16.mxu0 %v5650_v46  ;;  %v2085_v51 = vld [vmem:[#allocation13 + $0x4e0] sm:$0xff]  ;;  %v2083_v53 = vld [vmem:[#allocation13 + $0x4d0] sm:$0xff]  ;;  %v2090_v56 = vld [vmem:[#allocation13 + $0x508] sm:$0xff] }
 0x298   : > { %v5652_v54 = vpack.c.bf16 %v2085_v51, %v2081_v50  ;;  %v2087_v55 = vld [vmem:[#allocation13 + $0x4f0] sm:$0xff]  ;;  %v2094_v57 = vld [vmem:[#allocation13 + $0x528] sm:$0xff]  ;;  %v2092_v60 = vld [vmem:[#allocation13 + $0x518] sm:$0xff] }
 0x299   : > { %5723 = vmatprep.subr.bf16.mxu1 %v5722_v49  ;;  %v5724_v58 = vpack.c.bf16 %v2087_v55, %v2083_v53  ;;  %v5654_v59 = vpack.c.bf16 %v2094_v57, %v2090_v56  ;;  %v2096_v61 = vld [vmem:[#allocation13 + $0x538] sm:$0xff]  ;;  %v2089_v2 = vld [vmem:[#allocation13 + $0x500] sm:$0xff]  ;;  %v2091_v5 = vld [vmem:[#allocation13 + $0x510] sm:$0xff] }
 0x29a   : > { %1844 = vrot.lane.b32.xlu0 %v7648_v20, %s7172_s24  ;;  %v1702_v21 = vld [vmem:[#allocation3 + $0x60] ss:$8 sm:$0xf]  ;;  %v1704_v22 = vld [vmem:[#allocation3 + $0x61] ss:$8 sm:$0xf]  ;;  %5653 = vmatpush1.bf16.msra.mxu0 %v5652_v54  ;;  %v5726_v63 = vpack.c.bf16 %v2096_v61, %v2092_v60 }
 0x29b   : > { %v1710_v62 = vld [vmem:[#allocation3 + $0x62] ss:$8 sm:$0xf]  ;;  %v1712_v23 = vld [vmem:[#allocation3 + $0x63] ss:$8 sm:$0xf]  ;;  %v1705_v24 = vmax.f32 %v1702_v21, %v1704_v22  ;;  %5725 = vmatpush1.bf16.msra.mxu1 %v5724_v58  ;;  %5655 = vmatprep.subr.bf16.mxu0 %v5654_v59 }
 0x29c   : > { %v1713_v3 = vmax.f32 %v1710_v62, %v1712_v23  ;;  %v2093_v4 = vld [vmem:[#allocation13 + $0x520] sm:$0xff]  ;;  %5727 = vmatprep.subr.bf16.mxu1 %v5726_v63  ;;  %v2095_v9 = vld [vmem:[#allocation13 + $0x530] sm:$0xff]  ;;  %v2098_v21 = vld [vmem:[#allocation13 + $0x548] sm:$0xff] }
 0x29d   : > { %1707 = vst.msk [vmem:[#allocation4 + $0x24] ss:$8 sm:$0xf] %vm7614_vm4, %v1705_v24  ;;  %v5656_v8 = vpack.c.bf16 %v2093_v4, %v2089_v2  ;;  %v5728_v10 = vpack.c.bf16 %v2095_v9, %v2091_v5  ;;  %v2102_v22 = vld [vmem:[#allocation13 + $0x568] sm:$0xff]  ;;  %v2100_v62 = vld [vmem:[#allocation13 + $0x558] sm:$0xff]  ;;  %v2101_v33 = vld [vmem:[#allocation13 + $0x560] sm:$0xff] }
 0x29e   : > { %1737 = vrot.lane.b32.xlu0 %v7652_v14, %s7172_s24  ;;  %1715 = vst.msk [vmem:[#allocation4 + $0x25] ss:$8 sm:$0xf] %vm7614_vm4, %v1713_v3  ;;  %v5658_v23 = vpack.c.bf16 %v2102_v22, %v2098_v21  ;;  %v2104_v24 = vld [vmem:[#allocation13 + $0x578] sm:$0xff]  ;;  %v2097_v3 = vld [vmem:[#allocation13 + $0x540] sm:$0xff]  ;;  %v2099_v35 = vld [vmem:[#allocation13 + $0x550] sm:$0xff] }
 0x29f   : > { %5657 = vmatpush1.bf16.msra.mxu0 %v5656_v8  ;;  %5729 = vmatpush1.bf16.msra.mxu1 %v5728_v10  ;;  %v5660_v34 = vpack.c.bf16 %v2101_v33, %v2097_v3  ;;  %v2103_v36 = vld [vmem:[#allocation13 + $0x570] sm:$0xff]  ;;  %v2110_v39 = vld [vmem:[#allocation13 + $0x5a8] sm:$0xff]  ;;  %v2108_v40 = vld [vmem:[#allocation13 + $0x598] sm:$0xff] }
 0x2a0   : > { %5659 = vmatprep.subr.bf16.mxu0 %v5658_v23  ;;  %v5732_v37 = vpack.c.bf16 %v2103_v36, %v2099_v35  ;;  %v2112_v42 = vld [vmem:[#allocation13 + $0x5b8] sm:$0xff]  ;;  %v2105_v43 = vld [vmem:[#allocation13 + $0x580] sm:$0xff]  ;;  %v2107_v46 = vld [vmem:[#allocation13 + $0x590] sm:$0xff] }
 0x2a1   : > { %v2109_v44 = vld [vmem:[#allocation13 + $0x5a0] sm:$0xff]  ;;  %v5734_v6 = vpack.c.bf16 %v2112_v42, %v2108_v40  ;;  %v2111_v47 = vld [vmem:[#allocation13 + $0x5b0] sm:$0xff]  ;;  %v2114_v51 = vld [vmem:[#allocation13 + $0x5c8] sm:$0xff] }
 0x2a2   : > { %1887 = vrot.lane.b32.xlu0 %v7660_v26, %s7172_s24  ;;  %v5664_v45 = vpack.c.bf16 %v2109_v44, %v2105_v43  ;;  %v5736_v49 = vpack.c.bf16 %v2111_v47, %v2107_v46  ;;  %v2118_v53 = vld [vmem:[#allocation13 + $0x5e8] sm:$0xff]  ;;  %v2116_v54 = vld [vmem:[#allocation13 + $0x5d8] sm:$0xff]  ;;  %v2113_v57 = vld [vmem:[#allocation13 + $0x5c0] sm:$0xff] }
 0x2a3   : > { %5661 = vmatpush1.bf16.msra.mxu0 %v5660_v34  ;;  %v5666_v55 = vpack.c.bf16 %v2118_v53, %v2114_v51  ;;  %v2120_v56 = vld [vmem:[#allocation13 + $0x5f8] sm:$0xff]  ;;  %v2117_v58 = vld [vmem:[#allocation13 + $0x5e0] sm:$0xff]  ;;  %v2115_v63 = vld [vmem:[#allocation13 + $0x5d0] sm:$0xff] }
 0x2a4   : > { %v5738_v60 = vpack.c.bf16 %v2120_v56, %v2116_v54  ;;  %v5668_v61 = vpack.c.bf16 %v2117_v58, %v2113_v57  ;;  %v2126_v8 = vld [vmem:[#allocation13 + $0x628] sm:$0xff]  ;;  %v2124_v9 = vld [vmem:[#allocation13 + $0x618] sm:$0xff]  ;;  %v2123_v21 = vld [vmem:[#allocation13 + $0x610] sm:$0xff] }
 0x2a5   : > { %v7664_v28 = vld [vmem:[#allocation4 + $0x28] sm:$0x3f]  ;;  %v7668_v29 = vld [vmem:[#allocation4 + $0x30] sm:$0x3f]  ;;  %v7672_v30 = vld [vmem:[#allocation4 + $0x20] sm:$0x3f] }
 0x2a6   : > { %1791 = vrot.lane.b32.xlu1 %v7664_v28, %s7172_s24  ;;  %v7676_v31 = vld [vmem:[#allocation4 + $0x38] sm:$0x3f]  ;;  %v2132_v34 = vld [vmem:[#allocation13 + $0x658] sm:$0xff]  ;;  %v2137_v51 = vld [vmem:[#allocation13 + $0x680] sm:$0xff] }
 0x2a7   : > { %v2127_v22 = vld [vmem:[#allocation13 + $0x630] sm:$0xff]  ;;  %v2130_v33 = vld [vmem:[#allocation13 + $0x648] sm:$0xff]  ;;  %v2141_v53 = vld [vmem:[#allocation13 + $0x6a0] sm:$0xff] }
 0x2a8   : > { %v5744_v23 = vpack.c.bf16 %v2127_v22, %v2123_v21  ;;  %v2135_v42 = vld [vmem:[#allocation13 + $0x670] sm:$0xff]  ;;  %v2138_v46 = vld [vmem:[#allocation13 + $0x688] sm:$0xff]  ;;  %v5680_v54 = vpack.c.bf16 %v2141_v53, %v2137_v51  ;;  %v2160_v21 = vld [vmem:[#allocation13 + $0x738] sm:$0xff] }
 0x2a9   : > { %v2142_v47 = vld [vmem:[#allocation13 + $0x6a8] sm:$0xff]  ;;  %v2143_v56 = vld [vmem:[#allocation13 + $0x6b0] sm:$0xff]  ;;  %v2153_v22 = vld [vmem:[#allocation13 + $0x700] sm:$0xff] }
 0x2aa   : > { %1846 = vrot.lane.b32.xlu1 %v7668_v29, %s7172_s24  ;;  %v2176_v51 = vld [vmem:[#allocation13 + $0x7b8] sm:$0xff]  ;;  %v2169_v53 = vld [vmem:[#allocation13 + $0x780] sm:$0xff] }
 0x2ae   : > { %1739 = vrot.lane.b32.xlu1 %v7672_v30, %s7172_s24 }
 0x2b2   : > { %1889 = vrot.lane.b32.xlu1 %v7676_v31, %s7172_s24 }
 0x308   : > { %v1790_v1 = vpop.permute.xlu0 %1789 }
 0x309   : > { %v1795_v7 = vmax.f32 %v7644_v52, %v1790_v1 }
 0x30b   : > { %v7681_v13 = vrot.slane %v1795_v7, 6  ;;  %v2122_v7 = vld [vmem:[#allocation13 + $0x608] sm:$0xff] }
 0x30c   : > { %v1845_v15 = vpop.permute.xlu0 %1844  ;;  %v5670_v10 = vpack.c.bf16 %v2126_v8, %v2122_v7 }
 0x30d   : > { %1822 = vrot.lane.b32.xlu0 %v7681_v13, %s7173_s2  ;;  %v1850_v16 = vmax.f32 %v7648_v20, %v1845_v15  ;;  %v5730_v20 = vpack.c.bf16 %v2104_v24, %v2100_v62  ;;  %v2128_v15 = vld [vmem:[#allocation13 + $0x638] sm:$0xff] }
 0x30f   : > { %v7688_v18 = vrot.slane %v1850_v16, 6  ;;  %5731 = vmatprep.subr.bf16.mxu1 %v5730_v20  ;;  %v2121_v16 = vld [vmem:[#allocation13 + $0x600] sm:$0xff]  ;;  %v2134_v20 = vld [vmem:[#allocation13 + $0x668] sm:$0xff] }
 0x310   : > { %v1738_v17 = vpop.permute.xlu0 %1737  ;;  %5733 = vmatpush1.bf16.msra.mxu1 %v5732_v37  ;;  %v5674_v36 = vpack.c.bf16 %v2134_v20, %v2130_v33  ;;  %v2136_v37 = vld [vmem:[#allocation13 + $0x678] sm:$0xff]  ;;  %v2159_v33 = vld [vmem:[#allocation13 + $0x730] sm:$0xff] }
 0x311   : > { %1832 = vrot.lane.b32.xlu0 %v7681_v13, %s7174_s4  ;;  %v1743_v52 = vmax.f32 %v7652_v14, %v1738_v17  ;;  %v2106_v14 = vld [vmem:[#allocation13 + $0x588] sm:$0xff]  ;;  %5735 = vmatprep.subr.bf16.mxu1 %v5734_v6  ;;  %v2125_v17 = vld [vmem:[#allocation13 + $0x620] sm:$0xff]  ;;  %v5746_v40 = vpack.c.bf16 %v2136_v37, %v2132_v34 }
 0x312   : > { %v5662_v41 = vpack.c.bf16 %v2110_v39, %v2106_v14  ;;  %v2129_v14 = vld [vmem:[#allocation13 + $0x640] sm:$0xff]  ;;  %v2162_v34 = vld [vmem:[#allocation13 + $0x748] sm:$0xff] }
 0x313   : > { %v7693_v38 = vrot.slane %v1743_v52, 6  ;;  %v5672_v52 = vpack.c.bf16 %v2125_v17, %v2121_v16  ;;  %v2133_v39 = vld [vmem:[#allocation13 + $0x660] sm:$0xff]  ;;  %v2154_v16 = vld [vmem:[#allocation13 + $0x708] sm:$0xff] }
 0x314   : > { %5663 = vmatprep.subr.bf16.mxu0 %v5662_v41  ;;  %5737 = vmatpush1.bf16.msra.mxu1 %v5736_v49  ;;  %v1888_v35 = vpop.permute.xlu0 %1887  ;;  %v5676_v41 = vpack.c.bf16 %v2133_v39, %v2129_v14  ;;  %v5678_v49 = vpack.c.bf16 %v2142_v47, %v2138_v46  ;;  %v2158_v17 = vld [vmem:[#allocation13 + $0x728] sm:$0xff]  ;;  %v2168_v39 = vld [vmem:[#allocation13 + $0x778] sm:$0xff] }
 0x315   : > { %1857 = vrot.lane.b32.xlu0 %v7688_v18, %s7175_s11  ;;  %5665 = vmatpush1.bf16.msra.mxu0 %v5664_v45  ;;  %v1893_v44 = vmax.f32 %v7660_v26, %v1888_v35  ;;  %v2166_v35 = vld [vmem:[#allocation13 + $0x768] sm:$0xff] }
 0x316   : > { %5667 = vmatprep.subr.bf16.mxu0 %v5666_v55  ;;  %5739 = vmatprep.subr.bf16.mxu1 %v5738_v60  ;;  %v2139_v55 = vld [vmem:[#allocation13 + $0x690] sm:$0xff]  ;;  %v2146_v60 = vld [vmem:[#allocation13 + $0x6c8] sm:$0xff]  ;;  %v5690_v14 = vpack.c.bf16 %v2166_v35, %v2162_v34 }
 0x317   : > { %v5752_v57 = vpack.c.bf16 %v2143_v56, %v2139_v55  ;;  %v7723_v58 = vrot.slane %v1893_v44, 6  ;;  %v2167_v44 = vld [vmem:[#allocation13 + $0x770] sm:$0xff]  ;;  %v2170_v47 = vld [vmem:[#allocation13 + $0x788] sm:$0xff] }
 0x318   : > { %v1792_v48 = vpop.permute.xlu1 %1791  ;;  %v2171_v56 = vld [vmem:[#allocation13 + $0x790] sm:$0xff]  ;;  %v2194_v34 = vld [vmem:[#allocation13 + $0x848] sm:$0xff] }
 0x319   : > { %1751 = vrot.lane.b32.xlu0 %v7693_v38, %s7175_s11  ;;  %v1796_v50 = vmax.f32 %v7664_v28, %v1792_v48  ;;  %v2119_v28 = vld [vmem:[#allocation13 + $0x5f0] sm:$0xff]  ;;  %5669 = vmatpush1.bf16.msra.mxu0 %v5668_v61  ;;  %v2140_v48 = vld [vmem:[#allocation13 + $0x698] sm:$0xff]  ;;  %v2150_v61 = vld [vmem:[#allocation13 + $0x6e8] sm:$0xff] }
 0x31a   : > { %v5740_v2 = vpack.c.bf16 %v2119_v28, %v2115_v63  ;;  %5671 = vmatprep.subr.bf16.mxu0 %v5670_v10  ;;  %v2148_v63 = vld [vmem:[#allocation13 + $0x6d8] sm:$0xff]  ;;  %v5682_v28 = vpack.c.bf16 %v2150_v61, %v2146_v60  ;;  %v2151_v10 = vld [vmem:[#allocation13 + $0x6f0] sm:$0xff]  ;;  %v2178_v61 = vld [vmem:[#allocation13 + $0x7c8] sm:$0xff] }
 0x31b   : > { %v1800_v59 = vrot.slane %v1796_v50, 6  ;;  %v2144_v50 = vld [vmem:[#allocation13 + $0x6b8] sm:$0xff] }
 0x31c   : > { %v1847_v1 = vpop.permute.xlu1 %1846  ;;  %5741 = vmatpush1.bf16.msra.mxu1 %v5740_v2  ;;  %v5750_v26 = vpack.c.bf16 %v2144_v50, %v2140_v48  ;;  %v2145_v2 = vld [vmem:[#allocation13 + $0x6c0] sm:$0xff]  ;;  %v2174_v48 = vld [vmem:[#allocation13 + $0x7a8] sm:$0xff] }
 0x31d   : > { %1865 = vrot.lane.b32.xlu0 %v7688_v18, %s7176_s16  ;;  %v1851_v4 = vmax.f32 %v7668_v29, %v1847_v1  ;;  %v7703_v5 = vsel %vm1747_vm6, %v7681_v13, %v1800_v59  ;;  %v5742_v29 = vpack.c.bf16 %v2128_v15, %v2124_v9  ;;  %5673 = vmatpush1.bf16.msra.mxu0 %v5672_v52  ;;  %v2152_v1 = vld [vmem:[#allocation13 + $0x6f8] sm:$0xff]  ;;  %v2147_v9 = vld [vmem:[#allocation13 + $0x6d0] sm:$0xff] }
 0x31e   : > { %1824 = vrot.lane.b32.xlu1 %v7703_v5, %s7173_s2  ;;  %5675 = vmatprep.subr.bf16.mxu0 %v5674_v36  ;;  %v5754_v7 = vpack.c.bf16 %v2152_v1, %v2148_v63  ;;  %v5756_v15 = vpack.c.bf16 %v2151_v10, %v2147_v9  ;;  %v5686_v52 = vpack.c.bf16 %v2158_v17, %v2154_v16  ;;  %v2164_v36 = vld [vmem:[#allocation13 + $0x758] sm:$0xff]  ;;  %v2182_v63 = vld [vmem:[#allocation13 + $0x7e8] sm:$0xff]  ;;  %v2179_v9 = vld [vmem:[#allocation13 + $0x7d0] sm:$0xff] }
 0x31f   : > { %v1855_v24 = vrot.slane %v1851_v4, 6  ;;  %5743 = vmatprep.subr.bf16.mxu1 %v5742_v29  ;;  %v2149_v4 = vld [vmem:[#allocation13 + $0x6e0] sm:$0xff]  ;;  %v2156_v29 = vld [vmem:[#allocation13 + $0x718] sm:$0xff]  ;;  %v5694_v50 = vpack.c.bf16 %v2174_v48, %v2170_v47  ;;  %v5698_v1 = vpack.c.bf16 %v2182_v63, %v2178_v61  ;;  %v2183_v10 = vld [vmem:[#allocation13 + $0x7f0] sm:$0xff] }
 0x320   : > { %v1740_v62 = vpop.permute.xlu1 %1739  ;;  %5745 = vmatpush1.bf16.msra.mxu1 %v5744_v23  ;;  %v5684_v8 = vpack.c.bf16 %v2149_v4, %v2145_v2  ;;  %v5758_v23 = vpack.c.bf16 %v2160_v21, %v2156_v29  ;;  %v2184_v2 = vld [vmem:[#allocation13 + $0x7f8] sm:$0xff]  ;;  %v2177_v4 = vld [vmem:[#allocation13 + $0x7c0] sm:$0xff]  ;;  %v2186_v17 = vld [vmem:[#allocation13 + $0x808] sm:$0xff] }
 0x321   : > { %1761 = vrot.lane.b32.xlu0 %v7693_v38, %s7176_s16  ;;  %v1744_v3 = vmax.f32 %v7672_v30, %v1740_v62  ;;  %v2131_v30 = vld [vmem:[#allocation13 + $0x650] sm:$0xff]  ;;  %v7717_v45 = vsel %vm1747_vm6, %v7688_v18, %v1855_v24  ;;  %5747 = vmatprep.subr.bf16.mxu1 %v5746_v40  ;;  %v2157_v62 = vld [vmem:[#allocation13 + $0x720] sm:$0xff]  ;;  %v2190_v29 = vld [vmem:[#allocation13 + $0x828] sm:$0xff] }
 0x322   : > { %1834 = vrot.lane.b32.xlu1 %v7703_v5, %s7174_s4  ;;  %v5748_v43 = vpack.c.bf16 %v2135_v42, %v2131_v30  ;;  %5677 = vmatpush1.bf16.msra.mxu0 %v5676_v41  ;;  %v5688_v24 = vpack.c.bf16 %v2157_v62, %v2153_v22  ;;  %v2161_v40 = vld [vmem:[#allocation13 + $0x740] sm:$0xff]  ;;  %v5762_v30 = vpack.c.bf16 %v2168_v39, %v2164_v36  ;;  %v2192_v22 = vld [vmem:[#allocation13 + $0x838] sm:$0xff] }
 0x323   : > { %v1749_v6 = vrot.slane %v1744_v3, 6  ;;  %5679 = vmatprep.subr.bf16.mxu0 %v5678_v49  ;;  %v2155_v3 = vld [vmem:[#allocation13 + $0x710] sm:$0xff]  ;;  %v2165_v41 = vld [vmem:[#allocation13 + $0x760] sm:$0xff]  ;;  %v2172_v49 = vld [vmem:[#allocation13 + $0x798] sm:$0xff]  ;;  %v5702_v21 = vpack.c.bf16 %v2190_v29, %v2186_v17 }
 0x324   : > { %5749 = vmatpush1.bf16.msra.mxu1 %v5748_v43  ;;  %v5760_v20 = vpack.c.bf16 %v2159_v33, %v2155_v3  ;;  %v1890_v37 = vpop.permute.xlu1 %1889  ;;  %v5692_v42 = vpack.c.bf16 %v2165_v41, %v2161_v40  ;;  %v2163_v43 = vld [vmem:[#allocation13 + $0x750] sm:$0xff]  ;;  %v2185_v62 = vld [vmem:[#allocation13 + $0x800] sm:$0xff]  ;;  %v2196_v36 = vld [vmem:[#allocation13 + $0x858] sm:$0xff] }
 0x325   : > { %1877 = vrot.lane.b32.xlu0 %v7688_v18, %s7172_s24  ;;  %v7727_v59 = vsel %vm1747_vm6, %v7693_v38, %v1749_v6  ;;  %5751 = vmatprep.subr.bf16.mxu1 %v5750_v26  ;;  %v5764_v6 = vpack.c.bf16 %v2167_v44, %v2163_v43  ;;  %v1894_v46 = vmax.f32 %v7676_v31, %v1890_v37  ;;  %v2173_v26 = vld [vmem:[#allocation13 + $0x7a0] sm:$0xff]  ;;  %v2175_v31 = vld [vmem:[#allocation13 + $0x7b0] sm:$0xff]  ;;  %v2200_v37 = vld [vmem:[#allocation13 + $0x878] sm:$0xff] }
 0x326   : > { %1859 = vrot.lane.b32.xlu1 %v7717_v45, %s7175_s11  ;;  %5681 = vmatpush1.bf16.msra.mxu0 %v5680_v54  ;;  %v5766_v54 = vpack.c.bf16 %v2176_v51, %v2172_v49  ;;  %v5696_v55 = vpack.c.bf16 %v2173_v26, %v2169_v53  ;;  %v2187_v33 = vld [vmem:[#allocation13 + $0x810] sm:$0xff]  ;;  %v5778_v39 = vpack.c.bf16 %v2200_v37, %v2196_v36  ;;  %v2193_v40 = vld [vmem:[#allocation13 + $0x840] sm:$0xff]  ;;  %v2204_v47 = vld [vmem:[#allocation13 + $0x898] sm:$0xff] }
 0x327   : > { %5683 = vmatprep.subr.bf16.mxu0 %v5682_v28  ;;  %v1898_v60 = vrot.slane %v1894_v46, 6  ;;  %v2180_v28 = vld [vmem:[#allocation13 + $0x7d8] sm:$0xff]  ;;  %v2197_v41 = vld [vmem:[#allocation13 + $0x860] sm:$0xff]  ;;  %v2199_v43 = vld [vmem:[#allocation13 + $0x870] sm:$0xff] }
 0x328   : > { %5753 = vmatpush1.bf16.msra.mxu1 %v5752_v57  ;;  %v5768_v57 = vpack.c.bf16 %v2175_v31, %v2171_v56  ;;  %v2206_v46 = vld [vmem:[#allocation13 + $0x8a8] sm:$0xff]  ;;  %v2208_v49 = vld [vmem:[#allocation13 + $0x8b8] sm:$0xff]  ;;  %v2201_v29 = vld [vmem:[#allocation13 + $0x880] sm:$0xff] }
 0x329   : > { %1777 = vrot.lane.b32.xlu0 %v7693_v38, %s7172_s24  ;;  %5755 = vmatprep.subr.bf16.mxu1 %v5754_v7  ;;  %v5770_v7 = vpack.c.bf16 %v2184_v2, %v2180_v28  ;;  %v1899_v16 = vsel %vm1747_vm6, %v7723_v58, %v1898_v60  ;;  %vm1818_vm6 = vcmask 1048450  }
 0x32a   : > { %1753 = vrot.lane.b32.xlu1 %v7727_v59, %s7175_s11  ;;  %5685 = vmatpush1.bf16.msra.mxu0 %v5684_v8 }
 0x32b   : > { %5687 = vmatprep.subr.bf16.mxu0 %v5686_v52  ;;  %v2188_v52 = vld [vmem:[#allocation13 + $0x818] sm:$0xff] }
 0x32c   : > { %5757 = vmatpush1.bf16.msra.mxu1 %v5756_v15  ;;  %v5772_v15 = vpack.c.bf16 %v2183_v10, %v2179_v9 }
 0x32d   : > { %1900 = vrot.lane.b32.xlu0 %v7723_v58, %s7177_s14  ;;  %5759 = vmatprep.subr.bf16.mxu1 %v5758_v23  ;;  %v2189_v23 = vld [vmem:[#allocation13 + $0x820] sm:$0xff] }
 0x32e   : > { %1867 = vrot.lane.b32.xlu1 %v7717_v45, %s7176_s16  ;;  %5689 = vmatpush1.bf16.msra.mxu0 %v5688_v24  ;;  %v5774_v24 = vpack.c.bf16 %v2192_v22, %v2188_v52  ;;  %v5704_v3 = vpack.c.bf16 %v2189_v23, %v2185_v62  ;;  %v2205_v52 = vld [vmem:[#allocation13 + $0x8a0] sm:$0xff]  ;;  %v2203_v22 = vld [vmem:[#allocation13 + $0x890] sm:$0xff] }
 0x32f   : > { %5691 = vmatprep.subr.bf16.mxu0 %v5690_v14  ;;  %v2207_v62 = vld [vmem:[#allocation13 + $0x8b0] sm:$0xff] }
 0x330   : > { %5761 = vmatpush1.bf16.msra.mxu1 %v5760_v20  ;;  %v2191_v20 = vld [vmem:[#allocation13 + $0x830] sm:$0xff] }
 0x331   : > { %1802 = vrot.lane.b32.xlu0 %v7681_v13, %s7177_s14  ;;  %5763 = vmatprep.subr.bf16.mxu1 %v5762_v30  ;;  %v5776_v35 = vpack.c.bf16 %v2191_v20, %v2187_v33  ;;  %v5708_v30 = vpack.c.bf16 %v2197_v41, %v2193_v40  ;;  %v2068_v33 = vld [vmem:[#allocation5 + $0x10] sm:$0xfe] }
 0x332   : > { %1763 = vrot.lane.b32.xlu1 %v7727_v59, %s7176_s16  ;;  %5693 = vmatpush1.bf16.msra.mxu0 %v5692_v42  ;;  %v2195_v42 = vld [vmem:[#allocation13 + $0x850] sm:$0xff]  ;;  %v2209_v40 = vld [vmem:[#allocation13 + $0x8c0] sm:$0xff] }
 0x333   : > { %5695 = vmatprep.subr.bf16.mxu0 %v5694_v50  ;;  %v5780_v44 = vpack.c.bf16 %v2199_v43, %v2195_v42  ;;  %v5782_v50 = vpack.c.bf16 %v2208_v49, %v2204_v47  ;;  %v2213_v41 = vld [vmem:[#allocation13 + $0x8e0] sm:$0xff]  ;;  %v2215_v42 = vld [vmem:[#allocation13 + $0x8f0] sm:$0xff]  ;;  %v1927_v47 = vld [vmem:[#allocation13 + $0x28] sm:$0xff] }
 0x334   : > { %5765 = vmatpush1.bf16.msra.mxu1 %v5764_v6  ;;  %v2202_v6 = vld [vmem:[#allocation13 + $0x888] sm:$0xff]  ;;  %v1929_v49 = vld [vmem:[#allocation13 + $0x38] sm:$0xff] }
 0x335   : > { %1908 = vrot.lane.b32.xlu0 %v7723_v58, %s7178_s26  ;;  %5767 = vmatprep.subr.bf16.mxu1 %v5766_v54  ;;  %v2198_v58 = vld [vmem:[#allocation13 + $0x868] sm:$0xff]  ;;  %v5710_v48 = vpack.c.bf16 %v2206_v46, %v2202_v6 }
 0x336   : > { %1879 = vrot.lane.b32.xlu1 %v7717_v45, %s7172_s24  ;;  %5697 = vmatpush1.bf16.msra.mxu0 %v5696_v55  ;;  %v5706_v14 = vpack.c.bf16 %v2198_v58, %v2194_v34  ;;  %v2212_v34 = vld [vmem:[#allocation13 + $0x8d8] sm:$0xff]  ;;  %v1923_v46 = vld [vmem:[#allocation13 + $0x8] sm:$0xff] }
 0x337   : > { %5699 = vmatprep.subr.bf16.mxu0 %v5698_v1  ;;  %v2071_v58 = vld [vmem:[#allocation5 + $0x28] sm:$0x7f] }
 0x338   : > { %5769 = vmatpush1.bf16.msra.mxu1 %v5768_v57 }
 0x339   : > { %1812 = vrot.lane.b32.xlu0 %v7681_v13, %s7178_s26  ;;  %v2181_v13 = vld [vmem:[#allocation13 + $0x7e0] sm:$0xff]  ;;  %5771 = vmatprep.subr.bf16.mxu1 %v5770_v7 }
 0x33a   : > { %1779 = vrot.lane.b32.xlu1 %v7727_v59, %s7172_s24  ;;  %v5700_v8 = vpack.c.bf16 %v2181_v13, %v2177_v4  ;;  %s7080_s24 = scalar_lea.vmem %s8066_s22, 16 }
 0x33b   : > { %p7081_p4 = scmp.ne.s32.totalorder %s8066_s22, %s7080_s24 }
 0x33c   : > { %5701 = vmatpush1.bf16.msra.mxu0 %v5700_v8  ;;  %5773 = vmatpush1.bf16.msra.mxu1 %v5772_v15 }
 0x33d   : > { %5703 = vmatprep.subr.bf16.mxu0 %v5702_v21  ;;  %5775 = vmatprep.subr.bf16.mxu1 %v5774_v24  ;;  %v2210_v24 = vld [vmem:[#allocation13 + $0x8c8] sm:$0xff]  ;;  %p7082_p8 = pnand %p7081_p4, %p8146_p7 }
 0x33e   : > { %1902 = vrot.lane.b32.xlu1 %v1899_v16, %s7177_s14 }
 0x33f   : > { %p7083_p11 = pneg %p7082_p8 }
 0x340   : > { %5705 = vmatpush1.bf16.msra.mxu0 %v5704_v3  ;;  %5777 = vmatpush1.bf16.msra.mxu1 %v5776_v35  ;;  %v2214_v3 = vld [vmem:[#allocation13 + $0x8e8] sm:$0xff]  ;;  %v2216_v35 = vld [vmem:[#allocation13 + $0x8f8] sm:$0xff] }
 0x341   : > { %5707 = vmatprep.subr.bf16.mxu0 %v5706_v14  ;;  %5779 = vmatprep.subr.bf16.mxu1 %v5778_v39  ;;  %v5712_v14 = vpack.c.bf16 %v2205_v52, %v2201_v29  ;;  %v5784_v39 = vpack.c.bf16 %v2207_v62, %v2203_v22  ;;  %v5786_v6 = vpack.c.bf16 %v2216_v35, %v2212_v34  ;;  %v1938_v29 = vld [vmem:[#allocation13 + $0x80] sm:$0xff]  ;;  %v1944_v22 = vld [vmem:[#allocation13 + $0xb0] sm:$0xff]  ;;  %v1947_v62 = vld [vmem:[#allocation13 + $0xc8] sm:$0xff] }
 0x342   : > { %1804 = vrot.lane.b32.xlu1 %v7703_v5, %s7177_s14  ;;  %v1942_v52 = vld [vmem:[#allocation13 + $0xa0] sm:$0xff] }
 0x343   : > { %v5800_v35 = vpack.c.bf16 %v1942_v52, %v1938_v29  ;;  %v1981_v29 = vld [vmem:[#allocation13 + $0x1d8] sm:$0xff] }
 0x344   : > { %5709 = vmatpush1.bf16.msra.mxu0 %v5708_v30  ;;  %5781 = vmatpush1.bf16.msra.mxu1 %v5780_v44  ;;  %v2211_v30 = vld [vmem:[#allocation13 + $0x8d0] sm:$0xff]  ;;  %v5714_v44 = vpack.c.bf16 %v2214_v3, %v2210_v24  ;;  %v1951_v3 = vld [vmem:[#allocation13 + $0xe8] sm:$0xff]  ;;  %v1985_v52 = vld [vmem:[#allocation13 + $0x1f8] sm:$0xff] }
 0x345   : > { %5711 = vmatprep.subr.bf16.mxu0 %v5710_v48  ;;  %5783 = vmatprep.subr.bf16.mxu1 %v5782_v50  ;;  %v1925_v48 = vld [vmem:[#allocation13 + $0x18] sm:$0xff]  ;;  %v2230_v50 = vrot.slane %v2068_v33, 1 }
 0x346   : > { %1910 = vrot.lane.b32.xlu1 %v1899_v16, %s7178_s26  ;;  %v1949_v33 = vld [vmem:[#allocation13 + $0xd8] sm:$0xff] }
 0x34a   : > { %1814 = vrot.lane.b32.xlu1 %v7703_v5, %s7178_s26 }
 0x37f   : > { %v1823_v51 = vpop.permute.xlu0 %1822 }
 0x380   : > { %1829 = vst.msk [vmem:[#allocation5 + $0x8] sm:$0xfc] %vm1828_vm7, %v1823_v51  ;;  %vm1785_vm7 = vcmask 786048   ;;  %v2231_v51 = vrot.slane %v2071_v58, 1 }
 0x383   : > { %v1833_v53 = vpop.permute.xlu0 %1832 }
 0x384   : > { %1839 = vst.msk [vmem:[#allocation5 + $0x8] sm:$0xfc] %vm1838_vm8, %v1833_v53  ;;  %vm1810_vm8 = vcmask 917248   ;;  %v5716_v53 = vpack.c.bf16 %v2213_v41, %v2209_v40  ;;  %v1948_v40 = vld [vmem:[#allocation13 + $0xd0] sm:$0xff] }
 0x385   : > { %v1952_v41 = vld [vmem:[#allocation13 + $0xf0] sm:$0xff] }
 0x387   : > { %v1858_v26 = vpop.permute.xlu0 %1857 }
 0x388   : > { %1863 = vst.msk [vmem:[#allocation5 + $0x8] sm:$0xfc] %vm1757_vm9, %v1858_v26  ;;  %v5788_v26 = vpack.c.bf16 %v2215_v42, %v2211_v30  ;;  %v1955_v30 = vld [vmem:[#allocation13 + $0x108] sm:$0xff] }
 0x389   : > { %v1959_v42 = vld [vmem:[#allocation13 + $0x128] sm:$0xff] }
 0x38b   : > { %v1752_v54 = vpop.permute.xlu0 %1751 }
 0x38c   : > { %1758 = vst.msk [vmem:[#allocation5] sm:$0xfc] %vm1757_vm9, %v1752_v54  ;;  %vm1820_vm9 = vcmask 1048448   ;;  %v1922_v54 = vld [vmem:[#allocation13] sm:$0xff] }
 0x38f   : > { %v1866_v55 = vpop.permute.xlu0 %1865 }
 0x390   : > { %1871 = vst.msk [vmem:[#allocation5 + $0x8] sm:$0xfc] %vm1767_vm10, %v1866_v55  ;;  %v1825_v56 = vpop.permute.xlu1 %1824  ;;  %v1926_v55 = vld [vmem:[#allocation13 + $0x20] sm:$0xff] }
 0x391   : > { %1875 = vst.msk [vmem:[#allocation5 + $0x8] sm:$0xfc] %vm1773_vm11, %v7688_v18 }
 0x392   : > { %1831 = vst.msk [vmem:[#allocation5 + $0x20] sm:$0xff] %vm1830_vm12, %v1825_v56  ;;  %v1924_v56 = vld [vmem:[#allocation13 + $0x10] sm:$0xff]  ;;  %vm1725_vm12 = vcmask 254976  }
 0x393   : > { %v1762_v5 = vpop.permute.xlu0 %1761  ;;  %1726 = vst.msk [vmem:[#allocation5 + $0x40] sm:$0x3] %vm1725_vm12, %v7170_v0 }
 0x394   : > { %1768 = vst.msk [vmem:[#allocation5] sm:$0xfc] %vm1767_vm10, %v1762_v5  ;;  %v1835_v31 = vpop.permute.xlu1 %1834  ;;  %vm2223_vm10 = vcmask 1046528   ;;  %v1928_v5 = vld [vmem:[#allocation13 + $0x30] sm:$0xff] }
 0x395   : > { %1774 = vst.msk [vmem:[#allocation5] sm:$0xfc] %vm1773_vm11, %v7693_v38  ;;  %vm3020_vm11 = vcmask 1045504  }
 0x396   : > { %1841 = vst.msk [vmem:[#allocation5 + $0x20] sm:$0xff] %vm1840_vm13, %v1835_v31  ;;  %v5790_v31 = vpack.c.bf16 %v1927_v47, %v1923_v46  ;;  %v5876_v46 = vpack.c.bf16 %v1952_v41, %v1948_v40  ;;  %v1954_v47 = vld [vmem:[#allocation13 + $0x100] sm:$0xff]  ;;  %vm3517_vm13 = vcmask 1044480  }
 0x397   : > { %v1878_v57 = vpop.permute.xlu0 %1877  ;;  %v1990_v40 = vld [vmem:[#allocation13 + $0x220] sm:$0xff] }
 0x398   : > { %1883 = vst.msk [vmem:[#allocation5 + $0x8] sm:$0xfc] %vm1783_vm14, %v1878_v57  ;;  %v1860_v60 = vpop.permute.xlu1 %1859  ;;  %v5862_v57 = vpack.c.bf16 %v1929_v49, %v1925_v48  ;;  %v1958_v48 = vld [vmem:[#allocation13 + $0x120] sm:$0xff]  ;;  %v5806_v49 = vpack.c.bf16 %v1959_v42, %v1955_v30  ;;  %v1988_v42 = vld [vmem:[#allocation13 + $0x210] sm:$0xff] }
 0x399   : > { %1864 = vst.msk [vmem:[#allocation5 + $0x20] sm:$0xff] %vm1759_vm15, %v1860_v60  ;;  %v1931_v60 = vld [vmem:[#allocation13 + $0x48] sm:$0xff] }
 0x39b   : > { %v1778_v61 = vpop.permute.xlu0 %1777 }
 0x39c   : > { %1784 = vst.msk [vmem:[#allocation5] sm:$0xfc] %vm1783_vm14, %v1778_v61  ;;  %v1754_v63 = vpop.permute.xlu1 %1753  ;;  %v1935_v61 = vld [vmem:[#allocation13 + $0x68] sm:$0xff]  ;;  %vm4014_vm14 = vcmask 1043456  }
 0x39d   : > { %1760 = vst.msk [vmem:[#allocation5 + $0x18] sm:$0xff] %vm1759_vm15, %v1754_v63  ;;  %v1933_v63 = vld [vmem:[#allocation13 + $0x58] sm:$0xff]  ;;  %vm4481_vm15 = vcmask 784896  }
 0x39f   : > { %v1901_v18 = vpop.permute.xlu0 %1900 }
 0x3a0   : > { %1906 = vst.msk [vmem:[#allocation5 + $0x8] sm:$0xfc] %vm1808_vm1, %v1901_v18  ;;  %v1868_v28 = vpop.permute.xlu1 %1867  ;;  %v1937_v18 = vld [vmem:[#allocation13 + $0x78] sm:$0xff] }
 0x3a1   : > { %1872 = vst.msk [vmem:[#allocation5 + $0x20] sm:$0xff] %vm1769_vm2, %v1868_v28  ;;  %v2232_v28 = vsel %vm2223_vm10, %v2230_v50, %v2231_v51 }
 0x3a2   : > { %1876 = vst.msk [vmem:[#allocation5 + $0x20] sm:$0xff] %vm1775_vm5, %v7717_v45 }
 0x3a3   : > { %v1803_v1 = vpop.permute.xlu0 %1802 }
 0x3a4   : > { %1809 = vst.msk [vmem:[#allocation5] sm:$0xfc] %vm1808_vm1, %v1803_v1  ;;  %v1764_v38 = vpop.permute.xlu1 %1763  ;;  %v5792_v1 = vpack.c.bf16 %v1926_v55, %v1922_v54  ;;  %v1967_v54 = vld [vmem:[#allocation13 + $0x168] sm:$0xff]  ;;  %v1965_v55 = vld [vmem:[#allocation13 + $0x158] sm:$0xff]  ;;  %vm4486_vm1 = vcmask 1047296  }
 0x3a5   : > { %1770 = vst.msk [vmem:[#allocation5 + $0x18] sm:$0xff] %vm1769_vm2, %v1764_v38  ;;  %v5864_v38 = vpack.c.bf16 %v1928_v5, %v1924_v56  ;;  %v1969_v56 = vld [vmem:[#allocation13 + $0x178] sm:$0xff]  ;;  %v5808_v5 = vpack.c.bf16 %v1958_v48, %v1954_v47  ;;  %vm4579_vm2 = vcmask 785408  }
 0x3a6   : > { %1776 = vst.msk [vmem:[#allocation5 + $0x18] sm:$0xff] %vm1775_vm5, %v7727_v59  ;;  %v2001_v47 = vld [vmem:[#allocation13 + $0x278] sm:$0xff] }
 0x3a7   : > { %v1909_v2 = vpop.permute.xlu0 %1908 }
 0x3a8   : > { %1914 = vst.msk [vmem:[#allocation5 + $0x8] sm:$0xfc] %vm1818_vm6, %v1909_v2  ;;  %v1880_v4 = vpop.permute.xlu1 %1879  ;;  %v1930_v2 = vld [vmem:[#allocation13 + $0x40] sm:$0xff] }
 0x3a9   : > { %1884 = vst.msk [vmem:[#allocation5 + $0x20] sm:$0xff] %vm1785_vm7, %v1880_v4  ;;  %v1934_v4 = vld [vmem:[#allocation13 + $0x60] sm:$0xff] }
 0x3ab   : > { %v1813_v13 = vpop.permute.xlu0 %1812 }
 0x3ac   : > { %1819 = vst.msk [vmem:[#allocation5] sm:$0xfc] %vm1818_vm6, %v1813_v13  ;;  %v1780_v7 = vpop.permute.xlu1 %1779  ;;  %v1932_v13 = vld [vmem:[#allocation13 + $0x50] sm:$0xff] }
 0x3ad   : > { %1786 = vst.msk [vmem:[#allocation5 + $0x18] sm:$0xff] %vm1785_vm7, %v1780_v7  ;;  %v1936_v7 = vld [vmem:[#allocation13 + $0x70] sm:$0xff] }
 0x3af   : > { %v2067_v15 = vld [vmem:[#allocation5 + $0x8] sm:$0xfe] }
 0x3b0   : > { %v1903_v8 = vpop.permute.xlu1 %1902  ;;  %v2227_v59 = vrot.slane %v2067_v15, 1  ;;  %v1941_v15 = vld [vmem:[#allocation13 + $0x98] sm:$0xff] }
 0x3b1   : > { %1907 = vst.msk [vmem:[#allocation5 + $0x20] sm:$0xff] %vm1810_vm8, %v1903_v8  ;;  %v5794_v8 = vpack.c.bf16 %v1935_v61, %v1931_v60  ;;  %v1917_v34 = vld [vmem:[#allocation5 + $0x8] sm:$0xff] }
 0x3b2   : > { %v1966_v60 = vld [vmem:[#allocation13 + $0x160] sm:$0xff] }
 0x3b3   : > { %v2066_v21 = vld [vmem:[#allocation5] sm:$0xfe] }
 0x3b4   : > { %v1805_v9 = vpop.permute.xlu1 %1804  ;;  %v2224_v36 = vrot.slane %v2066_v21, 1  ;;  %v1940_v21 = vld [vmem:[#allocation13 + $0x90] sm:$0xff] }
 0x3b5   : > { %1811 = vst.msk [vmem:[#allocation5 + $0x18] sm:$0xff] %vm1810_vm8, %v1805_v9  ;;  %v5866_v9 = vpack.c.bf16 %v1937_v18, %v1933_v63  ;;  %v5872_v58 = vpack.c.bf16 %v1944_v22, %v1940_v21  ;;  %v5882_v63 = vpack.c.bf16 %v1969_v56, %v1965_v55  ;;  %v1964_v18 = vld [vmem:[#allocation13 + $0x150] sm:$0xff]  ;;  %v2003_v56 = vld [vmem:[#allocation13 + $0x288] sm:$0xff] }
 0x3b6   : > { %v2000_v55 = vld [vmem:[#allocation13 + $0x270] sm:$0xff] }
 0x3b8   : > { %v1911_v45 = vpop.permute.xlu1 %1910 }
 0x3b9   : > { %1915 = vst.msk [vmem:[#allocation5 + $0x20] sm:$0xff] %vm1820_vm9, %v1911_v45  ;;  %v1939_v45 = vld [vmem:[#allocation13 + $0x88] sm:$0xff] }
 0x3bc   : > { %v1815_v10 = vpop.permute.xlu1 %1814 }
 0x3bd   : > { %1821 = vst.msk [vmem:[#allocation5 + $0x18] sm:$0xff] %vm1820_vm9, %v1815_v10  ;;  %v1943_v10 = vld [vmem:[#allocation13 + $0xa8] sm:$0xff] }
 0x3c0   : > { %v2070_v16 = vld [vmem:[#allocation5 + $0x20] sm:$0x7f] }
 0x3c1   : > { %v2228_v17 = vrot.slane %v2070_v16, 1  ;;  %v1945_v16 = vld [vmem:[#allocation13 + $0xb8] sm:$0xff] }
 0x3c2   : > { %v5870_v24 = vpack.c.bf16 %v1945_v16, %v1941_v15  ;;  %v1972_v15 = vld [vmem:[#allocation13 + $0x190] sm:$0xff] }
 0x3c3   : > { %v2229_v23 = vsel %vm2223_vm10, %v2227_v59, %v2228_v17  ;;  %v5796_v59 = vpack.c.bf16 %v1934_v4, %v1930_v2  ;;  %v1973_v2 = vld [vmem:[#allocation13 + $0x198] sm:$0xff]  ;;  %v1976_v16 = vld [vmem:[#allocation13 + $0x1b0] sm:$0xff] }
 0x3c4   : > { %2305 = vmatprep.mubr.f32.mxu0 %v2229_v23  ;;  %2459 = vmatprep.mubr.f32.mxu1 %v2229_v23  ;;  %v2069_v20 = vld [vmem:[#allocation5 + $0x18] sm:$0x7f]  ;;  %v5798_v23 = vpack.c.bf16 %v1943_v10, %v1939_v45  ;;  %v1977_v4 = vld [vmem:[#allocation13 + $0x1b8] sm:$0xff]  ;;  %v5888_v22 = vpack.c.bf16 %v1976_v16, %v1972_v15  ;;  %v2014_v15 = vld [vmem:[#allocation13 + $0x2e0] sm:$0xff] }
 0x3c5   : > { %v2225_v37 = vrot.slane %v2069_v20, 1  ;;  %v1953_v20 = vld [vmem:[#allocation13 + $0xf8] sm:$0xff]  ;;  %v5886_v10 = vpack.c.bf16 %v1977_v4, %v1973_v2  ;;  %v2008_v2 = vld [vmem:[#allocation13 + $0x2b0] sm:$0xff]  ;;  %v2011_v4 = vld [vmem:[#allocation13 + $0x2c8] sm:$0xff] }
 0x3c7   : > { %v2226_v43 = vsel %vm2223_vm10, %v2224_v36, %v2225_v37  ;;  %v1946_v36 = vld [vmem:[#allocation13 + $0xc0] sm:$0xff] }
 0x3c8   : > { %2306 = vmatmul.mubr.f32.vlgmr.msra.gmra.mrb[8].mxu0 %v2226_v43  ;;  %2460 = vmatmul.mubr.f32.vlgmr.msra.gmra.mrb[16].mxu1 %v2226_v43  ;;  %v1957_v43 = vld [vmem:[#allocation13 + $0x118] sm:$0xff] }
 0x3c9   : > { %5713 = vmatpush1.bf16.msra.mxu0 %v5712_v14  ;;  %5785 = vmatpush1.bf16.msra.mxu1 %v5784_v39  ;;  %v5802_v14 = vpack.c.bf16 %v1951_v3, %v1947_v62  ;;  %v5874_v39 = vpack.c.bf16 %v1953_v20, %v1949_v33  ;;  %v1978_v62 = vld [vmem:[#allocation13 + $0x1c0] sm:$0xff]  ;;  %v5890_v3 = vpack.c.bf16 %v1985_v52, %v1981_v29  ;;  %v1980_v33 = vld [vmem:[#allocation13 + $0x1d0] sm:$0xff]  ;;  %v2019_v52 = vld [vmem:[#allocation13 + $0x308] sm:$0xff] }
 0x3ca   : > { %2311 = vmatprep.mubr.f32.mxu0 %v2228_v17  ;;  %2465 = vmatprep.mubr.f32.mxu1 %v2228_v17  ;;  %v5868_v17 = vpack.c.bf16 %v1936_v7, %v1932_v13  ;;  %v1984_v20 = vld [vmem:[#allocation13 + $0x1f0] sm:$0xff] }
 0x3cb   : > { %5715 = vmatprep.subr.bf16.mxu0 %v5714_v44  ;;  %5787 = vmatprep.subr.bf16.mxu1 %v5786_v6  ;;  %v1961_v44 = vld [vmem:[#allocation13 + $0x138] sm:$0xff]  ;;  %v2016_v29 = vld [vmem:[#allocation13 + $0x2f0] sm:$0xff] }
 0x3cc   : > { %2312 = vmatmul.mubr.f32.gmra.mrb[10].mxu0 %v2225_v37  ;;  %2466 = vmatmul.mubr.f32.gmra.mrb[18].mxu1 %v2225_v37  ;;  %v1950_v37 = vld [vmem:[#allocation13 + $0xe0] sm:$0xff]  ;;  %v5878_v50 = vpack.c.bf16 %v1961_v44, %v1957_v43  ;;  %v1992_v43 = vld [vmem:[#allocation13 + $0x230] sm:$0xff]  ;;  %v1995_v44 = vld [vmem:[#allocation13 + $0x248] sm:$0xff] }
 0x3cd   : > { %5717 = vmatpush1.bf16.msra.mxu0 %v5716_v53  ;;  %5789 = vmatpush1.bf16.msra.mxu1 %v5788_v26  ;;  %v5804_v6 = vpack.c.bf16 %v1950_v37, %v1946_v36  ;;  %v1960_v53 = vld [vmem:[#allocation13 + $0x130] sm:$0xff]  ;;  %v1963_v26 = vld [vmem:[#allocation13 + $0x148] sm:$0xff]  ;;  %v1993_v36 = vld [vmem:[#allocation13 + $0x238] sm:$0xff] }
 0x3ce   : > { %2382 = vmatprep.mubr.f32.mxu0 %v7170_v0  ;;  %2536 = vmatprep.mubr.f32.mxu1 %v7170_v0  ;;  %v5810_v61 = vpack.c.bf16 %v1967_v54, %v1963_v26  ;;  %v1996_v54 = vld [vmem:[#allocation13 + $0x250] sm:$0xff] }
 0x3cf   : > { %5791 = vmatprep.subr.bf16.mxu0 %v5790_v31  ;;  %5863 = vmatprep.subr.bf16.mxu1 %v5862_v57  ;;  %v1962_v57 = vld [vmem:[#allocation13 + $0x140] sm:$0xff] }
 0x3d0   : > { %5528 = vmatmul.mubr.msk.f32.vlgmr.msra.gmra.mrb[8].mxu0 %vm398_vm0, %v2232_v28  ;;  %5530 = vmatmul.mubr.msk.f32.vlgmr.msra.gmra.mrb[16].mxu1 %vm398_vm0, %v2232_v28  ;;  %v1968_v28 = vld [vmem:[#allocation13 + $0x170] sm:$0xff]  ;;  %v5812_v13 = vpack.c.bf16 %v1966_v60, %v1962_v57  ;;  %v2009_v57 = vld [vmem:[#allocation13 + $0x2b8] sm:$0xff] }
 0x3d1   : > { %5793 = vmatpush1.bf16.msra.mxu0 %v5792_v1  ;;  %5865 = vmatpush1.bf16.msra.mxu1 %v5864_v38  ;;  %v1971_v1 = vld [vmem:[#allocation13 + $0x188] sm:$0xff]  ;;  %v5884_v7 = vpack.c.bf16 %v1968_v28, %v1964_v18  ;;  %v2006_v18 = vld [vmem:[#allocation13 + $0x2a0] sm:$0xff] }
 0x3d2   : > { %2388 = vmatprep.mubr.f32.mxu0 %v7170_v0  ;;  %2542 = vmatprep.mubr.f32.mxu1 %v7170_v0  ;;  %v1975_v38 = vld [vmem:[#allocation13 + $0x1a8] sm:$0xff] }
 0x3d3   : > { %5795 = vmatprep.subr.bf16.mxu0 %v5794_v8  ;;  %5867 = vmatprep.subr.bf16.mxu1 %v5866_v9  ;;  %v1970_v8 = vld [vmem:[#allocation13 + $0x180] sm:$0xff]  ;;  %v5814_v45 = vpack.c.bf16 %v1975_v38, %v1971_v1  ;;  %v2004_v38 = vld [vmem:[#allocation13 + $0x290] sm:$0xff] }
 0x3d4   : > { %5529 = vmatmul.mubr.msk.f32.gmra.mrb[10].mxu0 %vm398_vm0, %v2231_v51  ;;  %5531 = vmatmul.mubr.msk.f32.gmra.mrb[18].mxu1 %vm398_vm0, %v2231_v51  ;;  %v1956_v51 = vld [vmem:[#allocation13 + $0x110] sm:$0xff]  ;;  %v1974_v9 = vld [vmem:[#allocation13 + $0x1a0] sm:$0xff] }
 0x3d5   : > { %5797 = vmatpush1.bf16.msra.mxu0 %v5796_v59  ;;  %5869 = vmatpush1.bf16.msra.mxu1 %v5868_v17  ;;  %v5880_v31 = vpack.c.bf16 %v1960_v53, %v1956_v51  ;;  %v1979_v59 = vld [vmem:[#allocation13 + $0x1c8] sm:$0xff]  ;;  %v5816_v21 = vpack.c.bf16 %v1974_v9, %v1970_v8  ;;  %v1998_v51 = vld [vmem:[#allocation13 + $0x260] sm:$0xff]  ;;  %v2017_v8 = vld [vmem:[#allocation13 + $0x2f8] sm:$0xff] }
 0x3d6   : > { %2619 = vmatprep.mubr.f32.mxu0 %v1917_v34  ;;  %2773 = vmatprep.mubr.f32.mxu1 %v1917_v34  ;;  %v1983_v17 = vld [vmem:[#allocation13 + $0x1e8] sm:$0xff] }
 0x3d7   : > { %5799 = vmatprep.subr.bf16.mxu0 %v5798_v23  ;;  %5871 = vmatprep.subr.bf16.mxu1 %v5870_v24  ;;  %v1982_v23 = vld [vmem:[#allocation13 + $0x1e0] sm:$0xff]  ;;  %v5818_v24 = vpack.c.bf16 %v1983_v17, %v1979_v59  ;;  %v1987_v34 = vld [vmem:[#allocation13 + $0x208] sm:$0xff]  ;;  %v2012_v17 = vld [vmem:[#allocation13 + $0x2d0] sm:$0xff] }
 0x3d8   : > { %v5820_v37 = vpack.c.bf16 %v1982_v23, %v1978_v62  ;;  %v2025_v62 = vld [vmem:[#allocation13 + $0x338] sm:$0xff] }
 0x3d9   : > { %5801 = vmatpush1.bf16.msra.mxu0 %v5800_v35  ;;  %5873 = vmatpush1.bf16.msra.mxu1 %v5872_v58  ;;  %v1991_v35 = vld [vmem:[#allocation13 + $0x228] sm:$0xff]  ;;  %v1989_v58 = vld [vmem:[#allocation13 + $0x218] sm:$0xff] }
 0x3da   : > { %5803 = vmatprep.subr.bf16.mxu0 %v5802_v14  ;;  %5875 = vmatprep.subr.bf16.mxu1 %v5874_v39  ;;  %v5892_v14 = vpack.c.bf16 %v1984_v20, %v1980_v33  ;;  %v1986_v39 = vld [vmem:[#allocation13 + $0x200] sm:$0xff]  ;;  %v5822_v41 = vpack.c.bf16 %v1991_v35, %v1987_v34  ;;  %v5894_v30 = vpack.c.bf16 %v1993_v36, %v1989_v58  ;;  %v2020_v35 = vld [vmem:[#allocation13 + $0x310] sm:$0xff]  ;;  %v2027_v36 = vld [vmem:[#allocation13 + $0x348] sm:$0xff] }
 0x3db   : > { %v5824_v48 = vpack.c.bf16 %v1990_v40, %v1986_v39  ;;  %v2022_v33 = vld [vmem:[#allocation13 + $0x320] sm:$0xff]  ;;  %v2024_v58 = vld [vmem:[#allocation13 + $0x330] sm:$0xff]  ;;  %v2033_v39 = vld [vmem:[#allocation13 + $0x378] sm:$0xff] }
 0x3dd   : > { %5805 = vmatpush1.bf16.msra.mxu0 %v5804_v6  ;;  %5877 = vmatpush1.bf16.msra.mxu1 %v5876_v46  ;;  %v1999_v6 = vld [vmem:[#allocation13 + $0x268] sm:$0xff]  ;;  %v1997_v46 = vld [vmem:[#allocation13 + $0x258] sm:$0xff] }
 0x3de   : > { %5807 = vmatprep.subr.bf16.mxu0 %v5806_v49  ;;  %5879 = vmatprep.subr.bf16.mxu1 %v5878_v50  ;;  %v5896_v49 = vpack.c.bf16 %v1992_v43, %v1988_v42  ;;  %v1994_v50 = vld [vmem:[#allocation13 + $0x240] sm:$0xff]  ;;  %v5826_v53 = vpack.c.bf16 %v1999_v6, %v1995_v44  ;;  %v5898_v26 = vpack.c.bf16 %v2001_v47, %v1997_v46  ;;  %v2028_v6 = vld [vmem:[#allocation13 + $0x350] sm:$0xff]  ;;  %v2035_v47 = vld [vmem:[#allocation13 + $0x388] sm:$0xff] }
 0x3df   : > { %v5828_v60 = vpack.c.bf16 %v1998_v51, %v1994_v50  ;;  %v2030_v42 = vld [vmem:[#allocation13 + $0x360] sm:$0xff]  ;;  %v2032_v46 = vld [vmem:[#allocation13 + $0x370] sm:$0xff]  ;;  %v2041_v50 = vld [vmem:[#allocation13 + $0x3b8] sm:$0xff] }
 0x3e1   : > { %5809 = vmatpush1.bf16.msra.mxu0 %v5808_v5  ;;  %5881 = vmatpush1.bf16.msra.mxu1 %v5880_v31  ;;  %v2007_v5 = vld [vmem:[#allocation13 + $0x2a8] sm:$0xff]  ;;  %v2005_v31 = vld [vmem:[#allocation13 + $0x298] sm:$0xff] }
 0x3e2   : > { %5811 = vmatprep.subr.bf16.mxu0 %v5810_v61  ;;  %5883 = vmatprep.subr.bf16.mxu1 %v5882_v63  ;;  %v5900_v61 = vpack.c.bf16 %v2000_v55, %v1996_v54  ;;  %v2002_v63 = vld [vmem:[#allocation13 + $0x280] sm:$0xff]  ;;  %v5830_v28 = vpack.c.bf16 %v2007_v5, %v2003_v56  ;;  %v5902_v1 = vpack.c.bf16 %v2009_v57, %v2005_v31  ;;  %v2036_v5 = vld [vmem:[#allocation13 + $0x390] sm:$0xff]  ;;  %v2043_v57 = vld [vmem:[#allocation13 + $0x3c8] sm:$0xff] }
 0x3e3   : > { %v5832_v9 = vpack.c.bf16 %v2006_v18, %v2002_v63  ;;  %v2038_v54 = vld [vmem:[#allocation13 + $0x3a0] sm:$0xff]  ;;  %v2040_v31 = vld [vmem:[#allocation13 + $0x3b0] sm:$0xff]  ;;  %v2049_v63 = vld [vmem:[#allocation13 + $0x3f8] sm:$0xff] }
 0x3e5   : > { %5813 = vmatpush1.bf16.msra.mxu0 %v5812_v13  ;;  %5885 = vmatpush1.bf16.msra.mxu1 %v5884_v7  ;;  %v2015_v13 = vld [vmem:[#allocation13 + $0x2e8] sm:$0xff]  ;;  %v2013_v7 = vld [vmem:[#allocation13 + $0x2d8] sm:$0xff] }
 0x3e6   : > { %5815 = vmatprep.subr.bf16.mxu0 %v5814_v45  ;;  %5887 = vmatprep.subr.bf16.mxu1 %v5886_v10  ;;  %v5904_v45 = vpack.c.bf16 %v2008_v2, %v2004_v38  ;;  %v2010_v10 = vld [vmem:[#allocation13 + $0x2c0] sm:$0xff]  ;;  %v5834_v16 = vpack.c.bf16 %v2015_v13, %v2011_v4  ;;  %v5906_v59 = vpack.c.bf16 %v2017_v8, %v2013_v7  ;;  %v2044_v13 = vld [vmem:[#allocation13 + $0x3d0] sm:$0xff]  ;;  %v2051_v8 = vld [vmem:[#allocation13 + $0x408] sm:$0xff] }
 0x3e7   : > { %v5836_v23 = vpack.c.bf16 %v2014_v15, %v2010_v10  ;;  %v2046_v38 = vld [vmem:[#allocation13 + $0x3e0] sm:$0xff]  ;;  %v2048_v7 = vld [vmem:[#allocation13 + $0x3f0] sm:$0xff]  ;;  %v2057_v10 = vld [vmem:[#allocation13 + $0x438] sm:$0xff] }
 0x3e9   : > { %5817 = vmatpush1.bf16.msra.mxu0 %v5816_v21  ;;  %5889 = vmatpush1.bf16.msra.mxu1 %v5888_v22  ;;  %v2023_v21 = vld [vmem:[#allocation13 + $0x328] sm:$0xff]  ;;  %v2021_v22 = vld [vmem:[#allocation13 + $0x318] sm:$0xff] }
 0x3ea   : > { %5819 = vmatprep.subr.bf16.mxu0 %v5818_v24  ;;  %5891 = vmatprep.subr.bf16.mxu1 %v5890_v3  ;;  %v5908_v24 = vpack.c.bf16 %v2016_v29, %v2012_v17  ;;  %v2018_v3 = vld [vmem:[#allocation13 + $0x300] sm:$0xff]  ;;  %v5838_v20 = vpack.c.bf16 %v2023_v21, %v2019_v52  ;;  %v5910_v34 = vpack.c.bf16 %v2025_v62, %v2021_v22  ;;  %v2052_v21 = vld [vmem:[#allocation13 + $0x410] sm:$0xff]  ;;  %v2059_v62 = vld [vmem:[#allocation13 + $0x448] sm:$0xff] }
 0x3eb   : > { %v5840_v40 = vpack.c.bf16 %v2022_v33, %v2018_v3  ;;  %v2050_v29 = vld [vmem:[#allocation13 + $0x400] sm:$0xff]  ;;  %v2056_v22 = vld [vmem:[#allocation13 + $0x430] sm:$0xff]  ;;  %v2065_v3 = vld [vmem:[#allocation13 + $0x478] sm:$0xff] }
 0x3ec   : > { %v2054_v52 = vld [vmem:[#allocation13 + $0x420] sm:$0xff] }
 0x3ed   : > { %5821 = vmatpush1.bf16.msra.mxu0 %v5820_v37  ;;  %5893 = vmatpush1.bf16.msra.mxu1 %v5892_v14  ;;  %v2031_v37 = vld [vmem:[#allocation13 + $0x368] sm:$0xff]  ;;  %v2029_v14 = vld [vmem:[#allocation13 + $0x358] sm:$0xff]  ;;  %v5856_v33 = vpack.c.bf16 %v2054_v52, %v2050_v29 }
 0x3ee   : > { %5823 = vmatprep.subr.bf16.mxu0 %v5822_v41  ;;  %5895 = vmatprep.subr.bf16.mxu1 %v5894_v30  ;;  %v5912_v41 = vpack.c.bf16 %v2024_v58, %v2020_v35  ;;  %v2026_v30 = vld [vmem:[#allocation13 + $0x340] sm:$0xff]  ;;  %v5842_v43 = vpack.c.bf16 %v2031_v37, %v2027_v36  ;;  %v5914_v44 = vpack.c.bf16 %v2033_v39, %v2029_v14  ;;  %v2060_v58 = vld [vmem:[#allocation13 + $0x450] sm:$0xff] }
 0x3ef   : > { %v5844_v51 = vpack.c.bf16 %v2030_v42, %v2026_v30  ;;  %v2062_v35 = vld [vmem:[#allocation13 + $0x460] sm:$0xff]  ;;  %v2064_v36 = vld [vmem:[#allocation13 + $0x470] sm:$0xff]  ;;  %v2873_v42 = vld [vmem:[#allocation13 + $0x918] sm:$0xff] }
 0x3f0   : > { %v1916_v37 = vld [vmem:[#allocation5] sm:$0xff] }
 0x3f1   : > { %5825 = vmatpush1.bf16.msra.mxu0 %v5824_v48  ;;  %5897 = vmatpush1.bf16.msra.mxu1 %v5896_v49  ;;  %v2039_v48 = vld [vmem:[#allocation13 + $0x3a8] sm:$0xff]  ;;  %v2037_v49 = vld [vmem:[#allocation13 + $0x398] sm:$0xff] }
 0x3f2   : > { %5827 = vmatprep.subr.bf16.mxu0 %v5826_v53  ;;  %5899 = vmatprep.subr.bf16.mxu1 %v5898_v26  ;;  %v5916_v53 = vpack.c.bf16 %v2032_v46, %v2028_v6  ;;  %v2034_v26 = vld [vmem:[#allocation13 + $0x380] sm:$0xff]  ;;  %v5846_v55 = vpack.c.bf16 %v2039_v48, %v2035_v47  ;;  %v5918_v56 = vpack.c.bf16 %v2041_v50, %v2037_v49  ;;  %v1920_v30 = vld [vmem:[#allocation5 + $0x20] sm:$0x3f]  ;;  %v1919_v48 = vld [vmem:[#allocation5 + $0x18] sm:$0x3f] }
 0x3f3   : > { %v5848_v18 = vpack.c.bf16 %v2038_v54, %v2034_v26  ;;  %v5932_v6 = vpack.c.bf16 %v2064_v36, %v2060_v58  ;;  %v2870_v46 = vld [vmem:[#allocation13 + $0x900] sm:$0xff]  ;;  %v2879_v26 = vld [vmem:[#allocation13 + $0x948] sm:$0xff] }
 0x3f4   : > { %v2874_v47 = vld [vmem:[#allocation13 + $0x920] sm:$0xff]  ;;  %v2883_v54 = vld [vmem:[#allocation13 + $0x968] sm:$0xff] }
 0x3f5   : > { %5829 = vmatpush1.bf16.msra.mxu0 %v5828_v60  ;;  %5901 = vmatpush1.bf16.msra.mxu1 %v5900_v61  ;;  %v2047_v60 = vld [vmem:[#allocation13 + $0x3e8] sm:$0xff]  ;;  %v2045_v61 = vld [vmem:[#allocation13 + $0x3d8] sm:$0xff]  ;;  %v2894_v58 = vld [vmem:[#allocation13 + $0x9c0] sm:$0xff] }
 0x3f6   : > { %5831 = vmatprep.subr.bf16.mxu0 %v5830_v28  ;;  %5903 = vmatprep.subr.bf16.mxu1 %v5902_v1  ;;  %v5920_v28 = vpack.c.bf16 %v2040_v31, %v2036_v5  ;;  %v2042_v1 = vld [vmem:[#allocation13 + $0x3c0] sm:$0xff]  ;;  %v5850_v2 = vpack.c.bf16 %v2047_v60, %v2043_v57  ;;  %v5922_v4 = vpack.c.bf16 %v2049_v63, %v2045_v61  ;;  %v2881_v5 = vld [vmem:[#allocation13 + $0x958] sm:$0xff] }
 0x3f7   : > { %v5852_v15 = vpack.c.bf16 %v2046_v38, %v2042_v1  ;;  %v2885_v31 = vld [vmem:[#allocation13 + $0x978] sm:$0xff]  ;;  %v2878_v60 = vld [vmem:[#allocation13 + $0x940] sm:$0xff]  ;;  %v2884_v1 = vld [vmem:[#allocation13 + $0x970] sm:$0xff] }
 0x3f8   : > { %v2882_v61 = vld [vmem:[#allocation13 + $0x960] sm:$0xff]  ;;  %v7773_v63 = vld [vmem:[#allocation5 + $0x20] sm:$0xff]  ;;  %v6010_v38 = vpack.c.bf16 %v2885_v31, %v2881_v5 }
 0x3f9   : > { %5833 = vmatpush1.bf16.msra.mxu0 %v5832_v9  ;;  %5905 = vmatpush1.bf16.msra.mxu1 %v5904_v45  ;;  %v2055_v9 = vld [vmem:[#allocation13 + $0x428] sm:$0xff]  ;;  %v2053_v45 = vld [vmem:[#allocation13 + $0x418] sm:$0xff]  ;;  %v2898_v36 = vld [vmem:[#allocation13 + $0x9e0] sm:$0xff] }
 0x3fa   : > { %5835 = vmatprep.subr.bf16.mxu0 %v5834_v16  ;;  %5907 = vmatprep.subr.bf16.mxu1 %v5906_v59  ;;  %v5924_v16 = vpack.c.bf16 %v2048_v7, %v2044_v13  ;;  %v5854_v59 = vpack.c.bf16 %v2055_v9, %v2051_v8  ;;  %v5926_v17 = vpack.c.bf16 %v2057_v10, %v2053_v45  ;;  %v2891_v13 = vld [vmem:[#allocation13 + $0x9a8] sm:$0xff]  ;;  %v1921_v7 = vld [vmem:[#allocation5 + $0x28] sm:$0x3f]  ;;  %v7778_v9 = vrot.slane %v7773_v63, 2 }
 0x3fb   : > { %v5940_v8 = vpack.c.bf16 %v2882_v61, %v2878_v60  ;;  %v2889_v45 = vld [vmem:[#allocation13 + $0x998] sm:$0xff]  ;;  %v2910_v31 = vld [vmem:[#allocation13 + $0xa40] sm:$0xff]  ;;  %v2912_v60 = vld [vmem:[#allocation13 + $0xa50] sm:$0xff] }
 0x3fc   : > { %v2893_v10 = vld [vmem:[#allocation13 + $0x9b8] sm:$0xff] }
 0x3fd   : > { %5837 = vmatpush1.bf16.msra.mxu0 %v5836_v23  ;;  %5909 = vmatpush1.bf16.msra.mxu1 %v5908_v24  ;;  %v2063_v23 = vld [vmem:[#allocation13 + $0x468] sm:$0xff]  ;;  %v2061_v24 = vld [vmem:[#allocation13 + $0x458] sm:$0xff] }
 0x3fe   : > { %5839 = vmatprep.subr.bf16.mxu0 %v5838_v20  ;;  %5911 = vmatprep.subr.bf16.mxu1 %v5910_v34  ;;  %v2058_v20 = vld [vmem:[#allocation13 + $0x440] sm:$0xff]  ;;  %v5928_v34 = vpack.c.bf16 %v2056_v22, %v2052_v21  ;;  %v5858_v14 = vpack.c.bf16 %v2063_v23, %v2059_v62  ;;  %v5930_v39 = vpack.c.bf16 %v2065_v3, %v2061_v24  ;;  %v2892_v21 = vld [vmem:[#allocation13 + $0x9b0] sm:$0xff]  ;;  %v2895_v22 = vld [vmem:[#allocation13 + $0x9c8] sm:$0xff] }
 0x3ff   : > { %v2899_v62 = vld [vmem:[#allocation13 + $0x9e8] sm:$0xff]  ;;  %v6014_v23 = vpack.c.bf16 %v2893_v10, %v2889_v45  ;;  %v2897_v24 = vld [vmem:[#allocation13 + $0x9d8] sm:$0xff]  ;;  %v2922_v45 = vld [vmem:[#allocation13 + $0xaa0] sm:$0xff] }
 0x400   : > { %v2901_v3 = vld [vmem:[#allocation13 + $0x9f8] sm:$0xff]  ;;  %v2920_v10 = vld [vmem:[#allocation13 + $0xa90] sm:$0xff] }
 0x401   : > { %5841 = vmatpush1.bf16.msra.mxu0 %v5840_v40  ;;  %5913 = vmatpush1.bf16.msra.mxu1 %v5912_v41  ;;  %v2871_v40 = vld [vmem:[#allocation13 + $0x908] sm:$0xff] }
 0x402   : > { %5843 = vmatprep.subr.bf16.mxu0 %v5842_v43  ;;  %5915 = vmatprep.subr.bf16.mxu1 %v5914_v44  ;;  %v2875_v41 = vld [vmem:[#allocation13 + $0x928] sm:$0xff]  ;;  %v2877_v43 = vld [vmem:[#allocation13 + $0x938] sm:$0xff]  ;;  %v5860_v44 = vpack.c.bf16 %v2062_v35, %v2058_v20  ;;  %v5946_v35 = vpack.c.bf16 %v2899_v62, %v2895_v22 }
 0x403   : > { %v5934_v49 = vpack.c.bf16 %v2875_v41, %v2871_v40  ;;  %v6006_v50 = vpack.c.bf16 %v2877_v43, %v2873_v42  ;;  %v2903_v40 = vld [vmem:[#allocation13 + $0xa08] sm:$0xff]  ;;  %v2909_v42 = vld [vmem:[#allocation13 + $0xa38] sm:$0xff]  ;;  %v5948_v43 = vpack.c.bf16 %v2898_v36, %v2894_v58 }
 0x404   : > { %v2907_v41 = vld [vmem:[#allocation13 + $0xa28] sm:$0xff]  ;;  %v2937_v58 = vld [vmem:[#allocation13 + $0xb18] sm:$0xff] }
 0x405   : > { %5845 = vmatpush1.bf16.msra.mxu0 %v5844_v51  ;;  %5917 = vmatpush1.bf16.msra.mxu1 %v5916_v53  ;;  %v2872_v51 = vld [vmem:[#allocation13 + $0x910] sm:$0xff]  ;;  %v2941_v36 = vld [vmem:[#allocation13 + $0xb38] sm:$0xff] }
 0x406   : > { %5847 = vmatprep.subr.bf16.mxu0 %v5846_v55  ;;  %5919 = vmatprep.subr.bf16.mxu1 %v5918_v56  ;;  %v2876_v53 = vld [vmem:[#allocation13 + $0x930] sm:$0xff]  ;;  %v1918_v55 = vld [vmem:[#allocation5 + $0x10] sm:$0xff]  ;;  %v5936_v56 = vpack.c.bf16 %v2874_v47, %v2870_v46 }
 0x407   : > { %v6008_v57 = vpack.c.bf16 %v2876_v53, %v2872_v51  ;;  %v2902_v46 = vld [vmem:[#allocation13 + $0xa00] sm:$0xff]  ;;  %v2911_v51 = vld [vmem:[#allocation13 + $0xa48] sm:$0xff] }
 0x408   : > { %v2906_v47 = vld [vmem:[#allocation13 + $0xa20] sm:$0xff]  ;;  %v2915_v53 = vld [vmem:[#allocation13 + $0xa68] sm:$0xff] }
 0x409   : > { %5849 = vmatpush1.bf16.msra.mxu0 %v5848_v18  ;;  %5921 = vmatpush1.bf16.msra.mxu1 %v5920_v28  ;;  %v5938_v18 = vpack.c.bf16 %v2883_v54, %v2879_v26  ;;  %v2880_v28 = vld [vmem:[#allocation13 + $0x950] sm:$0xff]  ;;  %v2913_v26 = vld [vmem:[#allocation13 + $0xa58] sm:$0xff]  ;;  %v5954_v5 = vpack.c.bf16 %v2915_v53, %v2911_v51  ;;  %v2942_v51 = vld [vmem:[#allocation13 + $0xb40] sm:$0xff] }
 0x40a   : > { %5851 = vmatprep.subr.bf16.mxu0 %v5850_v2  ;;  %5923 = vmatprep.subr.bf16.mxu1 %v5922_v4  ;;  %v2864_v2 = vld [vmem:[#allocation5 + $0x8] sm:$0xfc]  ;;  %v2887_v4 = vld [vmem:[#allocation13 + $0x988] sm:$0xff] }
 0x40b   : > { %v3024_v29 = vrot.slane %v2864_v2, 2  ;;  %v5942_v52 = vpack.c.bf16 %v2891_v13, %v2887_v4  ;;  %v2917_v54 = vld [vmem:[#allocation13 + $0xa78] sm:$0xff]  ;;  %v2946_v53 = vld [vmem:[#allocation13 + $0xb60] sm:$0xff] }
 0x40c   : > { %v6026_v61 = vpack.c.bf16 %v2917_v54, %v2913_v26  ;;  %v2925_v2 = vld [vmem:[#allocation13 + $0xab8] sm:$0xff]  ;;  %v2944_v26 = vld [vmem:[#allocation13 + $0xb50] sm:$0xff] }
 0x40d   : > { %5853 = vmatpush1.bf16.msra.mxu0 %v5852_v15  ;;  %5925 = vmatpush1.bf16.msra.mxu1 %v5924_v16  ;;  %v6012_v15 = vpack.c.bf16 %v2884_v1, %v2880_v28  ;;  %v2886_v16 = vld [vmem:[#allocation13 + $0x980] sm:$0xff]  ;;  %v2919_v28 = vld [vmem:[#allocation13 + $0xa88] sm:$0xff] }
 0x40e   : > { %5855 = vmatprep.subr.bf16.mxu0 %v5854_v59  ;;  %5927 = vmatprep.subr.bf16.mxu1 %v5926_v17  ;;  %v2890_v59 = vld [vmem:[#allocation13 + $0x9a0] sm:$0xff]  ;;  %v2888_v17 = vld [vmem:[#allocation13 + $0x990] sm:$0xff]  ;;  %v2923_v1 = vld [vmem:[#allocation13 + $0xaa8] sm:$0xff] }
 0x40f   : > { %v5944_v20 = vpack.c.bf16 %v2890_v59, %v2886_v16  ;;  %v2924_v16 = vld [vmem:[#allocation13 + $0xab0] sm:$0xff]  ;;  %v2927_v59 = vld [vmem:[#allocation13 + $0xac8] sm:$0xff] }
 0x410   : > { %2620 = vmatmul.mubr.f32.vlgmr.msra.gmra.mrb[8].mxu0 %v1916_v37  ;;  %2774 = vmatmul.mubr.f32.vlgmr.msra.gmra.mrb[16].mxu1 %v1916_v37  ;;  %v2896_v37 = vld [vmem:[#allocation13 + $0x9d0] sm:$0xff]  ;;  %v6032_v22 = vpack.c.bf16 %v2924_v16, %v2920_v10 }
 0x411   : > { %2625 = vmatprep.mubr.f32.mxu0 %v1920_v30  ;;  %5857 = vmatpush1.bf16.msra.mxu0 %v5856_v33  ;;  %v3026_v33 = vsel %vm3020_vm11, %v3024_v29, %v7778_v9  ;;  %v2929_v29 = vld [vmem:[#allocation13 + $0xad8] sm:$0xff] }
 0x412   : > { %2779 = vmatprep.mubr.f32.mxu1 %v1920_v30  ;;  %5929 = vmatpush1.bf16.msra.mxu1 %v5928_v34  ;;  %v6016_v34 = vpack.c.bf16 %v2892_v21, %v2888_v17  ;;  %v2905_v30 = vld [vmem:[#allocation13 + $0xa18] sm:$0xff]  ;;  %v2931_v17 = vld [vmem:[#allocation13 + $0xae8] sm:$0xff] }
 0x413   : > { %5859 = vmatprep.subr.bf16.mxu0 %v5858_v14  ;;  %5931 = vmatprep.subr.bf16.mxu1 %v5930_v39  ;;  %v6018_v14 = vpack.c.bf16 %v2901_v3, %v2897_v24  ;;  %v2900_v39 = vld [vmem:[#allocation13 + $0x9f0] sm:$0xff]  ;;  %v5962_v62 = vpack.c.bf16 %v2931_v17, %v2927_v59  ;;  %v2930_v24 = vld [vmem:[#allocation13 + $0xae0] sm:$0xff] }
 0x414   : > { %2626 = vmatmul.mubr.f32.gmra.mrb[10].mxu0 %v1919_v48  ;;  %2780 = vmatmul.mubr.f32.gmra.mrb[18].mxu1 %v1919_v48  ;;  %v2904_v48 = vld [vmem:[#allocation13 + $0xa10] sm:$0xff]  ;;  %v2958_v59 = vld [vmem:[#allocation13 + $0xbc0] sm:$0xff] }
 0x415   : > { %5861 = vmatpush1.bf16.msra.mxu0 %v5860_v44  ;;  %2696 = vmatprep.mubr.f32.mxu0 %v7170_v0  ;;  %v6020_v44 = vpack.c.bf16 %v2900_v39, %v2896_v37  ;;  %v2928_v3 = vld [vmem:[#allocation13 + $0xad0] sm:$0xff]  ;;  %v2962_v17 = vld [vmem:[#allocation13 + $0xbe0] sm:$0xff] }
 0x416   : > { %5933 = vmatpush1.bf16.msra.mxu1 %v5932_v6  ;;  %2850 = vmatprep.mubr.f32.mxu1 %v7170_v0  ;;  %v5950_v6 = vpack.c.bf16 %v2907_v41, %v2903_v40  ;;  %v2934_v40 = vld [vmem:[#allocation13 + $0xb00] sm:$0xff] }
 0x417   : > { %5935 = vmatprep.subr.bf16.mxu0 %v5934_v49  ;;  %6007 = vmatprep.subr.bf16.mxu1 %v6006_v50  ;;  %v6022_v49 = vpack.c.bf16 %v2909_v42, %v2905_v30  ;;  %v2908_v50 = vld [vmem:[#allocation13 + $0xa30] sm:$0xff]  ;;  %v2938_v41 = vld [vmem:[#allocation13 + $0xb20] sm:$0xff]  ;;  %v6038_v42 = vpack.c.bf16 %v2941_v36, %v2937_v58 }
 0x418   : > { %5532 = vmatmul.mubr.msk.f32.vlgmr.msra.gmra.mrb[8].mxu0 %vm398_vm0, %v1918_v55  ;;  %v2936_v30 = vld [vmem:[#allocation13 + $0xb10] sm:$0xff] }
 0x419   : > { %5534 = vmatmul.mubr.msk.f32.vlgmr.msra.gmra.mrb[16].mxu1 %vm398_vm0, %v1918_v55  ;;  %5937 = vmatpush1.bf16.msra.mxu0 %v5936_v56  ;;  %v5952_v55 = vpack.c.bf16 %v2906_v47, %v2902_v46  ;;  %v6024_v56 = vpack.c.bf16 %v2908_v50, %v2904_v48  ;;  %v2945_v46 = vld [vmem:[#allocation13 + $0xb58] sm:$0xff]  ;;  %v5968_v48 = vpack.c.bf16 %v2938_v41, %v2934_v40  ;;  %v2968_v58 = vld [vmem:[#allocation13 + $0xc10] sm:$0xff] }
 0x41a   : > { %6009 = vmatpush1.bf16.msra.mxu1 %v6008_v57  ;;  %2702 = vmatprep.mubr.f32.mxu0 %v7170_v0  ;;  %v2914_v57 = vld [vmem:[#allocation13 + $0xa60] sm:$0xff]  ;;  %v2949_v47 = vld [vmem:[#allocation13 + $0xb78] sm:$0xff] }
 0x41b   : > { %2856 = vmatprep.mubr.f32.mxu1 %v7170_v0  ;;  %5939 = vmatprep.subr.bf16.mxu0 %v5938_v18  ;;  %v2916_v18 = vld [vmem:[#allocation13 + $0xa70] sm:$0xff]  ;;  %v5956_v4 = vpack.c.bf16 %v2914_v57, %v2910_v31  ;;  %v6042_v54 = vpack.c.bf16 %v2949_v47, %v2945_v46  ;;  %v2953_v31 = vld [vmem:[#allocation13 + $0xb98] sm:$0xff] }
 0x41c   : > { %5533 = vmatmul.mubr.msk.f32.gmra.mrb[10].mxu0 %vm398_vm0, %v1921_v7  ;;  %6011 = vmatprep.subr.bf16.mxu1 %v6010_v38  ;;  %v2921_v38 = vld [vmem:[#allocation13 + $0xa98] sm:$0xff]  ;;  %v6028_v13 = vpack.c.bf16 %v2916_v18, %v2912_v60  ;;  %v5972_v60 = vpack.c.bf16 %v2946_v53, %v2942_v51  ;;  %v2976_v46 = vld [vmem:[#allocation13 + $0xc50] sm:$0xff] }
 0x41d   : > { %5535 = vmatmul.mubr.msk.f32.gmra.mrb[18].mxu1 %vm398_vm0, %v1921_v7  ;;  %5941 = vmatpush1.bf16.msra.mxu0 %v5940_v8  ;;  %v5958_v7 = vpack.c.bf16 %v2923_v1, %v2919_v28  ;;  %v2918_v8 = vld [vmem:[#allocation13 + $0xa80] sm:$0xff]  ;;  %v2957_v57 = vld [vmem:[#allocation13 + $0xbb8] sm:$0xff] }
 0x41e   : > { %3102 = vmatprep.mubr.f32.mxu0 %v3026_v33  ;;  %6013 = vmatpush1.bf16.msra.mxu1 %v6012_v15  ;;  %v6030_v15 = vpack.c.bf16 %v2925_v2, %v2921_v38  ;;  %v5960_v21 = vpack.c.bf16 %v2922_v45, %v2918_v8  ;;  %v2950_v28 = vld [vmem:[#allocation13 + $0xb80] sm:$0xff]  ;;  %v2952_v38 = vld [vmem:[#allocation13 + $0xb90] sm:$0xff]  ;;  %v6046_v2 = vpack.c.bf16 %v2957_v57, %v2953_v31  ;;  %v2961_v8 = vld [vmem:[#allocation13 + $0xbd8] sm:$0xff] }
 0x41f   : > { %3256 = vmatprep.mubr.f32.mxu1 %v3026_v33  ;;  %5943 = vmatprep.subr.bf16.mxu0 %v5942_v52  ;;  %v2933_v52 = vld [vmem:[#allocation13 + $0xaf8] sm:$0xff]  ;;  %v2954_v1 = vld [vmem:[#allocation13 + $0xba0] sm:$0xff]  ;;  %v2984_v31 = vld [vmem:[#allocation13 + $0xc90] sm:$0xff] }
 0x420   : > { %6015 = vmatprep.subr.bf16.mxu1 %v6014_v23  ;;  %v2926_v23 = vld [vmem:[#allocation13 + $0xac0] sm:$0xff]  ;;  %v6034_v33 = vpack.c.bf16 %v2933_v52, %v2929_v29  ;;  %v2965_v45 = vld [vmem:[#allocation13 + $0xbf8] sm:$0xff]  ;;  %v5976_v10 = vpack.c.bf16 %v2954_v1, %v2950_v28  ;;  %v2960_v29 = vld [vmem:[#allocation13 + $0xbd0] sm:$0xff] }
 0x421   : > { %5945 = vmatpush1.bf16.msra.mxu0 %v5944_v20  ;;  %v2932_v20 = vld [vmem:[#allocation13 + $0xaf0] sm:$0xff]  ;;  %v5964_v37 = vpack.c.bf16 %v2930_v24, %v2926_v23  ;;  %v6050_v52 = vpack.c.bf16 %v2965_v45, %v2961_v8  ;;  %v2969_v23 = vld [vmem:[#allocation13 + $0xc18] sm:$0xff] }
 0x422   : > { %6017 = vmatpush1.bf16.msra.mxu1 %v6016_v34  ;;  %5947 = vmatprep.subr.bf16.mxu0 %v5946_v35  ;;  %v2935_v34 = vld [vmem:[#allocation13 + $0xb08] sm:$0xff]  ;;  %v2973_v24 = vld [vmem:[#allocation13 + $0xc38] sm:$0xff]  ;;  %v2992_v8 = vld [vmem:[#allocation13 + $0xcd0] sm:$0xff] }
 0x423   : > { %6019 = vmatprep.subr.bf16.mxu1 %v6018_v14  ;;  %v2939_v35 = vld [vmem:[#allocation13 + $0xb28] sm:$0xff]  ;;  %v6036_v14 = vpack.c.bf16 %v2932_v20, %v2928_v3  ;;  %v5980_v3 = vpack.c.bf16 %v2962_v17, %v2958_v59  ;;  %v6054_v36 = vpack.c.bf16 %v2973_v24, %v2969_v23  ;;  %v2977_v40 = vld [vmem:[#allocation13 + $0xc58] sm:$0xff] }
 0x424   : > { %v5966_v39 = vpack.c.bf16 %v2939_v35, %v2935_v34  ;;  %v2966_v34 = vld [vmem:[#allocation13 + $0xc00] sm:$0xff]  ;;  %v2981_v41 = vld [vmem:[#allocation13 + $0xc78] sm:$0xff]  ;;  %v7787_v59 = vld [vmem:[#allocation5 + $0x18] sm:$0xff] }
 0x425   : > { %5949 = vmatpush1.bf16.msra.mxu0 %v5948_v43  ;;  %v2940_v43 = vld [vmem:[#allocation13 + $0xb30] sm:$0xff]  ;;  %v2970_v35 = vld [vmem:[#allocation13 + $0xc20] sm:$0xff]  ;;  %v6058_v47 = vpack.c.bf16 %v2981_v41, %v2977_v40  ;;  %v2985_v51 = vld [vmem:[#allocation13 + $0xc98] sm:$0xff]  ;;  %v3022_v23 = vrot.slane %v7787_v59, 2 }
 0x426   : > { %6021 = vmatpush1.bf16.msra.mxu1 %v6020_v44  ;;  %5951 = vmatprep.subr.bf16.mxu0 %v5950_v6  ;;  %v2943_v44 = vld [vmem:[#allocation13 + $0xb48] sm:$0xff]  ;;  %v2989_v53 = vld [vmem:[#allocation13 + $0xcb8] sm:$0xff] }
 0x427   : > { %6023 = vmatprep.subr.bf16.mxu1 %v6022_v49  ;;  %v2947_v6 = vld [vmem:[#allocation13 + $0xb68] sm:$0xff]  ;;  %v6040_v49 = vpack.c.bf16 %v2940_v43, %v2936_v30  ;;  %v5984_v30 = vpack.c.bf16 %v2970_v35, %v2966_v34  ;;  %v6062_v57 = vpack.c.bf16 %v2989_v53, %v2985_v51  ;;  %v2993_v28 = vld [vmem:[#allocation13 + $0xcd8] sm:$0xff]  ;;  %v3004_v34 = vld [vmem:[#allocation13 + $0xd30] sm:$0xff] }
 0x428   : > { %v5970_v50 = vpack.c.bf16 %v2947_v6, %v2943_v44  ;;  %v2974_v44 = vld [vmem:[#allocation13 + $0xc40] sm:$0xff]  ;;  %v2997_v1 = vld [vmem:[#allocation13 + $0xcf8] sm:$0xff]  ;;  %v3007_v35 = vld [vmem:[#allocation13 + $0xd48] sm:$0xff] }
 0x429   : > { %5953 = vmatpush1.bf16.msra.mxu0 %v5952_v55  ;;  %v2948_v55 = vld [vmem:[#allocation13 + $0xb70] sm:$0xff]  ;;  %v2978_v6 = vld [vmem:[#allocation13 + $0xc60] sm:$0xff]  ;;  %v6066_v45 = vpack.c.bf16 %v2997_v1, %v2993_v28  ;;  %v3001_v17 = vld [vmem:[#allocation13 + $0xd18] sm:$0xff] }
 0x42a   : > { %6025 = vmatpush1.bf16.msra.mxu1 %v6024_v56  ;;  %5955 = vmatprep.subr.bf16.mxu0 %v5954_v5  ;;  %v2951_v56 = vld [vmem:[#allocation13 + $0xb88] sm:$0xff]  ;;  %v2868_v40 = vld [vmem:[#allocation5 + $0x28] sm:$0xff] }
 0x42b   : > { %6027 = vmatprep.subr.bf16.mxu1 %v6026_v61  ;;  %v2955_v5 = vld [vmem:[#allocation13 + $0xba8] sm:$0xff]  ;;  %v6044_v61 = vpack.c.bf16 %v2948_v55, %v2944_v26  ;;  %v5988_v26 = vpack.c.bf16 %v2978_v6, %v2974_v44  ;;  %v3006_v44 = vld [vmem:[#allocation13 + $0xd40] sm:$0xff]  ;;  %v3367_v51 = vld [vmem:[#allocation13 + $0xd98] sm:$0xff] }
 0x42c   : > { %v5974_v18 = vpack.c.bf16 %v2955_v5, %v2951_v56  ;;  %v2982_v56 = vld [vmem:[#allocation13 + $0xc80] sm:$0xff]  ;;  %v3371_v53 = vld [vmem:[#allocation13 + $0xdb8] sm:$0xff]  ;;  %v3373_v28 = vld [vmem:[#allocation13 + $0xdc8] sm:$0xff] }
 0x42d   : > { %5957 = vmatpush1.bf16.msra.mxu0 %v5956_v4  ;;  %v2956_v4 = vld [vmem:[#allocation13 + $0xbb0] sm:$0xff]  ;;  %v2986_v5 = vld [vmem:[#allocation13 + $0xca0] sm:$0xff]  ;;  %v3377_v1 = vld [vmem:[#allocation13 + $0xde8] sm:$0xff] }
 0x42e   : > { %6029 = vmatpush1.bf16.msra.mxu1 %v6028_v13  ;;  %5959 = vmatprep.subr.bf16.mxu0 %v5958_v7  ;;  %v2959_v13 = vld [vmem:[#allocation13 + $0xbc8] sm:$0xff]  ;;  %v3010_v6 = vld [vmem:[#allocation13 + $0xd60] sm:$0xff] }
 0x42f   : > { %6031 = vmatprep.subr.bf16.mxu1 %v6030_v15  ;;  %v2963_v7 = vld [vmem:[#allocation13 + $0xbe8] sm:$0xff]  ;;  %v6048_v15 = vpack.c.bf16 %v2956_v4, %v2952_v38  ;;  %v5992_v38 = vpack.c.bf16 %v2986_v5, %v2982_v56 }
 0x430   : > { %v5978_v16 = vpack.c.bf16 %v2963_v7, %v2959_v13  ;;  %v2990_v13 = vld [vmem:[#allocation13 + $0xcc0] sm:$0xff] }
 0x431   : > { %5961 = vmatpush1.bf16.msra.mxu0 %v5960_v21  ;;  %v2964_v21 = vld [vmem:[#allocation13 + $0xbf0] sm:$0xff]  ;;  %v2994_v7 = vld [vmem:[#allocation13 + $0xce0] sm:$0xff] }
 0x432   : > { %6033 = vmatpush1.bf16.msra.mxu1 %v6032_v22  ;;  %5963 = vmatprep.subr.bf16.mxu0 %v5962_v62  ;;  %v2967_v22 = vld [vmem:[#allocation13 + $0xc08] sm:$0xff] }
 0x433   : > { %6035 = vmatprep.subr.bf16.mxu1 %v6034_v33  ;;  %v2971_v62 = vld [vmem:[#allocation13 + $0xc28] sm:$0xff]  ;;  %v6052_v33 = vpack.c.bf16 %v2964_v21, %v2960_v29  ;;  %v3005_v29 = vld [vmem:[#allocation13 + $0xd38] sm:$0xff] }
 0x434   : > { %v5982_v20 = vpack.c.bf16 %v2971_v62, %v2967_v22  ;;  %v2863_v22 = vld [vmem:[#allocation5] sm:$0xfc]  ;;  %v6070_v24 = vpack.c.bf16 %v3005_v29, %v3001_v17  ;;  %v3355_v17 = vld [vmem:[#allocation5 + $0x8] sm:$0xf8]  ;;  %v3381_v29 = vld [vmem:[#allocation13 + $0xe08] sm:$0xff] }
 0x435   : > { %5965 = vmatpush1.bf16.msra.mxu0 %v5964_v37  ;;  %v2972_v37 = vld [vmem:[#allocation13 + $0xc30] sm:$0xff] }
 0x436   : > { %6037 = vmatpush1.bf16.msra.mxu1 %v6036_v14  ;;  %5967 = vmatprep.subr.bf16.mxu0 %v5966_v39  ;;  %v2975_v14 = vld [vmem:[#allocation13 + $0xc48] sm:$0xff] }
 0x437   : > { %6039 = vmatprep.subr.bf16.mxu1 %v6038_v42  ;;  %v2979_v39 = vld [vmem:[#allocation13 + $0xc68] sm:$0xff]  ;;  %v6056_v42 = vpack.c.bf16 %v2972_v37, %v2968_v58  ;;  %v3009_v37 = vld [vmem:[#allocation13 + $0xd58] sm:$0xff] }
 0x438   : > { %v5986_v43 = vpack.c.bf16 %v2979_v39, %v2975_v14  ;;  %v3011_v58 = vld [vmem:[#allocation13 + $0xd68] sm:$0xff]  ;;  %v3013_v14 = vld [vmem:[#allocation13 + $0xd78] sm:$0xff] }
 0x439   : > { %5969 = vmatpush1.bf16.msra.mxu0 %v5968_v48  ;;  %v2980_v48 = vld [vmem:[#allocation13 + $0xc70] sm:$0xff]  ;;  %v2865_v39 = vld [vmem:[#allocation5 + $0x10] sm:$0xfc] }
 0x43a   : > { %6041 = vmatpush1.bf16.msra.mxu1 %v6040_v49  ;;  %5971 = vmatprep.subr.bf16.mxu0 %v5970_v50  ;;  %v2983_v49 = vld [vmem:[#allocation13 + $0xc88] sm:$0xff] }
 0x43b   : > { %6043 = vmatprep.subr.bf16.mxu1 %v6042_v54  ;;  %v2987_v50 = vld [vmem:[#allocation13 + $0xca8] sm:$0xff]  ;;  %v6060_v54 = vpack.c.bf16 %v2980_v48, %v2976_v46  ;;  %v3008_v46 = vld [vmem:[#allocation13 + $0xd50] sm:$0xff] }
 0x43c   : > { %v5990_v55 = vpack.c.bf16 %v2987_v50, %v2983_v49  ;;  %v3012_v48 = vld [vmem:[#allocation13 + $0xd70] sm:$0xff]  ;;  %v3365_v49 = vld [vmem:[#allocation13 + $0xd88] sm:$0xff] }
 0x43d   : > { %5973 = vmatpush1.bf16.msra.mxu0 %v5972_v60  ;;  %v2988_v60 = vld [vmem:[#allocation13 + $0xcb0] sm:$0xff]  ;;  %v3369_v50 = vld [vmem:[#allocation13 + $0xda8] sm:$0xff]  ;;  %v6076_v56 = vpack.c.bf16 %v3012_v48, %v3008_v46 }
 0x43e   : > { %6045 = vmatpush1.bf16.msra.mxu1 %v6044_v61  ;;  %5975 = vmatprep.subr.bf16.mxu0 %v5974_v18  ;;  %v2991_v61 = vld [vmem:[#allocation13 + $0xcc8] sm:$0xff]  ;;  %v6078_v5 = vpack.c.bf16 %v3369_v50, %v3365_v49  ;;  %v3390_v46 = vld [vmem:[#allocation13 + $0xe50] sm:$0xff] }
 0x43f   : > { %6047 = vmatprep.subr.bf16.mxu1 %v6046_v2  ;;  %v2995_v18 = vld [vmem:[#allocation13 + $0xce8] sm:$0xff]  ;;  %v6064_v2 = vpack.c.bf16 %v2988_v60, %v2984_v31  ;;  %v3364_v31 = vld [vmem:[#allocation13 + $0xd80] sm:$0xff]  ;;  %v6150_v60 = vpack.c.bf16 %v3371_v53, %v3367_v51  ;;  %v3394_v48 = vld [vmem:[#allocation13 + $0xe70] sm:$0xff] }
 0x440   : > { %v5994_v4 = vpack.c.bf16 %v2995_v18, %v2991_v61  ;;  %v3366_v61 = vld [vmem:[#allocation13 + $0xd90] sm:$0xff]  ;;  %v3397_v49 = vld [vmem:[#allocation13 + $0xe88] sm:$0xff]  ;;  %v3399_v51 = vld [vmem:[#allocation13 + $0xe98] sm:$0xff] }
 0x441   : > { %5977 = vmatpush1.bf16.msra.mxu0 %v5976_v10  ;;  %v2996_v10 = vld [vmem:[#allocation13 + $0xcf0] sm:$0xff]  ;;  %v3401_v50 = vld [vmem:[#allocation13 + $0xea8] sm:$0xff]  ;;  %v3403_v53 = vld [vmem:[#allocation13 + $0xeb8] sm:$0xff] }
 0x442   : > { %6049 = vmatpush1.bf16.msra.mxu1 %v6048_v15  ;;  %5979 = vmatprep.subr.bf16.mxu0 %v5978_v16  ;;  %v2999_v15 = vld [vmem:[#allocation13 + $0xd08] sm:$0xff]  ;;  %v6068_v21 = vpack.c.bf16 %v2996_v10, %v2992_v8  ;;  %v3370_v18 = vld [vmem:[#allocation13 + $0xdb0] sm:$0xff]  ;;  %v3376_v8 = vld [vmem:[#allocation13 + $0xde0] sm:$0xff] }
 0x443   : > { %6051 = vmatprep.subr.bf16.mxu1 %v6050_v52  ;;  %v3003_v16 = vld [vmem:[#allocation13 + $0xd28] sm:$0xff]  ;;  %v5996_v52 = vpack.c.bf16 %v2994_v7, %v2990_v13  ;;  %v6152_v13 = vpack.c.bf16 %v3370_v18, %v3366_v61  ;;  %v3372_v7 = vld [vmem:[#allocation13 + $0xdc0] sm:$0xff]  ;;  %v3374_v10 = vld [vmem:[#allocation13 + $0xdd0] sm:$0xff] }
 0x444   : > { %v5998_v62 = vpack.c.bf16 %v3003_v16, %v2999_v15  ;;  %v3378_v15 = vld [vmem:[#allocation13 + $0xdf0] sm:$0xff]  ;;  %v3405_v61 = vld [vmem:[#allocation13 + $0xec8] sm:$0xff] }
 0x445   : > { %5981 = vmatpush1.bf16.msra.mxu0 %v5980_v3  ;;  %v2998_v3 = vld [vmem:[#allocation13 + $0xd00] sm:$0xff]  ;;  %v3409_v18 = vld [vmem:[#allocation13 + $0xee8] sm:$0xff] }
 0x446   : > { %6053 = vmatpush1.bf16.msra.mxu1 %v6052_v33  ;;  %5983 = vmatprep.subr.bf16.mxu0 %v5982_v20  ;;  %v3002_v33 = vld [vmem:[#allocation13 + $0xd20] sm:$0xff]  ;;  %v3000_v20 = vld [vmem:[#allocation13 + $0xd10] sm:$0xff] }
 0x447   : > { %6055 = vmatprep.subr.bf16.mxu1 %v6054_v36  ;;  %v3021_v36 = vrot.slane %v2863_v22, 2  ;;  %v6000_v41 = vpack.c.bf16 %v3002_v33, %v2998_v3  ;;  %v3522_v22 = vrot.slane %v7773_v63, 3  ;;  %v3380_v3 = vld [vmem:[#allocation13 + $0xe00] sm:$0xff] }
 0x448   : > { %v3384_v33 = vld [vmem:[#allocation13 + $0xe20] sm:$0xff] }
 0x449   : > { %5985 = vmatpush1.bf16.msra.mxu0 %v5984_v30  ;;  %v3023_v30 = vsel %vm3020_vm11, %v3021_v36, %v3022_v23  ;;  %v3389_v36 = vld [vmem:[#allocation13 + $0xe48] sm:$0xff] }
 0x44a   : > { %6057 = vmatpush1.bf16.msra.mxu1 %v6056_v42  ;;  %5987 = vmatprep.subr.bf16.mxu0 %v5986_v43  ;;  %v6072_v42 = vpack.c.bf16 %v3004_v34, %v3000_v20  ;;  %v6002_v43 = vpack.c.bf16 %v3011_v58, %v3007_v35  ;;  %v3382_v20 = vld [vmem:[#allocation13 + $0xe10] sm:$0xff]  ;;  %v3521_v34 = vrot.slane %v3355_v17, 3  ;;  %v3419_v17 = vld [vmem:[#allocation13 + $0xf38] sm:$0xff] }
 0x44b   : > { %6059 = vmatprep.subr.bf16.mxu1 %v6058_v47  ;;  %v6074_v47 = vpack.c.bf16 %v3013_v14, %v3009_v37  ;;  %v3386_v58 = vld [vmem:[#allocation13 + $0xe30] sm:$0xff]  ;;  %v3393_v37 = vld [vmem:[#allocation13 + $0xe68] sm:$0xff] }
 0x44d   : > { %5989 = vmatpush1.bf16.msra.mxu0 %v5988_v26  ;;  %v3027_v26 = vrot.slane %v2865_v39, 2  ;;  %v3391_v39 = vld [vmem:[#allocation13 + $0xe58] sm:$0xff] }
 0x44e   : > { %6061 = vmatpush1.bf16.msra.mxu1 %v6060_v54  ;;  %5991 = vmatprep.subr.bf16.mxu0 %v5990_v55  ;;  %v7792_v54 = vrot.slane %v2868_v40, 2  ;;  %v6004_v55 = vpack.c.bf16 %v3010_v6, %v3006_v44  ;;  %v3395_v40 = vld [vmem:[#allocation13 + $0xe78] sm:$0xff]  ;;  %v3388_v44 = vld [vmem:[#allocation13 + $0xe40] sm:$0xff] }
 0x44f   : > { %6063 = vmatprep.subr.bf16.mxu1 %v6062_v57  ;;  %v3368_v57 = vld [vmem:[#allocation13 + $0xda0] sm:$0xff] }
 0x450   : > { %v3392_v6 = vld [vmem:[#allocation13 + $0xe60] sm:$0xff] }
 0x451   : > { %5993 = vmatpush1.bf16.msra.mxu0 %v5992_v38  ;;  %v6080_v38 = vpack.c.bf16 %v3368_v57, %v3364_v31  ;;  %v3398_v31 = vld [vmem:[#allocation13 + $0xe90] sm:$0xff]  ;;  %v6166_v57 = vpack.c.bf16 %v3403_v53, %v3399_v51  ;;  %v3432_v51 = vld [vmem:[#allocation13 + $0xfa0] sm:$0xff] }
 0x452   : > { %6065 = vmatpush1.bf16.msra.mxu1 %v6064_v2  ;;  %5995 = vmatprep.subr.bf16.mxu0 %v5994_v4  ;;  %v3375_v2 = vld [vmem:[#allocation13 + $0xdd8] sm:$0xff]  ;;  %v3430_v53 = vld [vmem:[#allocation13 + $0xf90] sm:$0xff] }
 0x453   : > { %6067 = vmatprep.subr.bf16.mxu1 %v6066_v45  ;;  %v3379_v4 = vld [vmem:[#allocation13 + $0xdf8] sm:$0xff]  ;;  %v6082_v45 = vpack.c.bf16 %v3377_v1, %v3373_v28 }
 0x454   : > { %v6154_v16 = vpack.c.bf16 %v3379_v4, %v3375_v2  ;;  %v3407_v28 = vld [vmem:[#allocation13 + $0xed8] sm:$0xff]  ;;  %v6098_v2 = vpack.c.bf16 %v3409_v18, %v3405_v61  ;;  %v3404_v4 = vld [vmem:[#allocation13 + $0xec0] sm:$0xff] }
 0x455   : > { %5997 = vmatpush1.bf16.msra.mxu0 %v5996_v52  ;;  %v3385_v52 = vld [vmem:[#allocation13 + $0xe28] sm:$0xff]  ;;  %v3411_v1 = vld [vmem:[#allocation13 + $0xef8] sm:$0xff]  ;;  %v3436_v18 = vld [vmem:[#allocation13 + $0xfc0] sm:$0xff] }
 0x456   : > { %6069 = vmatpush1.bf16.msra.mxu1 %v6068_v21  ;;  %5999 = vmatprep.subr.bf16.mxu0 %v5998_v62  ;;  %v6084_v21 = vpack.c.bf16 %v3376_v8, %v3372_v7  ;;  %v3383_v62 = vld [vmem:[#allocation13 + $0xe18] sm:$0xff]  ;;  %v6086_v35 = vpack.c.bf16 %v3385_v52, %v3381_v29  ;;  %v3406_v7 = vld [vmem:[#allocation13 + $0xed0] sm:$0xff]  ;;  %v6170_v8 = vpack.c.bf16 %v3411_v1, %v3407_v28  ;;  %v3440_v28 = vld [vmem:[#allocation13 + $0xfe0] sm:$0xff] }
 0x457   : > { %6071 = vmatprep.subr.bf16.mxu1 %v6070_v24  ;;  %v6156_v24 = vpack.c.bf16 %v3378_v15, %v3374_v10  ;;  %v3413_v10 = vld [vmem:[#allocation13 + $0xf08] sm:$0xff]  ;;  %v3438_v1 = vld [vmem:[#allocation13 + $0xfd0] sm:$0xff] }
 0x458   : > { %3103 = vmatmul.mubr.f32.vlgmr.msra.gmra.mrb[8].mxu0 %v3023_v30  ;;  %v3417_v15 = vld [vmem:[#allocation13 + $0xf28] sm:$0xff] }
 0x459   : > { %3257 = vmatmul.mubr.f32.vlgmr.msra.gmra.mrb[16].mxu1 %v3023_v30  ;;  %3108 = vmatprep.mubr.f32.mxu0 %v7778_v9  ;;  %v6088_v30 = vpack.c.bf16 %v3384_v33, %v3380_v3  ;;  %v3418_v33 = vld [vmem:[#allocation13 + $0xf30] sm:$0xff] }
 0x45a   : > { %6001 = vmatpush1.bf16.msra.mxu0 %v6000_v41  ;;  %3262 = vmatprep.mubr.f32.mxu1 %v7778_v9  ;;  %v3029_v9 = vsel %vm3020_vm11, %v3027_v26, %v7792_v54  ;;  %v3523_v41 = vsel %vm3517_vm13, %v3521_v34, %v3522_v22  ;;  %v6092_v26 = vpack.c.bf16 %v3392_v6, %v3388_v44  ;;  %v3425_v34 = vld [vmem:[#allocation13 + $0xf68] sm:$0xff]  ;;  %v3431_v6 = vld [vmem:[#allocation13 + $0xf98] sm:$0xff] }
 0x45b   : > { %6073 = vmatpush1.bf16.msra.mxu1 %v6072_v42  ;;  %6003 = vmatprep.subr.bf16.mxu0 %v6002_v43  ;;  %v6160_v42 = vpack.c.bf16 %v3386_v58, %v3382_v20  ;;  %v6090_v43 = vpack.c.bf16 %v3393_v37, %v3389_v36  ;;  %v3421_v20 = vld [vmem:[#allocation13 + $0xf48] sm:$0xff]  ;;  %v3427_v58 = vld [vmem:[#allocation13 + $0xf78] sm:$0xff] }
 0x45c   : > { %3109 = vmatmul.mubr.f32.gmra.mrb[10].mxu0 %v3022_v23  ;;  %6075 = vmatprep.subr.bf16.mxu1 %v6074_v47  ;;  %v6162_v47 = vpack.c.bf16 %v3395_v40, %v3391_v39  ;;  %v3420_v39 = vld [vmem:[#allocation13 + $0xf40] sm:$0xff]  ;;  %v3433_v44 = vld [vmem:[#allocation13 + $0xfa8] sm:$0xff] }
 0x45d   : > { %3263 = vmatmul.mubr.f32.gmra.mrb[18].mxu1 %v3022_v23  ;;  %3179 = vmatprep.mubr.f32.mxu0 %v7170_v0  ;;  %v3387_v23 = vld [vmem:[#allocation13 + $0xe38] sm:$0xff]  ;;  %v3424_v40 = vld [vmem:[#allocation13 + $0xf60] sm:$0xff] }
 0x45e   : > { %6005 = vmatpush1.bf16.msra.mxu0 %v6004_v55  ;;  %3333 = vmatprep.mubr.f32.mxu1 %v7170_v0  ;;  %v6158_v14 = vpack.c.bf16 %v3387_v23, %v3383_v62  ;;  %v6094_v55 = vpack.c.bf16 %v3401_v50, %v3397_v49  ;;  %v3412_v62 = vld [vmem:[#allocation13 + $0xf00] sm:$0xff] }
 0x45f   : > { %6077 = vmatpush1.bf16.msra.mxu1 %v6076_v56  ;;  %6079 = vmatprep.subr.bf16.mxu0 %v6078_v5  ;;  %v3396_v56 = vld [vmem:[#allocation13 + $0xe80] sm:$0xff] }
 0x460   : > { %6151 = vmatprep.subr.bf16.mxu1 %v6150_v60  ;;  %v3400_v5 = vld [vmem:[#allocation13 + $0xea0] sm:$0xff]  ;;  %v3402_v60 = vld [vmem:[#allocation13 + $0xeb0] sm:$0xff] }
 0x461   : > { %5536 = vmatmul.mubr.msk.f32.vlgmr.msra.gmra.mrb[8].mxu0 %vm398_vm0, %v3029_v9  ;;  %v3416_v23 = vld [vmem:[#allocation13 + $0xf20] sm:$0xff] }
 0x462   : > { %5538 = vmatmul.mubr.msk.f32.vlgmr.msra.gmra.mrb[16].mxu1 %vm398_vm0, %v3029_v9  ;;  %6081 = vmatpush1.bf16.msra.mxu0 %v6080_v38  ;;  %v6096_v9 = vpack.c.bf16 %v3400_v5, %v3396_v56  ;;  %v6168_v38 = vpack.c.bf16 %v3402_v60, %v3398_v31  ;;  %v6104_v36 = vpack.c.bf16 %v3416_v23, %v3412_v62  ;;  %v3428_v50 = vld [vmem:[#allocation13 + $0xf80] sm:$0xff]  ;;  %v3441_v56 = vld [vmem:[#allocation13 + $0xfe8] sm:$0xff]  ;;  %v3439_v5 = vld [vmem:[#allocation13 + $0xfd8] sm:$0xff] }
 0x463   : > { %6153 = vmatpush1.bf16.msra.mxu1 %v6152_v13  ;;  %3185 = vmatprep.mubr.f32.mxu0 %v7170_v0  ;;  %v3408_v13 = vld [vmem:[#allocation13 + $0xee0] sm:$0xff]  ;;  %v3443_v31 = vld [vmem:[#allocation13 + $0xff8] sm:$0xff]  ;;  %v3457_v62 = vld [vmem:[#allocation13 + $0x1068] sm:$0xff] }
 0x464   : > { %3339 = vmatprep.mubr.f32.mxu1 %v7170_v0  ;;  %6083 = vmatprep.subr.bf16.mxu0 %v6082_v45  ;;  %v3410_v45 = vld [vmem:[#allocation13 + $0xef0] sm:$0xff]  ;;  %v6100_v29 = vpack.c.bf16 %v3408_v13, %v3404_v4  ;;  %v3449_v4 = vld [vmem:[#allocation13 + $0x1028] sm:$0xff]  ;;  %v3447_v13 = vld [vmem:[#allocation13 + $0x1018] sm:$0xff] }
 0x465   : > { %5537 = vmatmul.mubr.msk.f32.gmra.mrb[10].mxu0 %vm398_vm0, %v7792_v54  ;;  %6155 = vmatprep.subr.bf16.mxu1 %v6154_v16  ;;  %v3415_v16 = vld [vmem:[#allocation13 + $0xf18] sm:$0xff]  ;;  %v6172_v52 = vpack.c.bf16 %v3410_v45, %v3406_v7 }
 0x466   : > { %5539 = vmatmul.mubr.msk.f32.gmra.mrb[18].mxu1 %vm398_vm0, %v7792_v54  ;;  %6085 = vmatpush1.bf16.msra.mxu0 %v6084_v21  ;;  %v6164_v54 = vpack.c.bf16 %v3394_v48, %v3390_v46  ;;  %v6102_v21 = vpack.c.bf16 %v3417_v15, %v3413_v10  ;;  %v6174_v3 = vpack.c.bf16 %v3419_v17, %v3415_v16  ;;  %v3435_v46 = vld [vmem:[#allocation13 + $0xfb8] sm:$0xff]  ;;  %v3444_v15 = vld [vmem:[#allocation13 + $0x1000] sm:$0xff]  ;;  %v3446_v17 = vld [vmem:[#allocation13 + $0x1010] sm:$0xff] }
 0x467   : > { %3605 = vmatprep.mubr.f32.mxu0 %v3523_v41  ;;  %6157 = vmatpush1.bf16.msra.mxu1 %v6156_v24  ;;  %v3414_v24 = vld [vmem:[#allocation13 + $0xf10] sm:$0xff]  ;;  %v3451_v7 = vld [vmem:[#allocation13 + $0x1038] sm:$0xff]  ;;  %v3448_v16 = vld [vmem:[#allocation13 + $0x1020] sm:$0xff] }
 0x468   : > { %3759 = vmatprep.mubr.f32.mxu1 %v3523_v41  ;;  %6087 = vmatprep.subr.bf16.mxu0 %v6086_v35  ;;  %v3423_v35 = vld [vmem:[#allocation13 + $0xf58] sm:$0xff]  ;;  %v6176_v37 = vpack.c.bf16 %v3418_v33, %v3414_v24  ;;  %v3422_v41 = vld [vmem:[#allocation13 + $0xf50] sm:$0xff] }
 0x469   : > { %6159 = vmatprep.subr.bf16.mxu1 %v6158_v14  ;;  %v6106_v14 = vpack.c.bf16 %v3425_v34, %v3421_v20  ;;  %v3455_v23 = vld [vmem:[#allocation13 + $0x1058] sm:$0xff]  ;;  %v3452_v34 = vld [vmem:[#allocation13 + $0x1040] sm:$0xff] }
 0x46a   : > { %6089 = vmatpush1.bf16.msra.mxu0 %v6088_v30  ;;  %v6178_v30 = vpack.c.bf16 %v3427_v58, %v3423_v35  ;;  %v3459_v24 = vld [vmem:[#allocation13 + $0x1078] sm:$0xff]  ;;  %v3456_v35 = vld [vmem:[#allocation13 + $0x1060] sm:$0xff]  ;;  %v3454_v58 = vld [vmem:[#allocation13 + $0x1050] sm:$0xff] }
 0x46b   : > { %6161 = vmatpush1.bf16.msra.mxu1 %v6160_v42  ;;  %6091 = vmatprep.subr.bf16.mxu0 %v6090_v43  ;;  %v3426_v42 = vld [vmem:[#allocation13 + $0xf70] sm:$0xff]  ;;  %v3429_v43 = vld [vmem:[#allocation13 + $0xf88] sm:$0xff] }
 0x46c   : > { %6163 = vmatprep.subr.bf16.mxu1 %v6162_v47  ;;  %v6108_v47 = vpack.c.bf16 %v3424_v40, %v3420_v39  ;;  %v6180_v48 = vpack.c.bf16 %v3426_v42, %v3422_v41  ;;  %v6110_v49 = vpack.c.bf16 %v3433_v44, %v3429_v43  ;;  %v3465_v39 = vld [vmem:[#allocation13 + $0x10a8] sm:$0xff]  ;;  %v3463_v40 = vld [vmem:[#allocation13 + $0x1098] sm:$0xff]  ;;  %v3460_v44 = vld [vmem:[#allocation13 + $0x1080] sm:$0xff] }
 0x46d   : > { %v3467_v41 = vld [vmem:[#allocation13 + $0x10b8] sm:$0xff] }
 0x46e   : > { %6093 = vmatpush1.bf16.msra.mxu0 %v6092_v26  ;;  %v6182_v26 = vpack.c.bf16 %v3435_v46, %v3431_v6  ;;  %v3464_v6 = vld [vmem:[#allocation13 + $0x10a0] sm:$0xff]  ;;  %v3462_v46 = vld [vmem:[#allocation13 + $0x1090] sm:$0xff] }
 0x46f   : > { %6165 = vmatpush1.bf16.msra.mxu1 %v6164_v54  ;;  %6095 = vmatprep.subr.bf16.mxu0 %v6094_v55  ;;  %v3434_v54 = vld [vmem:[#allocation13 + $0xfb0] sm:$0xff]  ;;  %v3437_v55 = vld [vmem:[#allocation13 + $0xfc8] sm:$0xff] }
 0x470   : > { %6167 = vmatprep.subr.bf16.mxu1 %v6166_v57  ;;  %v6112_v57 = vpack.c.bf16 %v3432_v51, %v3428_v50  ;;  %v6184_v60 = vpack.c.bf16 %v3434_v54, %v3430_v53  ;;  %v6114_v61 = vpack.c.bf16 %v3441_v56, %v3437_v55  ;;  %v3473_v50 = vld [vmem:[#allocation13 + $0x10e8] sm:$0xff]  ;;  %v3471_v51 = vld [vmem:[#allocation13 + $0x10d8] sm:$0xff]  ;;  %v3468_v56 = vld [vmem:[#allocation13 + $0x10c0] sm:$0xff] }
 0x471   : > { %v3475_v53 = vld [vmem:[#allocation13 + $0x10f8] sm:$0xff] }
 0x472   : > { %6097 = vmatpush1.bf16.msra.mxu0 %v6096_v9  ;;  %v6186_v9 = vpack.c.bf16 %v3443_v31, %v3439_v5  ;;  %v3472_v5 = vld [vmem:[#allocation13 + $0x10e0] sm:$0xff]  ;;  %v3470_v31 = vld [vmem:[#allocation13 + $0x10d0] sm:$0xff] }
 0x473   : > { %6169 = vmatpush1.bf16.msra.mxu1 %v6168_v38  ;;  %6099 = vmatprep.subr.bf16.mxu0 %v6098_v2  ;;  %v3442_v38 = vld [vmem:[#allocation13 + $0xff0] sm:$0xff]  ;;  %v3445_v2 = vld [vmem:[#allocation13 + $0x1008] sm:$0xff] }
 0x474   : > { %6171 = vmatprep.subr.bf16.mxu1 %v6170_v8  ;;  %v6116_v8 = vpack.c.bf16 %v3440_v28, %v3436_v18  ;;  %v6188_v45 = vpack.c.bf16 %v3442_v38, %v3438_v1  ;;  %v6118_v10 = vpack.c.bf16 %v3449_v4, %v3445_v2  ;;  %v3481_v18 = vld [vmem:[#allocation13 + $0x1128] sm:$0xff]  ;;  %v3479_v28 = vld [vmem:[#allocation13 + $0x1118] sm:$0xff]  ;;  %v3476_v4 = vld [vmem:[#allocation13 + $0x1100] sm:$0xff] }
 0x475   : > { %v3483_v1 = vld [vmem:[#allocation13 + $0x1138] sm:$0xff] }
 0x476   : > { %6101 = vmatpush1.bf16.msra.mxu0 %v6100_v29  ;;  %v6190_v29 = vpack.c.bf16 %v3451_v7, %v3447_v13  ;;  %v3480_v13 = vld [vmem:[#allocation13 + $0x1120] sm:$0xff]  ;;  %v3478_v7 = vld [vmem:[#allocation13 + $0x1110] sm:$0xff] }
 0x477   : > { %6173 = vmatpush1.bf16.msra.mxu1 %v6172_v52  ;;  %6103 = vmatprep.subr.bf16.mxu0 %v6102_v21  ;;  %v3450_v52 = vld [vmem:[#allocation13 + $0x1030] sm:$0xff]  ;;  %v3453_v21 = vld [vmem:[#allocation13 + $0x1048] sm:$0xff] }
 0x478   : > { %6175 = vmatprep.subr.bf16.mxu1 %v6174_v3  ;;  %v6120_v3 = vpack.c.bf16 %v3448_v16, %v3444_v15  ;;  %v6192_v33 = vpack.c.bf16 %v3450_v52, %v3446_v17  ;;  %v6122_v20 = vpack.c.bf16 %v3457_v62, %v3453_v21  ;;  %v3489_v15 = vld [vmem:[#allocation13 + $0x1168] sm:$0xff]  ;;  %v3487_v16 = vld [vmem:[#allocation13 + $0x1158] sm:$0xff]  ;;  %v3484_v62 = vld [vmem:[#allocation13 + $0x1140] sm:$0xff] }
 0x479   : > { %v3491_v17 = vld [vmem:[#allocation13 + $0x1178] sm:$0xff] }
 0x47a   : > { %6105 = vmatpush1.bf16.msra.mxu0 %v6104_v36  ;;  %v6194_v36 = vpack.c.bf16 %v3459_v24, %v3455_v23  ;;  %v3488_v23 = vld [vmem:[#allocation13 + $0x1160] sm:$0xff]  ;;  %v3486_v24 = vld [vmem:[#allocation13 + $0x1150] sm:$0xff] }
 0x47b   : > { %6177 = vmatpush1.bf16.msra.mxu1 %v6176_v37  ;;  %6107 = vmatprep.subr.bf16.mxu0 %v6106_v14  ;;  %v3458_v37 = vld [vmem:[#allocation13 + $0x1070] sm:$0xff]  ;;  %v3461_v14 = vld [vmem:[#allocation13 + $0x1088] sm:$0xff] }
 0x47c   : > { %6179 = vmatprep.subr.bf16.mxu1 %v6178_v30  ;;  %v6124_v30 = vpack.c.bf16 %v3456_v35, %v3452_v34  ;;  %v6196_v42 = vpack.c.bf16 %v3458_v37, %v3454_v58  ;;  %v6126_v43 = vpack.c.bf16 %v3465_v39, %v3461_v14  ;;  %v3497_v34 = vld [vmem:[#allocation13 + $0x11a8] sm:$0xff]  ;;  %v3495_v35 = vld [vmem:[#allocation13 + $0x1198] sm:$0xff] }
 0x47d   : > { %v3499_v58 = vld [vmem:[#allocation13 + $0x11b8] sm:$0xff]  ;;  %v3361_v37 = vld [vmem:[#allocation5 + $0x38] sm:$0x1] }
 0x47e   : > { %6109 = vmatpush1.bf16.msra.mxu0 %v6108_v47  ;;  %v6198_v47 = vpack.c.bf16 %v3467_v41, %v3463_v40  ;;  %v3354_v39 = vld [vmem:[#allocation5] sm:$0xf8]  ;;  %v3360_v41 = vld [vmem:[#allocation5 + $0x30] sm:$0x1] }
 0x47f   : > { %6181 = vmatpush1.bf16.msra.mxu1 %v6180_v48  ;;  %6111 = vmatprep.subr.bf16.mxu0 %v6110_v49  ;;  %v3466_v48 = vld [vmem:[#allocation13 + $0x10b0] sm:$0xff]  ;;  %v3469_v49 = vld [vmem:[#allocation13 + $0x10c8] sm:$0xff] }
 0x480   : > { %6183 = vmatprep.subr.bf16.mxu1 %v6182_v26  ;;  %v6128_v26 = vpack.c.bf16 %v3464_v6, %v3460_v44  ;;  %v6200_v54 = vpack.c.bf16 %v3466_v48, %v3462_v46  ;;  %v6130_v55 = vpack.c.bf16 %v3473_v50, %v3469_v49  ;;  %v3496_v44 = vld [vmem:[#allocation13 + $0x11a0] sm:$0xff]  ;;  %v3494_v6 = vld [vmem:[#allocation13 + $0x1190] sm:$0xff]  ;;  %v3529_v46 = vrot.slane %v3361_v37, 3  ;;  %v3501_v48 = vld [vmem:[#allocation13 + $0x11c8] sm:$0xff] }
 0x481   : > { %v3505_v49 = vld [vmem:[#allocation13 + $0x11e8] sm:$0xff]  ;;  %v3518_v50 = vrot.slane %v3354_v39, 3  ;;  %v3874_v37 = vld [vmem:[#allocation13 + $0x1250] sm:$0xff] }
 0x482   : > { %6113 = vmatpush1.bf16.msra.mxu0 %v6112_v57  ;;  %v6202_v57 = vpack.c.bf16 %v3475_v53, %v3471_v51  ;;  %v3503_v51 = vld [vmem:[#allocation13 + $0x11d8] sm:$0xff] }
 0x483   : > { %6185 = vmatpush1.bf16.msra.mxu1 %v6184_v60  ;;  %6115 = vmatprep.subr.bf16.mxu0 %v6114_v61  ;;  %v3474_v60 = vld [vmem:[#allocation13 + $0x10f0] sm:$0xff]  ;;  %v3477_v61 = vld [vmem:[#allocation13 + $0x1108] sm:$0xff]  ;;  %v3507_v53 = vld [vmem:[#allocation13 + $0x11f8] sm:$0xff] }
 0x484   : > { %6187 = vmatprep.subr.bf16.mxu1 %v6186_v9  ;;  %v6132_v9 = vpack.c.bf16 %v3472_v5, %v3468_v56  ;;  %v6204_v38 = vpack.c.bf16 %v3474_v60, %v3470_v31  ;;  %v6134_v2 = vpack.c.bf16 %v3481_v18, %v3477_v61  ;;  %v3527_v5 = vrot.slane %v3360_v41, 3  ;;  %v3356_v60 = vld [vmem:[#allocation5 + $0x10] sm:$0xf8]  ;;  %v7813_v61 = vld [vmem:[#allocation5 + $0x28] sm:$0xff] }
 0x485   : > { %v6146_v31 = vpack.c.bf16 %v3505_v49, %v3501_v48  ;;  %v3530_v18 = vsel %vm3517_vm13, %v3522_v22, %v3529_v46  ;;  %v3881_v41 = vld [vmem:[#allocation13 + $0x1288] sm:$0xff]  ;;  %v3883_v46 = vld [vmem:[#allocation13 + $0x1298] sm:$0xff]  ;;  %v3880_v49 = vld [vmem:[#allocation13 + $0x1280] sm:$0xff] }
 0x486   : > { %6117 = vmatpush1.bf16.msra.mxu0 %v6116_v8  ;;  %v6206_v8 = vpack.c.bf16 %v3483_v1, %v3479_v28  ;;  %v6218_v28 = vpack.c.bf16 %v3507_v53, %v3503_v51  ;;  %v3506_v1 = vld [vmem:[#allocation13 + $0x11f0] sm:$0xff] }
 0x487   : > { %6189 = vmatpush1.bf16.msra.mxu1 %v6188_v45  ;;  %6119 = vmatprep.subr.bf16.mxu0 %v6118_v10  ;;  %v3482_v45 = vld [vmem:[#allocation13 + $0x1130] sm:$0xff]  ;;  %v3485_v10 = vld [vmem:[#allocation13 + $0x1148] sm:$0xff] }
 0x488   : > { %6191 = vmatprep.subr.bf16.mxu1 %v6190_v29  ;;  %v6136_v29 = vpack.c.bf16 %v3480_v13, %v3476_v4  ;;  %v6208_v52 = vpack.c.bf16 %v3482_v45, %v3478_v7  ;;  %v6138_v21 = vpack.c.bf16 %v3489_v15, %v3485_v10  ;;  %v3871_v4 = vld [vmem:[#allocation13 + $0x1238] sm:$0xff]  ;;  %v3524_v7 = vrot.slane %v3356_v60, 3  ;;  %v3864_v10 = vld [vmem:[#allocation13 + $0x1200] sm:$0xff]  ;;  %v3882_v51 = vld [vmem:[#allocation13 + $0x1290] sm:$0xff] }
 0x489   : > { %v3868_v15 = vld [vmem:[#allocation13 + $0x1220] sm:$0xff] }
 0x48a   : > { %6121 = vmatpush1.bf16.msra.mxu0 %v6120_v3  ;;  %v6210_v3 = vpack.c.bf16 %v3491_v17, %v3487_v16  ;;  %v3362_v16 = vld [vmem:[#allocation5 + $0x40] sm:$0x1] }
 0x48b   : > { %6193 = vmatpush1.bf16.msra.mxu1 %v6192_v33  ;;  %6123 = vmatprep.subr.bf16.mxu0 %v6122_v20  ;;  %v3490_v33 = vld [vmem:[#allocation13 + $0x1170] sm:$0xff]  ;;  %v3493_v20 = vld [vmem:[#allocation13 + $0x1188] sm:$0xff] }
 0x48c   : > { %6195 = vmatprep.subr.bf16.mxu1 %v6194_v36  ;;  %v6140_v36 = vpack.c.bf16 %v3488_v23, %v3484_v62  ;;  %v6212_v14 = vpack.c.bf16 %v3490_v33, %v3486_v24  ;;  %v6142_v40 = vpack.c.bf16 %v3497_v34, %v3493_v20  ;;  %v3877_v62 = vld [vmem:[#allocation13 + $0x1268] sm:$0xff]  ;;  %v6224_v24 = vpack.c.bf16 %v3868_v15, %v3864_v10  ;;  %v3875_v33 = vld [vmem:[#allocation13 + $0x1258] sm:$0xff]  ;;  %v3896_v15 = vld [vmem:[#allocation13 + $0x1300] sm:$0xff] }
 0x48d   : > { %v3879_v20 = vld [vmem:[#allocation13 + $0x1278] sm:$0xff] }
 0x48e   : > { %6125 = vmatpush1.bf16.msra.mxu0 %v6124_v30  ;;  %v3519_v30 = vrot.slane %v7787_v59, 3  ;;  %v6298_v39 = vpack.c.bf16 %v3879_v20, %v3875_v33 }
 0x48f   : > { %6197 = vmatpush1.bf16.msra.mxu1 %v6196_v42  ;;  %6127 = vmatprep.subr.bf16.mxu0 %v6126_v43  ;;  %v6214_v42 = vpack.c.bf16 %v3499_v58, %v3495_v35  ;;  %v3492_v43 = vld [vmem:[#allocation13 + $0x1180] sm:$0xff] }
 0x490   : > { %6199 = vmatprep.subr.bf16.mxu1 %v6198_v47  ;;  %v3498_v47 = vld [vmem:[#allocation13 + $0x11b0] sm:$0xff]  ;;  %v3520_v56 = vsel %vm3517_vm13, %v3518_v50, %v3519_v30  ;;  %v3528_v45 = vsel %vm3517_vm13, %v3519_v30, %v3527_v5  ;;  %v3872_v35 = vld [vmem:[#allocation13 + $0x1240] sm:$0xff]  ;;  %v3885_v30 = vld [vmem:[#allocation13 + $0x12a8] sm:$0xff] }
 0x491   : > { %v6216_v59 = vpack.c.bf16 %v3498_v47, %v3494_v6  ;;  %v3876_v58 = vld [vmem:[#allocation13 + $0x1260] sm:$0xff]  ;;  %v3887_v47 = vld [vmem:[#allocation13 + $0x12b8] sm:$0xff] }
 0x492   : > { %6129 = vmatpush1.bf16.msra.mxu0 %v6128_v26  ;;  %v6144_v26 = vpack.c.bf16 %v3496_v44, %v3492_v43  ;;  %v6228_v43 = vpack.c.bf16 %v3876_v58, %v3872_v35  ;;  %v7826_v44 = vld [vmem:[#allocation5 + $0x20] sm:$0xff]  ;;  %v3884_v50 = vld [vmem:[#allocation13 + $0x12a0] sm:$0xff] }
 0x493   : > { %6201 = vmatpush1.bf16.msra.mxu1 %v6200_v54  ;;  %6131 = vmatprep.subr.bf16.mxu0 %v6130_v55  ;;  %v3500_v54 = vld [vmem:[#allocation13 + $0x11c0] sm:$0xff]  ;;  %v4019_v6 = vrot.slane %v7826_v44, 4  ;;  %v3891_v5 = vld [vmem:[#allocation13 + $0x12d8] sm:$0xff]  ;;  %v6232_v60 = vpack.c.bf16 %v3884_v50, %v3880_v49  ;;  %v3906_v58 = vld [vmem:[#allocation13 + $0x1350] sm:$0xff] }
 0x494   : > { %6203 = vmatprep.subr.bf16.mxu1 %v6202_v57  ;;  %v3504_v55 = vld [vmem:[#allocation13 + $0x11e0] sm:$0xff]  ;;  %v3502_v57 = vld [vmem:[#allocation13 + $0x11d0] sm:$0xff] }
 0x495   : > { %v6148_v13 = vpack.c.bf16 %v3504_v55, %v3500_v54  ;;  %v6220_v63 = vpack.c.bf16 %v3506_v1, %v3502_v57  ;;  %v3886_v54 = vld [vmem:[#allocation13 + $0x12b0] sm:$0xff]  ;;  %v3889_v55 = vld [vmem:[#allocation13 + $0x12c8] sm:$0xff]  ;;  %v3888_v1 = vld [vmem:[#allocation13 + $0x12c0] sm:$0xff] }
 0x496   : > { %6133 = vmatpush1.bf16.msra.mxu0 %v6132_v9  ;;  %v3865_v9 = vld [vmem:[#allocation13 + $0x1208] sm:$0xff]  ;;  %v3908_v35 = vld [vmem:[#allocation13 + $0x1360] sm:$0xff]  ;;  %v3918_v50 = vld [vmem:[#allocation13 + $0x13b0] sm:$0xff] }
 0x497   : > { %6205 = vmatpush1.bf16.msra.mxu1 %v6204_v38  ;;  %6135 = vmatprep.subr.bf16.mxu0 %v6134_v2  ;;  %v3869_v38 = vld [vmem:[#allocation13 + $0x1228] sm:$0xff]  ;;  %v3867_v2 = vld [vmem:[#allocation13 + $0x1218] sm:$0xff] }
 0x498   : > { %6207 = vmatprep.subr.bf16.mxu1 %v6206_v8  ;;  %v3525_v8 = vrot.slane %v7813_v61, 3  ;;  %v6222_v22 = vpack.c.bf16 %v3869_v38, %v3865_v9  ;;  %v6294_v17 = vpack.c.bf16 %v3871_v4, %v3867_v2  ;;  %v3892_v9 = vld [vmem:[#allocation13 + $0x12e0] sm:$0xff]  ;;  %v3890_v38 = vld [vmem:[#allocation13 + $0x12d0] sm:$0xff] }
 0x499   : > { %v3894_v4 = vld [vmem:[#allocation13 + $0x12f0] sm:$0xff] }
 0x49a   : > { %6137 = vmatpush1.bf16.msra.mxu0 %v6136_v29  ;;  %v3866_v29 = vld [vmem:[#allocation13 + $0x1210] sm:$0xff]  ;;  %v3526_v23 = vsel %vm3517_vm13, %v3524_v7, %v3525_v8  ;;  %v3901_v7 = vld [vmem:[#allocation13 + $0x1328] sm:$0xff] }
 0x49b   : > { %6209 = vmatpush1.bf16.msra.mxu1 %v6208_v52  ;;  %6139 = vmatprep.subr.bf16.mxu0 %v6138_v21  ;;  %v3870_v52 = vld [vmem:[#allocation13 + $0x1230] sm:$0xff]  ;;  %v3873_v21 = vld [vmem:[#allocation13 + $0x1248] sm:$0xff] }
 0x49c   : > { %6211 = vmatprep.subr.bf16.mxu1 %v6210_v3  ;;  %v3531_v3 = vrot.slane %v3362_v16, 3  ;;  %v6296_v34 = vpack.c.bf16 %v3870_v52, %v3866_v29  ;;  %v3900_v16 = vld [vmem:[#allocation13 + $0x1320] sm:$0xff]  ;;  %v3902_v52 = vld [vmem:[#allocation13 + $0x1330] sm:$0xff] }
 0x49e   : > { %6141 = vmatpush1.bf16.msra.mxu0 %v6140_v36  ;;  %v6226_v36 = vpack.c.bf16 %v3877_v62, %v3873_v21  ;;  %v3905_v21 = vld [vmem:[#allocation13 + $0x1348] sm:$0xff] }
 0x49f   : > { %6213 = vmatpush1.bf16.msra.mxu1 %v6212_v14  ;;  %6143 = vmatprep.subr.bf16.mxu0 %v6142_v40  ;;  %v3878_v14 = vld [vmem:[#allocation13 + $0x1270] sm:$0xff]  ;;  %v3858_v40 = vld [vmem:[#allocation5 + $0x8] sm:$0xf0]  ;;  %v3909_v62 = vld [vmem:[#allocation13 + $0x1368] sm:$0xff] }
 0x4a0   : > { %6215 = vmatprep.subr.bf16.mxu1 %v6214_v42  ;;  %v3532_v42 = vsel %vm3517_vm13, %v3525_v8, %v3531_v3  ;;  %v6300_v48 = vpack.c.bf16 %v3878_v14, %v3874_v37  ;;  %v4018_v53 = vrot.slane %v3858_v40, 4  ;;  %v3899_v8 = vld [vmem:[#allocation13 + $0x1318] sm:$0xff]  ;;  %v6240_v3 = vpack.c.bf16 %v3900_v16, %v3896_v15  ;;  %v3910_v37 = vld [vmem:[#allocation13 + $0x1370] sm:$0xff]  ;;  %v3913_v14 = vld [vmem:[#allocation13 + $0x1388] sm:$0xff] }
 0x4a1   : > { %3606 = vmatmul.mubr.f32.vlgmr.msra.gmra.mrb[8].mxu0 %v3520_v56  ;;  %v6242_v20 = vpack.c.bf16 %v3909_v62, %v3905_v21  ;;  %v3915_v40 = vld [vmem:[#allocation13 + $0x1398] sm:$0xff]  ;;  %v3941_v15 = vld [vmem:[#allocation13 + $0x1468] sm:$0xff]  ;;  %v3936_v62 = vld [vmem:[#allocation13 + $0x1440] sm:$0xff] }
 0x4a2   : > { %3760 = vmatmul.mubr.f32.vlgmr.msra.gmra.mrb[16].mxu1 %v3520_v56  ;;  %3611 = vmatprep.mubr.f32.mxu0 %v3530_v18  ;;  %v3893_v56 = vld [vmem:[#allocation13 + $0x12e8] sm:$0xff]  ;;  %v4020_v57 = vsel %vm4014_vm14, %v4018_v53, %v4019_v6  ;;  %v3939_v16 = vld [vmem:[#allocation13 + $0x1458] sm:$0xff] }
 0x4a3   : > { %6145 = vmatpush1.bf16.msra.mxu0 %v6144_v26  ;;  %3765 = vmatprep.mubr.f32.mxu1 %v3530_v18  ;;  %v6230_v26 = vpack.c.bf16 %v3885_v30, %v3881_v41  ;;  %v6304_v18 = vpack.c.bf16 %v3886_v54, %v3882_v51  ;;  %v3919_v41 = vld [vmem:[#allocation13 + $0x13b8] sm:$0xff]  ;;  %v3921_v51 = vld [vmem:[#allocation13 + $0x13c8] sm:$0xff] }
 0x4a4   : > { %6217 = vmatpush1.bf16.msra.mxu1 %v6216_v59  ;;  %6147 = vmatprep.subr.bf16.mxu0 %v6146_v31  ;;  %v6302_v59 = vpack.c.bf16 %v3887_v47, %v3883_v46  ;;  %v3895_v31 = vld [vmem:[#allocation13 + $0x12f8] sm:$0xff]  ;;  %v3912_v46 = vld [vmem:[#allocation13 + $0x1380] sm:$0xff]  ;;  %v6318_v49 = vpack.c.bf16 %v3919_v41, %v3915_v40  ;;  %v3925_v53 = vld [vmem:[#allocation13 + $0x13e8] sm:$0xff] }
 0x4a5   : > { %3612 = vmatmul.mubr.f32.gmra.mrb[10].mxu0 %v3528_v45  ;;  %6219 = vmatprep.subr.bf16.mxu1 %v6218_v28  ;;  %v6234_v28 = vpack.c.bf16 %v3893_v56, %v3889_v55  ;;  %v6306_v2 = vpack.c.bf16 %v3895_v31, %v3891_v5  ;;  %v3916_v47 = vld [vmem:[#allocation13 + $0x13a0] sm:$0xff]  ;;  %v3927_v54 = vld [vmem:[#allocation13 + $0x13f8] sm:$0xff]  ;;  %v3946_v41 = vld [vmem:[#allocation13 + $0x1490] sm:$0xff] }
 0x4a6   : > { %3766 = vmatmul.mubr.f32.gmra.mrb[18].mxu1 %v3528_v45  ;;  %3682 = vmatprep.mubr.f32.mxu0 %v7170_v0  ;;  %v3903_v45 = vld [vmem:[#allocation13 + $0x1338] sm:$0xff]  ;;  %v6248_v55 = vpack.c.bf16 %v3916_v47, %v3912_v46  ;;  %v3920_v5 = vld [vmem:[#allocation13 + $0x13c0] sm:$0xff]  ;;  %v3957_v46 = vld [vmem:[#allocation13 + $0x14e8] sm:$0xff] }
 0x4a7   : > { %6149 = vmatpush1.bf16.msra.mxu0 %v6148_v13  ;;  %3836 = vmatprep.mubr.f32.mxu1 %v7170_v0  ;;  %v3897_v13 = vld [vmem:[#allocation13 + $0x1308] sm:$0xff]  ;;  %v6310_v29 = vpack.c.bf16 %v3903_v45, %v3899_v8  ;;  %v3924_v31 = vld [vmem:[#allocation13 + $0x13e0] sm:$0xff]  ;;  %v3930_v45 = vld [vmem:[#allocation13 + $0x1410] sm:$0xff] }
 0x4a8   : > { %6221 = vmatpush1.bf16.msra.mxu1 %v6220_v63  ;;  %6223 = vmatprep.subr.bf16.mxu0 %v6222_v22  ;;  %v6236_v63 = vpack.c.bf16 %v3892_v9, %v3888_v1  ;;  %v6308_v22 = vpack.c.bf16 %v3894_v4, %v3890_v38  ;;  %v6238_v10 = vpack.c.bf16 %v3901_v7, %v3897_v13  ;;  %v3933_v1 = vld [vmem:[#allocation13 + $0x1428] sm:$0xff]  ;;  %v3931_v9 = vld [vmem:[#allocation13 + $0x1418] sm:$0xff]  ;;  %v3928_v7 = vld [vmem:[#allocation13 + $0x1400] sm:$0xff] }
 0x4a9   : > { %6295 = vmatprep.subr.bf16.mxu1 %v6294_v17  ;;  %v3898_v17 = vld [vmem:[#allocation13 + $0x1310] sm:$0xff]  ;;  %v3935_v38 = vld [vmem:[#allocation13 + $0x1438] sm:$0xff]  ;;  %v3932_v8 = vld [vmem:[#allocation13 + $0x1420] sm:$0xff] }
 0x4aa   : > { %5540 = vmatmul.mubr.msk.f32.vlgmr.msra.gmra.mrb[8].mxu0 %vm398_vm0, %v3526_v23  ;;  %v6312_v33 = vpack.c.bf16 %v3902_v52, %v3898_v17  ;;  %v3943_v17 = vld [vmem:[#allocation13 + $0x1478] sm:$0xff]  ;;  %v3948_v40 = vld [vmem:[#allocation13 + $0x14a0] sm:$0xff] }
 0x4ab   : > { %5542 = vmatmul.mubr.msk.f32.vlgmr.msra.gmra.mrb[16].mxu1 %vm398_vm0, %v3526_v23  ;;  %6225 = vmatpush1.bf16.msra.mxu0 %v6224_v24  ;;  %v3907_v23 = vld [vmem:[#allocation13 + $0x1358] sm:$0xff] }
 0x4ac   : > { %6297 = vmatpush1.bf16.msra.mxu1 %v6296_v34  ;;  %3688 = vmatprep.mubr.f32.mxu0 %v7170_v0  ;;  %v3911_v24 = vld [vmem:[#allocation13 + $0x1378] sm:$0xff]  ;;  %v3904_v34 = vld [vmem:[#allocation13 + $0x1340] sm:$0xff] }
 0x4ad   : > { %3842 = vmatprep.mubr.f32.mxu1 %v7170_v0  ;;  %6227 = vmatprep.subr.bf16.mxu0 %v6226_v36  ;;  %v6314_v36 = vpack.c.bf16 %v3911_v24, %v3907_v23  ;;  %v6244_v30 = vpack.c.bf16 %v3908_v35, %v3904_v34  ;;  %v3940_v23 = vld [vmem:[#allocation13 + $0x1460] sm:$0xff]  ;;  %v3938_v24 = vld [vmem:[#allocation13 + $0x1450] sm:$0xff]  ;;  %v3949_v34 = vld [vmem:[#allocation13 + $0x14a8] sm:$0xff] }
 0x4ae   : > { %5541 = vmatmul.mubr.msk.f32.gmra.mrb[10].mxu0 %vm398_vm0, %v3532_v42  ;;  %6299 = vmatprep.subr.bf16.mxu1 %v6298_v39  ;;  %v3917_v39 = vld [vmem:[#allocation13 + $0x13a8] sm:$0xff]  ;;  %v3947_v35 = vld [vmem:[#allocation13 + $0x1498] sm:$0xff] }
 0x4af   : > { %5543 = vmatmul.mubr.msk.f32.gmra.mrb[18].mxu1 %vm398_vm0, %v3532_v42  ;;  %6229 = vmatpush1.bf16.msra.mxu0 %v6228_v43  ;;  %v6316_v42 = vpack.c.bf16 %v3910_v37, %v3906_v58  ;;  %v6246_v43 = vpack.c.bf16 %v3917_v39, %v3913_v14  ;;  %v3951_v58 = vld [vmem:[#allocation13 + $0x14b8] sm:$0xff]  ;;  %v3944_v39 = vld [vmem:[#allocation13 + $0x1480] sm:$0xff] }
 0x4b0   : > { %4102 = vmatprep.mubr.f32.mxu0 %v4020_v57  ;;  %6301 = vmatpush1.bf16.msra.mxu1 %v6300_v48  ;;  %v3914_v48 = vld [vmem:[#allocation13 + $0x1390] sm:$0xff]  ;;  %v3955_v47 = vld [vmem:[#allocation13 + $0x14d8] sm:$0xff] }
 0x4b1   : > { %4256 = vmatprep.mubr.f32.mxu1 %v4020_v57  ;;  %6231 = vmatprep.subr.bf16.mxu0 %v6230_v26  ;;  %v3923_v26 = vld [vmem:[#allocation13 + $0x13d8] sm:$0xff]  ;;  %v6320_v56 = vpack.c.bf16 %v3918_v50, %v3914_v48  ;;  %v3922_v57 = vld [vmem:[#allocation13 + $0x13d0] sm:$0xff] }
 0x4b2   : > { %6303 = vmatprep.subr.bf16.mxu1 %v6302_v59  ;;  %v6250_v59 = vpack.c.bf16 %v3925_v53, %v3921_v51  ;;  %v3959_v48 = vld [vmem:[#allocation13 + $0x14f8] sm:$0xff]  ;;  %v3952_v53 = vld [vmem:[#allocation13 + $0x14c0] sm:$0xff] }
 0x4b3   : > { %6233 = vmatpush1.bf16.msra.mxu0 %v6232_v60  ;;  %v6322_v60 = vpack.c.bf16 %v3927_v54, %v3923_v26  ;;  %v3956_v26 = vld [vmem:[#allocation13 + $0x14e0] sm:$0xff]  ;;  %v3954_v54 = vld [vmem:[#allocation13 + $0x14d0] sm:$0xff] }
 0x4b4   : > { %6305 = vmatpush1.bf16.msra.mxu1 %v6304_v18  ;;  %6235 = vmatprep.subr.bf16.mxu0 %v6234_v28  ;;  %v3926_v18 = vld [vmem:[#allocation13 + $0x13f0] sm:$0xff]  ;;  %v3929_v28 = vld [vmem:[#allocation13 + $0x1408] sm:$0xff] }
 0x4b5   : > { %6307 = vmatprep.subr.bf16.mxu1 %v6306_v2  ;;  %v6252_v2 = vpack.c.bf16 %v3924_v31, %v3920_v5  ;;  %v6324_v4 = vpack.c.bf16 %v3926_v18, %v3922_v57  ;;  %v6254_v13 = vpack.c.bf16 %v3933_v1, %v3929_v28  ;;  %v3965_v5 = vld [vmem:[#allocation13 + $0x1528] sm:$0xff]  ;;  %v3963_v31 = vld [vmem:[#allocation13 + $0x1518] sm:$0xff]  ;;  %v3960_v1 = vld [vmem:[#allocation13 + $0x1500] sm:$0xff] }
 0x4b6   : > { %v3967_v57 = vld [vmem:[#allocation13 + $0x1538] sm:$0xff] }
 0x4b7   : > { %6237 = vmatpush1.bf16.msra.mxu0 %v6236_v63  ;;  %v6326_v63 = vpack.c.bf16 %v3935_v38, %v3931_v9  ;;  %v3964_v9 = vld [vmem:[#allocation13 + $0x1520] sm:$0xff]  ;;  %v3962_v38 = vld [vmem:[#allocation13 + $0x1510] sm:$0xff] }
 0x4b8   : > { %6309 = vmatpush1.bf16.msra.mxu1 %v6308_v22  ;;  %6239 = vmatprep.subr.bf16.mxu0 %v6238_v10  ;;  %v3934_v22 = vld [vmem:[#allocation13 + $0x1430] sm:$0xff]  ;;  %v3937_v10 = vld [vmem:[#allocation13 + $0x1448] sm:$0xff] }
 0x4b9   : > { %6311 = vmatprep.subr.bf16.mxu1 %v6310_v29  ;;  %v6256_v29 = vpack.c.bf16 %v3932_v8, %v3928_v7  ;;  %v6328_v52 = vpack.c.bf16 %v3934_v22, %v3930_v45  ;;  %v6258_v21 = vpack.c.bf16 %v3941_v15, %v3937_v10  ;;  %v3973_v7 = vld [vmem:[#allocation13 + $0x1568] sm:$0xff]  ;;  %v3971_v8 = vld [vmem:[#allocation13 + $0x1558] sm:$0xff]  ;;  %v3968_v15 = vld [vmem:[#allocation13 + $0x1540] sm:$0xff] }
 0x4ba   : > { %v3975_v45 = vld [vmem:[#allocation13 + $0x1578] sm:$0xff] }
 0x4bb   : > { %6241 = vmatpush1.bf16.msra.mxu0 %v6240_v3  ;;  %v6330_v3 = vpack.c.bf16 %v3943_v17, %v3939_v16  ;;  %v3972_v16 = vld [vmem:[#allocation13 + $0x1560] sm:$0xff]  ;;  %v3970_v17 = vld [vmem:[#allocation13 + $0x1550] sm:$0xff] }
 0x4bc   : > { %6313 = vmatpush1.bf16.msra.mxu1 %v6312_v33  ;;  %6243 = vmatprep.subr.bf16.mxu0 %v6242_v20  ;;  %v3942_v33 = vld [vmem:[#allocation13 + $0x1470] sm:$0xff]  ;;  %v3945_v20 = vld [vmem:[#allocation13 + $0x1488] sm:$0xff] }
 0x4bd   : > { %6315 = vmatprep.subr.bf16.mxu1 %v6314_v36  ;;  %v6260_v36 = vpack.c.bf16 %v3940_v23, %v3936_v62  ;;  %v6332_v37 = vpack.c.bf16 %v3942_v33, %v3938_v24  ;;  %v6262_v14 = vpack.c.bf16 %v3949_v34, %v3945_v20  ;;  %v3981_v62 = vld [vmem:[#allocation13 + $0x15a8] sm:$0xff]  ;;  %v3979_v23 = vld [vmem:[#allocation13 + $0x1598] sm:$0xff]  ;;  %v3976_v34 = vld [vmem:[#allocation13 + $0x1580] sm:$0xff] }
 0x4be   : > { %v3983_v24 = vld [vmem:[#allocation13 + $0x15b8] sm:$0xff] }
 0x4bf   : > { %6245 = vmatpush1.bf16.msra.mxu0 %v6244_v30  ;;  %v6334_v30 = vpack.c.bf16 %v3951_v58, %v3947_v35  ;;  %v3980_v35 = vld [vmem:[#allocation13 + $0x15a0] sm:$0xff]  ;;  %v3978_v58 = vld [vmem:[#allocation13 + $0x1590] sm:$0xff] }
 0x4c0   : > { %6317 = vmatpush1.bf16.msra.mxu1 %v6316_v42  ;;  %6247 = vmatprep.subr.bf16.mxu0 %v6246_v43  ;;  %v3950_v42 = vld [vmem:[#allocation13 + $0x14b0] sm:$0xff]  ;;  %v3953_v43 = vld [vmem:[#allocation13 + $0x14c8] sm:$0xff] }
 0x4c1   : > { %6319 = vmatprep.subr.bf16.mxu1 %v6318_v49  ;;  %v6264_v49 = vpack.c.bf16 %v3948_v40, %v3944_v39  ;;  %v6336_v50 = vpack.c.bf16 %v3950_v42, %v3946_v41  ;;  %v6266_v51 = vpack.c.bf16 %v3957_v46, %v3953_v43  ;;  %v3989_v39 = vld [vmem:[#allocation13 + $0x15e8] sm:$0xff]  ;;  %v3987_v40 = vld [vmem:[#allocation13 + $0x15d8] sm:$0xff]  ;;  %v3984_v46 = vld [vmem:[#allocation13 + $0x15c0] sm:$0xff] }
 0x4c2   : > { %v3991_v41 = vld [vmem:[#allocation13 + $0x15f8] sm:$0xff] }
 0x4c3   : > { %6249 = vmatpush1.bf16.msra.mxu0 %v6248_v55  ;;  %v6338_v55 = vpack.c.bf16 %v3959_v48, %v3955_v47  ;;  %v3988_v47 = vld [vmem:[#allocation13 + $0x15e0] sm:$0xff]  ;;  %v3986_v48 = vld [vmem:[#allocation13 + $0x15d0] sm:$0xff] }
 0x4c4   : > { %6321 = vmatpush1.bf16.msra.mxu1 %v6320_v56  ;;  %6251 = vmatprep.subr.bf16.mxu0 %v6250_v59  ;;  %v3958_v56 = vld [vmem:[#allocation13 + $0x14f0] sm:$0xff]  ;;  %v3961_v59 = vld [vmem:[#allocation13 + $0x1508] sm:$0xff] }
 0x4c5   : > { %6323 = vmatprep.subr.bf16.mxu1 %v6322_v60  ;;  %v6268_v60 = vpack.c.bf16 %v3956_v26, %v3952_v53  ;;  %v6340_v18 = vpack.c.bf16 %v3958_v56, %v3954_v54  ;;  %v6270_v28 = vpack.c.bf16 %v3965_v5, %v3961_v59  ;;  %v3997_v53 = vld [vmem:[#allocation13 + $0x1628] sm:$0xff]  ;;  %v3995_v26 = vld [vmem:[#allocation13 + $0x1618] sm:$0xff] }
 0x4c6   : > { %v3999_v54 = vld [vmem:[#allocation13 + $0x1638] sm:$0xff]  ;;  %v3861_v56 = vld [vmem:[#allocation5 + $0x38] sm:$0x3] }
 0x4c7   : > { %6253 = vmatpush1.bf16.msra.mxu0 %v6252_v2  ;;  %v6342_v2 = vpack.c.bf16 %v3967_v57, %v3963_v31  ;;  %v3857_v5 = vld [vmem:[#allocation5] sm:$0xf0]  ;;  %v3860_v57 = vld [vmem:[#allocation5 + $0x30] sm:$0x3] }
 0x4c8   : > { %6325 = vmatpush1.bf16.msra.mxu1 %v6324_v4  ;;  %6255 = vmatprep.subr.bf16.mxu0 %v6254_v13  ;;  %v3966_v4 = vld [vmem:[#allocation13 + $0x1530] sm:$0xff]  ;;  %v3969_v13 = vld [vmem:[#allocation13 + $0x1548] sm:$0xff] }
 0x4c9   : > { %6327 = vmatprep.subr.bf16.mxu1 %v6326_v63  ;;  %v6272_v63 = vpack.c.bf16 %v3964_v9, %v3960_v1  ;;  %v6344_v22 = vpack.c.bf16 %v3966_v4, %v3962_v38  ;;  %v6274_v10 = vpack.c.bf16 %v3973_v7, %v3969_v13  ;;  %v3992_v1 = vld [vmem:[#allocation13 + $0x1600] sm:$0xff]  ;;  %v3994_v38 = vld [vmem:[#allocation13 + $0x1610] sm:$0xff]  ;;  %v4001_v13 = vld [vmem:[#allocation13 + $0x1648] sm:$0xff] }
 0x4ca   : > { %v3996_v9 = vld [vmem:[#allocation13 + $0x1620] sm:$0xff]  ;;  %v3998_v4 = vld [vmem:[#allocation13 + $0x1630] sm:$0xff]  ;;  %v4005_v7 = vld [vmem:[#allocation13 + $0x1668] sm:$0xff] }
 0x4cb   : > { %6257 = vmatpush1.bf16.msra.mxu0 %v6256_v29  ;;  %v6346_v29 = vpack.c.bf16 %v3975_v45, %v3971_v8  ;;  %v4015_v8 = vrot.slane %v3857_v5, 4  ;;  %v4003_v45 = vld [vmem:[#allocation13 + $0x1658] sm:$0xff] }
 0x4cc   : > { %6329 = vmatpush1.bf16.msra.mxu1 %v6328_v52  ;;  %6259 = vmatprep.subr.bf16.mxu0 %v6258_v21  ;;  %v3974_v52 = vld [vmem:[#allocation13 + $0x1570] sm:$0xff]  ;;  %v3977_v21 = vld [vmem:[#allocation13 + $0x1588] sm:$0xff] }
 0x4cd   : > { %6331 = vmatprep.subr.bf16.mxu1 %v6330_v3  ;;  %v6276_v3 = vpack.c.bf16 %v3972_v16, %v3968_v15  ;;  %v6348_v33 = vpack.c.bf16 %v3974_v52, %v3970_v17  ;;  %v6278_v20 = vpack.c.bf16 %v3981_v62, %v3977_v21  ;;  %v6360_v15 = vpack.c.bf16 %v3998_v4, %v3994_v38  ;;  %v4004_v52 = vld [vmem:[#allocation13 + $0x1660] sm:$0xff]  ;;  %v3859_v21 = vld [vmem:[#allocation5 + $0x10] sm:$0xf0] }
 0x4ce   : > { %v4024_v16 = vrot.slane %v3860_v57, 4  ;;  %v6290_v17 = vpack.c.bf16 %v4005_v7, %v4001_v13 }
 0x4cf   : > { %6261 = vmatpush1.bf16.msra.mxu0 %v6260_v36  ;;  %v6350_v36 = vpack.c.bf16 %v3983_v24, %v3979_v23  ;;  %v4002_v24 = vld [vmem:[#allocation13 + $0x1650] sm:$0xff] }
 0x4d0   : > { %6333 = vmatpush1.bf16.msra.mxu1 %v6332_v37  ;;  %6263 = vmatprep.subr.bf16.mxu0 %v6262_v14  ;;  %v3982_v37 = vld [vmem:[#allocation13 + $0x15b0] sm:$0xff]  ;;  %v3985_v14 = vld [vmem:[#allocation13 + $0x15c8] sm:$0xff] }
 0x4d1   : > { %6335 = vmatprep.subr.bf16.mxu1 %v6334_v30  ;;  %v6280_v30 = vpack.c.bf16 %v3980_v35, %v3976_v34  ;;  %v6352_v42 = vpack.c.bf16 %v3982_v37, %v3978_v58  ;;  %v6282_v43 = vpack.c.bf16 %v3989_v39, %v3985_v14  ;;  %v4022_v34 = vrot.slane %v7813_v61, 4  ;;  %v4354_v37 = vld [vmem:[#allocation14] sm:$0xf] }
 0x4d2   : > { %v4359_v14 = vrot.slane %v4354_v37, %v7593_v25  ;;  %v4367_v39 = vrot.slane %v4354_v37, %v1543_v11 }
 0x4d3   : > { %6265 = vmatpush1.bf16.msra.mxu0 %v6264_v49  ;;  %v6354_v49 = vpack.c.bf16 %v3991_v41, %v3987_v40  ;;  %v4363_v40 = vrot.slane %v4354_v37, %v7596_v27  ;;  %v4371_v41 = vrot.slane %v4354_v37, %v1547_v12  ;;  %v4513_v37 = vld [vmem:[#allocation16 + $0x18] sm:$0xff] }
 0x4d4   : > { %6337 = vmatpush1.bf16.msra.mxu1 %v6336_v50  ;;  %6267 = vmatprep.subr.bf16.mxu0 %v6266_v51  ;;  %v3990_v50 = vld [vmem:[#allocation13 + $0x15f0] sm:$0xff]  ;;  %v3993_v51 = vld [vmem:[#allocation13 + $0x1608] sm:$0xff] }
 0x4d5   : > { %6339 = vmatprep.subr.bf16.mxu1 %v6338_v55  ;;  %v6284_v55 = vpack.c.bf16 %v3988_v47, %v3984_v46  ;;  %v6356_v59 = vpack.c.bf16 %v3990_v50, %v3986_v48  ;;  %v6286_v31 = vpack.c.bf16 %v3997_v53, %v3993_v51 }
 0x4d7   : > { %6269 = vmatpush1.bf16.msra.mxu0 %v6268_v60  ;;  %v6911_v60 = vld [vmem:[#allocation5 + $0x18] sm:$0xff] }
 0x4d8   : > { %6341 = vmatpush1.bf16.msra.mxu1 %v6340_v18  ;;  %6271 = vmatprep.subr.bf16.mxu0 %v6270_v28  ;;  %v4016_v18 = vrot.slane %v6911_v60, 4  ;;  %v6358_v28 = vpack.c.bf16 %v3999_v54, %v3995_v26 }
 0x4d9   : > { %6343 = vmatprep.subr.bf16.mxu1 %v6342_v2  ;;  %v4026_v2 = vrot.slane %v3861_v56, 4 }
 0x4da   : > { %v4025_v35 = vsel %vm4014_vm14, %v4016_v18, %v4024_v16 }
 0x4db   : > { %6273 = vmatpush1.bf16.msra.mxu0 %v6272_v63  ;;  %v4007_v63 = vld [vmem:[#allocation13 + $0x1678] sm:$0xff]  ;;  %v4027_v62 = vsel %vm4014_vm14, %v4019_v6, %v4026_v2 }
 0x4dc   : > { %6345 = vmatpush1.bf16.msra.mxu1 %v6344_v22  ;;  %6275 = vmatprep.subr.bf16.mxu0 %v6274_v10  ;;  %v6288_v22 = vpack.c.bf16 %v3996_v9, %v3992_v1  ;;  %v4017_v10 = vsel %vm4014_vm14, %v4015_v8, %v4016_v18  ;;  %v6362_v23 = vpack.c.bf16 %v4007_v63, %v4003_v45 }
 0x4dd   : > { %6347 = vmatprep.subr.bf16.mxu1 %v6346_v29  ;;  %v4000_v29 = vld [vmem:[#allocation13 + $0x1640] sm:$0xff] }
 0x4df   : > { %6277 = vmatpush1.bf16.msra.mxu0 %v6276_v3  ;;  %v4006_v3 = vld [vmem:[#allocation13 + $0x1670] sm:$0xff] }
 0x4e0   : > { %6349 = vmatpush1.bf16.msra.mxu1 %v6348_v33  ;;  %6279 = vmatprep.subr.bf16.mxu0 %v6278_v20  ;;  %v6292_v33 = vpack.c.bf16 %v4004_v52, %v4000_v29  ;;  %v4021_v20 = vrot.slane %v3859_v21, 4  ;;  %v6364_v58 = vpack.c.bf16 %v4006_v3, %v4002_v24  ;;  %v4541_v24 = vld [vmem:[#allocation16 + $0xe0] sm:$0xff]  ;;  %v4542_v3 = vld [vmem:[#allocation16 + $0xe8] sm:$0xff] }
 0x4e1   : > { %6351 = vmatprep.subr.bf16.mxu1 %v6350_v36  ;;  %v3862_v36 = vld [vmem:[#allocation5 + $0x40] sm:$0x3] }
 0x4e2   : > { %v4023_v44 = vsel %vm4014_vm14, %v4021_v20, %v4022_v34  ;;  %v4028_v6 = vrot.slane %v3862_v36, 4  ;;  %v7179_v20 = vmov 0.0|0.0   ;;  %v4544_v36 = vld [vmem:[#allocation16 + $0xf8] sm:$0xff] }
 0x4e3   : > { %6281 = vmatpush1.bf16.msra.mxu0 %v6280_v30 }
 0x4e4   : > { %6353 = vmatpush1.bf16.msra.mxu1 %v6352_v42  ;;  %6283 = vmatprep.subr.bf16.mxu0 %v6282_v43  ;;  %v4029_v61 = vsel %vm4014_vm14, %v4022_v34, %v4028_v6  ;;  %v6367_v34 = vpack.c.bf16 %v4542_v3, %v4541_v24  ;;  %v4529_v24 = vld [vmem:[#allocation16 + $0x98] sm:$0xff] }
 0x4e5   : > { %6355 = vmatprep.subr.bf16.mxu1 %v6354_v49 }
 0x4e7   : > { %6285 = vmatpush1.bf16.msra.mxu0 %v6284_v55 }
 0x4e8   : > { %6357 = vmatpush1.bf16.msra.mxu1 %v6356_v59  ;;  %6287 = vmatprep.subr.bf16.mxu0 %v6286_v31 }
 0x4e9   : > { %6359 = vmatprep.subr.bf16.mxu1 %v6358_v28 }
 0x4ea   : > { %4103 = vmatmul.mubr.f32.vlgmr.msra.gmra.mrb[8].mxu0 %v4017_v10 }
 0x4eb   : > { %4257 = vmatmul.mubr.f32.vlgmr.msra.gmra.mrb[16].mxu1 %v4017_v10  ;;  %4108 = vmatprep.mubr.f32.mxu0 %v4027_v62 }
 0x4ec   : > { %6289 = vmatpush1.bf16.msra.mxu0 %v6288_v22  ;;  %4262 = vmatprep.mubr.f32.mxu1 %v4027_v62 }
 0x4ed   : > { %6361 = vmatpush1.bf16.msra.mxu1 %v6360_v15  ;;  %6291 = vmatprep.subr.bf16.mxu0 %v6290_v17 }
 0x4ee   : > { %4109 = vmatmul.mubr.f32.gmra.mrb[10].mxu0 %v4025_v35  ;;  %6363 = vmatprep.subr.bf16.mxu1 %v6362_v23 }
 0x4ef   : > { %4263 = vmatmul.mubr.f32.gmra.mrb[18].mxu1 %v4025_v35  ;;  %4179 = vmatprep.mubr.f32.mxu0 %v7170_v0  ;;  %v4511_v35 = vld [vmem:[#allocation16 + $0x8] sm:$0xff] }
 0x4f0   : > { %6293 = vmatpush1.bf16.msra.mxu0 %v6292_v33  ;;  %4333 = vmatprep.mubr.f32.mxu1 %v7170_v0  ;;  %v4510_v33 = vld [vmem:[#allocation16] sm:$0xff] }
 0x4f1   : > { %6365 = vmatpush1.bf16.msra.mxu1 %v6364_v58  ;;  %6366 = vmatprep.subr.bf16.mxu0 %v7179_v20  ;;  %v4543_v58 = vld [vmem:[#allocation16 + $0xf0] sm:$0xff] }
 0x4f2   : > { %6408 = vmatprep.subr.bf16.mxu1 %v7179_v20 }
 0x4f3   : > { %5544 = vmatmul.mubr.msk.f32.vlgmr.msra.gmra.mrb[8].mxu0 %vm398_vm0, %v4023_v44 }
 0x4f4   : > { %5546 = vmatmul.mubr.msk.f32.vlgmr.msra.gmra.mrb[16].mxu1 %vm398_vm0, %v4023_v44  ;;  %4185 = vmatprep.mubr.f32.mxu0 %v7170_v0 }
 0x4f5   : > { %4339 = vmatprep.mubr.f32.mxu1 %v7170_v0  ;;  %6368 = vmatpush1.bf16.msra.mxu0 %v6367_v34  ;;  %v4561_v34 = vld [vmem:[#allocation16 + $0x180] sm:$0xff] }
 0x4f6   : > { %6369 = vmatprep.subr.bf16.mxu0 %v7179_v20 }
 0x4f7   : > { %5545 = vmatmul.mubr.msk.f32.gmra.mrb[10].mxu0 %vm398_vm0, %v4029_v61 }
 0x4f8   : > { %5547 = vmatmul.mubr.msk.f32.gmra.mrb[18].mxu1 %vm398_vm0, %v4029_v61  ;;  %vm4399_vm0 = vcmask 521216   ;;  %v6409_v61 = vpack.c.bf16 %v4511_v35, %v4510_v33  ;;  %v4562_v35 = vld [vmem:[#allocation16 + $0x188] sm:$0xff] }
 0x4fa   : > { %6410 = vmatpush1.bf16.msra.mxu1 %v6409_v61  ;;  %v4531_v61 = vld [vmem:[#allocation16 + $0xa8] sm:$0xff] }
 0x4fb   : > { %6411 = vmatprep.subr.bf16.mxu1 %v7179_v20 }
 0x5c6   : > { %v4181_v30 = vpop.f32.mrb[8].mxu0 }
 0x5c7   : > { %v4376_v42 = vadd.f32 %v4359_v14, %v4181_v30  ;;  %v4335_v43 = vpop.f32.mrb[16].mxu1  ;;  %v4183_v46 = vpop.f32.mrb[9].mxu0  ;;  %v4514_v30 = vld [vmem:[#allocation16 + $0x20] sm:$0xff] }
 0x5c8   : > { %v4378_v0 = vadd.f32 %v4367_v39, %v4335_v43  ;;  %v4377_v47 = vadd.f32 %v4363_v40, %v4183_v46  ;;  %v4337_v48 = vpop.f32.mrb[17].mxu1 }
 0x5c9   : > { %v4384_v49 = vmax.f32 %v4376_v42, 0.0  ;;  %v4379_v50 = vadd.f32 %v4371_v41, %v4337_v48  ;;  %v4515_v42 = vld [vmem:[#allocation16 + $0x28] sm:$0xff]  ;;  %v4547_v48 = vld [vmem:[#allocation16 + $0x110] sm:$0xff] }
 0x5ca   : > { %v4386_v51 = vmax.f32 %v4378_v0, 0.0  ;;  %v4385_v53 = vmax.f32 %v4377_v47, 0.0  ;;  %v4187_v26 = vpop.f32.mrb[10].mxu0  ;;  %v6415_v47 = vpack.c.bf16 %v4515_v42, %v4514_v30  ;;  %v4565_v42 = vld [vmem:[#allocation16 + $0x1a0] sm:$0xff] }
 0x5cb   : > { %4392 = vst [vmem:[#allocation6] sm:$0xff] %v4384_v49  ;;  %v4387_v54 = vmax.f32 %v4379_v50, 0.0  ;;  %v4380_v11 = vadd.f32 %v4359_v14, %v4187_v26  ;;  %v4341_v55 = vpop.f32.mrb[18].mxu1  ;;  %v4189_v56 = vpop.f32.mrb[11].mxu0  ;;  %v6370_v14 = vpack.c.bf16 %v4544_v36, %v4543_v58  ;;  %v4548_v49 = vld [vmem:[#allocation16 + $0x118] sm:$0xff]  ;;  %v4516_v50 = vld [vmem:[#allocation16 + $0x30] sm:$0xff]  ;;  %v6397_v36 = vpack.c.bf16 %v4562_v35, %v4561_v34 }
 0x5cc   : > { %4394 = vst [vmem:[#allocation6 + $0x10] sm:$0xff] %v4386_v51  ;;  %4393 = vst [vmem:[#allocation6 + $0x8] sm:$0xff] %v4385_v53  ;;  %v4382_v19 = vadd.f32 %v4367_v39, %v4341_v55  ;;  %v4381_v12 = vadd.f32 %v4363_v40, %v4189_v56  ;;  %v4343_v59 = vpop.f32.mrb[19].mxu1  ;;  %v6412_v39 = vpack.c.bf16 %v4513_v37, %v4512_v32  ;;  %v4545_v40 = vld [vmem:[#allocation16 + $0x100] sm:$0xff]  ;;  %v4517_v51 = vld [vmem:[#allocation16 + $0x38] sm:$0xff] }
 0x5cd   : > { %4395 = vst.msk [vmem:[#allocation6 + $0x18] sm:$0xff] %vm1588_vm3, %v4387_v54  ;;  %v4388_v5 = vmax.f32 %v4380_v11, 0.0  ;;  %v4383_v31 = vadd.f32 %v4371_v41, %v4343_v59  ;;  %v4546_v41 = vld [vmem:[#allocation16 + $0x108] sm:$0xff]  ;;  %6371 = vmatpush1.bf16.msra.mxu0 %v6370_v14  ;;  %v6376_v53 = vpack.c.bf16 %v4548_v49, %v4547_v48  ;;  %v6418_v26 = vpack.c.bf16 %v4517_v51, %v4516_v50  ;;  %v4549_v54 = vld [vmem:[#allocation16 + $0x120] sm:$0xff]  ;;  %v4551_v59 = vld [vmem:[#allocation16 + $0x130] sm:$0xff] }
 0x5ce   : > { %v4390_v57 = vmax.f32 %v4382_v19, 0.0  ;;  %v4389_v60 = vmax.f32 %v4381_v12, 0.0  ;;  %6413 = vmatpush1.bf16.msra.mxu1 %v6412_v39  ;;  %v6373_v0 = vpack.c.bf16 %v4546_v41, %v4545_v40  ;;  %6372 = vmatprep.subr.bf16.mxu0 %v7179_v20  ;;  %v4550_v11 = vld [vmem:[#allocation16 + $0x128] sm:$0xff]  ;;  %v4518_v55 = vld [vmem:[#allocation16 + $0x40] sm:$0xff]  ;;  %v4563_v37 = vld [vmem:[#allocation16 + $0x190] sm:$0xff]  ;;  %vm4464_vm3 = vcmask 260096  }
 0x5cf   : > { %4396 = vst [vmem:[#allocation6 + $0x20] sm:$0x3f] %v4388_v5  ;;  %v4391_v18 = vmax.f32 %v4383_v31, 0.0  ;;  %6414 = vmatprep.subr.bf16.mxu1 %v7179_v20  ;;  %v4519_v56 = vld [vmem:[#allocation16 + $0x48] sm:$0xff]  ;;  %v6379_v19 = vpack.c.bf16 %v4550_v11, %v4549_v54  ;;  %v4552_v5 = vld [vmem:[#allocation16 + $0x138] sm:$0xff]  ;;  %v4520_v31 = vld [vmem:[#allocation16 + $0x50] sm:$0xff] }
 0x5d0   : > { %4398 = vst [vmem:[#allocation6 + $0x30] sm:$0x3f] %v4390_v57  ;;  %4397 = vst [vmem:[#allocation6 + $0x28] sm:$0x3f] %v4389_v60  ;;  %v6421_v12 = vpack.c.bf16 %v4519_v56, %v4518_v55  ;;  %v4521_v57 = vld [vmem:[#allocation16 + $0x58] sm:$0xff]  ;;  %v6382_v60 = vpack.c.bf16 %v4552_v5, %v4551_v59  ;;  %v4530_v58 = vld [vmem:[#allocation16 + $0xa0] sm:$0xff] }
 0x5d1   : > { %4400 = vst.msk [vmem:[#allocation6 + $0x38] sm:$0x3f] %vm4399_vm0, %v4391_v18  ;;  %6374 = vmatpush1.bf16.msra.mxu0 %v6373_v0  ;;  %v6424_v18 = vpack.c.bf16 %v4521_v57, %v4520_v31  ;;  %v6439_v32 = vpack.c.bf16 %v4531_v61, %v4530_v58  ;;  %v4564_v14 = vld [vmem:[#allocation16 + $0x198] sm:$0xff]  ;;  %v4532_v39 = vld [vmem:[#allocation16 + $0xb0] sm:$0xff]  ;;  %v4566_v0 = vld [vmem:[#allocation16 + $0x1a8] sm:$0xff] }
 0x5d2   : > { %6416 = vmatpush1.bf16.msra.mxu1 %v6415_v47  ;;  %6375 = vmatprep.subr.bf16.mxu0 %v7179_v20  ;;  %v6400_v40 = vpack.c.bf16 %v4564_v14, %v4563_v37  ;;  %v4533_v41 = vld [vmem:[#allocation16 + $0xb8] sm:$0xff]  ;;  %v4534_v47 = vld [vmem:[#allocation16 + $0xc0] sm:$0xff]  ;;  %v6403_v48 = vpack.c.bf16 %v4566_v0, %v4565_v42  ;;  %v4535_v49 = vld [vmem:[#allocation16 + $0xc8] sm:$0xff] }
 0x5d3   : > { %6417 = vmatprep.subr.bf16.mxu1 %v7179_v20  ;;  %v6442_v30 = vpack.c.bf16 %v4533_v41, %v4532_v39  ;;  %v4567_v50 = vld [vmem:[#allocation16 + $0x1b0] sm:$0xff]  ;;  %v4568_v51 = vld [vmem:[#allocation16 + $0x1b8] sm:$0xff]  ;;  %v6445_v54 = vpack.c.bf16 %v4535_v49, %v4534_v47  ;;  %v4855_v34 = vld [vmem:[#allocation16 + $0x2c0] sm:$0xff] }
 0x5d4   : > { %v4401_v28 = vld [vmem:[#allocation6] ss:$8 sm:$0xf]  ;;  %v4403_v1 = vld [vmem:[#allocation6 + $0x1] ss:$8 sm:$0xf] }
 0x5d5   : > { %v4408_v9 = vld [vmem:[#allocation6 + $0x2] ss:$8 sm:$0xf]  ;;  %v4410_v38 = vld [vmem:[#allocation6 + $0x3] ss:$8 sm:$0xf]  ;;  %v4404_v2 = vmax.f32 %v4401_v28, %v4403_v1  ;;  %6377 = vmatpush1.bf16.msra.mxu0 %v6376_v53 }
 0x5d6   : > { %v4416_v4 = vld [vmem:[#allocation6 + $0x4] ss:$8 sm:$0xf]  ;;  %v4418_v13 = vld [vmem:[#allocation6 + $0x5] ss:$8 sm:$0xf]  ;;  %v4411_v7 = vmax.f32 %v4408_v9, %v4410_v38  ;;  %6419 = vmatpush1.bf16.msra.mxu1 %v6418_v26  ;;  %6378 = vmatprep.subr.bf16.mxu0 %v7179_v20 }
 0x5d7   : > { %v4424_v8 = vld [vmem:[#allocation6 + $0x6] ss:$8 sm:$0xf]  ;;  %v4426_v45 = vld [vmem:[#allocation6 + $0x7] ss:$8 sm:$0xf]  ;;  %v4419_v63 = vmax.f32 %v4416_v4, %v4418_v13  ;;  %6420 = vmatprep.subr.bf16.mxu1 %v7179_v20 }
 0x5d8   : > { %4405 = vst.msk [vmem:[#allocation7] ss:$8 sm:$0xf] %vm7614_vm4, %v4404_v2  ;;  %v4432_v22 = vld [vmem:[#allocation6 + $0x20] ss:$8 sm:$0xf]  ;;  %v4427_v15 = vmax.f32 %v4424_v8, %v4426_v45 }
 0x5d9   : > { %v4434_v10 = vld [vmem:[#allocation6 + $0x21] ss:$8 sm:$0xf]  ;;  %4413 = vst.msk [vmem:[#allocation7 + $0x1] ss:$8 sm:$0xf] %vm7614_vm4, %v4411_v7  ;;  %6380 = vmatpush1.bf16.msra.mxu0 %v6379_v19 }
 0x5da   : > { %v4440_v16 = vld [vmem:[#allocation6 + $0x22] ss:$8 sm:$0xf]  ;;  %v4442_v17 = vld [vmem:[#allocation6 + $0x23] ss:$8 sm:$0xf]  ;;  %v4435_v29 = vmax.f32 %v4432_v22, %v4434_v10  ;;  %6422 = vmatpush1.bf16.msra.mxu1 %v6421_v12  ;;  %6381 = vmatprep.subr.bf16.mxu0 %v7179_v20  ;;  %v6406_v12 = vpack.c.bf16 %v4568_v51, %v4567_v50 }
 0x5db   : > { %4421 = vst.msk [vmem:[#allocation7 + $0x2] ss:$8 sm:$0xf] %vm7614_vm4, %v4419_v63  ;;  %v4448_v52 = vld [vmem:[#allocation6 + $0x24] ss:$8 sm:$0xf]  ;;  %v4443_v62 = vmax.f32 %v4440_v16, %v4442_v17  ;;  %6423 = vmatprep.subr.bf16.mxu1 %v7179_v20 }
 0x5dc   : > { %v4450_v21 = vld [vmem:[#allocation6 + $0x25] ss:$8 sm:$0xf]  ;;  %4429 = vst.msk [vmem:[#allocation7 + $0x3] ss:$8 sm:$0xf] %vm7614_vm4, %v4427_v15 }
 0x5dd   : > { %4437 = vst.msk [vmem:[#allocation7 + $0x4] ss:$8 sm:$0xf] %vm7614_vm4, %v4435_v29  ;;  %v4451_v23 = vmax.f32 %v4448_v52, %v4450_v21  ;;  %4445 = vst.msk [vmem:[#allocation7 + $0x5] ss:$8 sm:$0xf] %vm7614_vm4, %v4443_v62  ;;  %6383 = vmatpush1.bf16.msra.mxu0 %v6382_v60 }
 0x5de   : > { %v4553_v28 = vld [vmem:[#allocation16 + $0x140] sm:$0xff]  ;;  %v4554_v1 = vld [vmem:[#allocation16 + $0x148] sm:$0xff]  ;;  %6425 = vmatpush1.bf16.msra.mxu1 %v6424_v18  ;;  %v4555_v13 = vld [vmem:[#allocation16 + $0x150] sm:$0xff]  ;;  %6384 = vmatprep.subr.bf16.mxu0 %v7179_v20 }
 0x5df   : > { %4453 = vst.msk [vmem:[#allocation7 + $0x6] ss:$8 sm:$0xf] %vm7614_vm4, %v4451_v23  ;;  %v4522_v9 = vld [vmem:[#allocation16 + $0x60] sm:$0xff]  ;;  %v4523_v38 = vld [vmem:[#allocation16 + $0x68] sm:$0xff]  ;;  %v6385_v2 = vpack.c.bf16 %v4554_v1, %v4553_v28  ;;  %6426 = vmatprep.subr.bf16.mxu1 %v7179_v20  ;;  %v4556_v7 = vld [vmem:[#allocation16 + $0x158] sm:$0xff] }
 0x5e0   : > { %v6427_v4 = vpack.c.bf16 %v4523_v38, %v4522_v9  ;;  %v4524_v8 = vld [vmem:[#allocation16 + $0x70] sm:$0xff]  ;;  %v4525_v45 = vld [vmem:[#allocation16 + $0x78] sm:$0xff]  ;;  %v6388_v63 = vpack.c.bf16 %v4556_v7, %v4555_v13  ;;  %v4557_v10 = vld [vmem:[#allocation16 + $0x160] sm:$0xff]  ;;  %vm4470_vm4 = vcmask 522496  }
 0x5e1   : > { %6386 = vmatpush1.bf16.msra.mxu0 %v6385_v2  ;;  %v6430_v22 = vpack.c.bf16 %v4525_v45, %v4524_v8  ;;  %v4558_v15 = vld [vmem:[#allocation16 + $0x168] sm:$0xff]  ;;  %v4526_v16 = vld [vmem:[#allocation16 + $0x80] sm:$0xff]  ;;  %v4559_v21 = vld [vmem:[#allocation16 + $0x170] sm:$0xff] }
 0x5e2   : > { %6428 = vmatpush1.bf16.msra.mxu1 %v6427_v4  ;;  %6387 = vmatprep.subr.bf16.mxu0 %v7179_v20  ;;  %v4527_v17 = vld [vmem:[#allocation16 + $0x88] sm:$0xff]  ;;  %v6391_v29 = vpack.c.bf16 %v4558_v15, %v4557_v10  ;;  %v4560_v62 = vld [vmem:[#allocation16 + $0x178] sm:$0xff]  ;;  %v4528_v23 = vld [vmem:[#allocation16 + $0x90] sm:$0xff] }
 0x5e3   : > { %6429 = vmatprep.subr.bf16.mxu1 %v7179_v20  ;;  %v6433_v52 = vpack.c.bf16 %v4527_v17, %v4526_v16  ;;  %v6394_v3 = vpack.c.bf16 %v4560_v62, %v4559_v21  ;;  %v6436_v33 = vpack.c.bf16 %v4529_v24, %v4528_v23  ;;  %v4536_v11 = vld [vmem:[#allocation16 + $0xd0] sm:$0xff]  ;;  %v4537_v55 = vld [vmem:[#allocation16 + $0xd8] sm:$0xff]  ;;  %v4738_v1 = vld [vmem:[#allocation16 + $0x1c8] sm:$0xff] }
 0x5e4   : > { %v6448_v59 = vpack.c.bf16 %v4537_v55, %v4536_v11  ;;  %v4851_v9 = vld [vmem:[#allocation16 + $0x2a0] sm:$0xff]  ;;  %v4852_v38 = vld [vmem:[#allocation16 + $0x2a8] sm:$0xff]  ;;  %v4739_v8 = vld [vmem:[#allocation16 + $0x1d0] sm:$0xff] }
 0x5e5   : > { %6389 = vmatpush1.bf16.msra.mxu0 %v6388_v63  ;;  %v6493_v7 = vpack.c.bf16 %v4852_v38, %v4851_v9  ;;  %v4740_v17 = vld [vmem:[#allocation16 + $0x1d8] sm:$0xff]  ;;  %v4856_v35 = vld [vmem:[#allocation16 + $0x2c8] sm:$0xff]  ;;  %v4743_v61 = vld [vmem:[#allocation16 + $0x1f0] sm:$0xff] }
 0x5e6   : > { %v7875_v44 = vld [vmem:[#allocation7 + $0x8] sm:$0x7f]  ;;  %v7877_v6 = vld [vmem:[#allocation7] sm:$0x7f]  ;;  %v7885_v43 = vld [vmem:[#allocation7 + $0x18] sm:$0x7f]  ;;  %6431 = vmatpush1.bf16.msra.mxu1 %v6430_v22  ;;  %6390 = vmatprep.subr.bf16.mxu0 %v7179_v20  ;;  %v6454_v23 = vpack.c.bf16 %v4740_v17, %v4739_v8 }
 0x5e7   : > { %4473 = vrot.lane.b32.xlu1 %v7875_v44, %s7177_s14  ;;  %4460 = vrot.lane.b32.xlu0 %v7877_v6, %s7177_s14  ;;  %v7887_v46 = vld [vmem:[#allocation7 + $0x10] sm:$0x7f]  ;;  %v4857_v37 = vld [vmem:[#allocation16 + $0x2d0] sm:$0xff]  ;;  %v4858_v14 = vld [vmem:[#allocation16 + $0x2d8] sm:$0xff] }
 0x5e8   : > { %6432 = vmatprep.subr.bf16.mxu1 %v7179_v20  ;;  %v4745_v41 = vld [vmem:[#allocation16 + $0x200] sm:$0xff]  ;;  %v4860_v0 = vld [vmem:[#allocation16 + $0x2e8] sm:$0xff]  ;;  %v4747_v49 = vld [vmem:[#allocation16 + $0x210] sm:$0xff] }
 0x5e9   : > { %6392 = vmatpush1.bf16.msra.mxu0 %v6391_v29  ;;  %v4853_v29 = vld [vmem:[#allocation16 + $0x2b0] sm:$0xff]  ;;  %v4859_v42 = vld [vmem:[#allocation16 + $0x2e0] sm:$0xff]  ;;  %v4748_v50 = vld [vmem:[#allocation16 + $0x218] sm:$0xff] }
 0x5ea   : > { %6434 = vmatpush1.bf16.msra.mxu1 %v6433_v52  ;;  %6393 = vmatprep.subr.bf16.mxu0 %v7179_v20  ;;  %v4854_v52 = vld [vmem:[#allocation16 + $0x2b8] sm:$0xff]  ;;  %v4861_v51 = vld [vmem:[#allocation16 + $0x2f0] sm:$0xff]  ;;  %v4749_v11 = vld [vmem:[#allocation16 + $0x220] sm:$0xff] }
 0x5eb   : > { %4500 = vrot.lane.b32.xlu1 %v7885_v43, %s7177_s14  ;;  %4489 = vrot.lane.b32.xlu0 %v7887_v46, %s7177_s14  ;;  %v6496_v24 = vpack.c.bf16 %v4854_v52, %v4853_v29  ;;  %v4750_v55 = vld [vmem:[#allocation16 + $0x228] sm:$0xff]  ;;  %v4755_v38 = vld [vmem:[#allocation16 + $0x250] sm:$0xff] }
 0x5ec   : > { %6435 = vmatprep.subr.bf16.mxu1 %v7179_v20  ;;  %v4759_v52 = vld [vmem:[#allocation16 + $0x270] sm:$0xff] }
 0x5ed   : > { %6395 = vmatpush1.bf16.msra.mxu0 %v6394_v3  ;;  %v4741_v3 = vld [vmem:[#allocation16 + $0x1e0] sm:$0xff] }
 0x5ee   : > { %6437 = vmatpush1.bf16.msra.mxu1 %v6436_v33  ;;  %6396 = vmatprep.subr.bf16.mxu0 %v7179_v20  ;;  %v4742_v33 = vld [vmem:[#allocation16 + $0x1e8] sm:$0xff] }
 0x5ef   : > { %6438 = vmatprep.subr.bf16.mxu1 %v7179_v20  ;;  %v6457_v58 = vpack.c.bf16 %v4742_v33, %v4741_v3  ;;  %v4761_v33 = vld [vmem:[#allocation16 + $0x280] sm:$0xff] }
 0x5f1   : > { %6398 = vmatpush1.bf16.msra.mxu0 %v6397_v36  ;;  %v6499_v36 = vpack.c.bf16 %v4856_v35, %v4855_v34  ;;  %v4762_v34 = vld [vmem:[#allocation16 + $0x288] sm:$0xff]  ;;  %v4875_v35 = vld [vmem:[#allocation16 + $0x360] sm:$0xff] }
 0x5f2   : > { %6440 = vmatpush1.bf16.msra.mxu1 %v6439_v32  ;;  %6399 = vmatprep.subr.bf16.mxu0 %v7179_v20  ;;  %v4744_v32 = vld [vmem:[#allocation16 + $0x1f8] sm:$0xff] }
 0x5f3   : > { %6441 = vmatprep.subr.bf16.mxu1 %v7179_v20  ;;  %v6460_v39 = vpack.c.bf16 %v4744_v32, %v4743_v61  ;;  %v4763_v32 = vld [vmem:[#allocation16 + $0x290] sm:$0xff] }
 0x5f5   : > { %6401 = vmatpush1.bf16.msra.mxu0 %v6400_v40  ;;  %v6502_v40 = vpack.c.bf16 %v4858_v14, %v4857_v37  ;;  %v4764_v37 = vld [vmem:[#allocation16 + $0x298] sm:$0xff]  ;;  %v4877_v14 = vld [vmem:[#allocation16 + $0x370] sm:$0xff] }
 0x5f6   : > { %6443 = vmatpush1.bf16.msra.mxu1 %v6442_v30  ;;  %6402 = vmatprep.subr.bf16.mxu0 %v7179_v20  ;;  %v4746_v30 = vld [vmem:[#allocation16 + $0x208] sm:$0xff] }
 0x5f7   : > { %6444 = vmatprep.subr.bf16.mxu1 %v7179_v20  ;;  %v6463_v47 = vpack.c.bf16 %v4746_v30, %v4745_v41  ;;  %v4965_v30 = vld [vmem:[#allocation16 + $0x380] sm:$0xff] }
 0x5f9   : > { %6404 = vmatpush1.bf16.msra.mxu0 %v6403_v48  ;;  %v6505_v48 = vpack.c.bf16 %v4860_v0, %v4859_v42  ;;  %v4966_v42 = vld [vmem:[#allocation16 + $0x388] sm:$0xff]  ;;  %v5079_v0 = vld [vmem:[#allocation16 + $0x460] sm:$0xff] }
 0x5fa   : > { %6446 = vmatpush1.bf16.msra.mxu1 %v6445_v54  ;;  %6405 = vmatprep.subr.bf16.mxu0 %v7179_v20 }
 0x5fb   : > { %6447 = vmatprep.subr.bf16.mxu1 %v7179_v20 }
 0x5fd   : > { %6407 = vmatpush1.bf16.msra.mxu0 %v6406_v12  ;;  %v6469_v12 = vpack.c.bf16 %v4750_v55, %v4749_v11  ;;  %v4968_v11 = vld [vmem:[#allocation16 + $0x398] sm:$0xff] }
 0x5fe   : > { %6449 = vmatpush1.bf16.msra.mxu1 %v6448_v59  ;;  %6450 = vmatprep.subr.bf16.mxu0 %v7179_v20 }
 0x5ff   : > { %6492 = vmatprep.subr.bf16.mxu1 %v7179_v20 }
 0x659   : > { %v4474_v53 = vpop.permute.xlu1 %4473  ;;  %v4461_v26 = vpop.permute.xlu0 %4460 }
 0x65a   : > { %v4476_v56 = vmax.f32 %v7875_v44, %v4474_v53  ;;  %v4463_v19 = vmax.f32 %v7877_v6, %v4461_v26  ;;  %v4862_v53 = vld [vmem:[#allocation16 + $0x2f8] sm:$0xff]  ;;  %v6466_v26 = vpack.c.bf16 %v4748_v50, %v4747_v49  ;;  %v6535_v49 = vpack.c.bf16 %v4966_v42, %v4965_v30  ;;  %v5097_v42 = vld [vmem:[#allocation16 + $0x4f0] sm:$0xff] }
 0x65b   : > { %v6508_v54 = vpack.c.bf16 %v4862_v53, %v4861_v51  ;;  %v4984_v30 = vld [vmem:[#allocation16 + $0x418] sm:$0xff] }
 0x65c   : > { %4465 = vst.msk [vmem:[%s7919_s23] sm:$0x7f] %vm4464_vm3, %v4463_v19  ;;  %4478 = vrot.lane.b32.xlu1 %v4476_v56, %s7173_s2  ;;  %4467 = vrot.lane.b32.xlu0 %v4463_v19, %s7177_s14  ;;  %v4864_v19 = vld [vmem:[#allocation16 + $0x308] sm:$0xff] }
 0x65d   : > { %v4490_v5 = vpop.permute.xlu0 %4489  ;;  %v4501_v6 = vpop.permute.xlu1 %4500 }
 0x65e   : > { %v4492_v44 = vmax.f32 %v7887_v46, %v4490_v5  ;;  %v4503_v31 = vmax.f32 %v7885_v43, %v4501_v6  ;;  %v4737_v43 = vld [vmem:[#allocation16 + $0x1c0] sm:$0xff]  ;;  %v4751_v5 = vld [vmem:[#allocation16 + $0x230] sm:$0xff] }
 0x65f   : > { %v6451_v13 = vpack.c.bf16 %v4738_v1, %v4737_v43  ;;  %v4865_v6 = vld [vmem:[#allocation16 + $0x310] sm:$0xff]  ;;  %v4868_v43 = vld [vmem:[#allocation16 + $0x328] sm:$0xff] }
 0x660   : > { %4493 = vst.msk [vmem:[%s7919_s23 + $0x8] sm:$0x7f] %vm4464_vm3, %v4492_v44  ;;  %4483 = vrot.lane.b32.xlu1 %v4476_v56, %s7175_s11  ;;  %4495 = vrot.lane.b32.xlu0 %v4492_v44, %s7177_s14  ;;  %v4863_v56 = vld [vmem:[#allocation16 + $0x300] sm:$0xff]  ;;  %v4752_v44 = vld [vmem:[#allocation16 + $0x238] sm:$0xff] }
 0x661   : > { %v6511_v59 = vpack.c.bf16 %v4864_v19, %v4863_v56  ;;  %v5081_v56 = vld [vmem:[#allocation16 + $0x470] sm:$0xff]  ;;  %v5082_v19 = vld [vmem:[#allocation16 + $0x478] sm:$0xff] }
 0x664   : > { %4505 = vrot.lane.b32.xlu0 %v4503_v31, %s7173_s2  ;;  %v4866_v31 = vld [vmem:[#allocation16 + $0x318] sm:$0xff]  ;;  %s7084_s2 = sshll.u32 %s7180_s9, 4  ;;  %s7085_s2 = int_to_ptr.vmem [resolvable:$false] %s7084_s2 }
 0x665   : > { %s7086_s4 = scalar_lea.vmem %s7085_s2, 32  ;;  %p7087_p13 = scmp.lt.s32.totalorder %s8066_s22, %s7085_s2 }
 0x666   : > { %p7088_p1 = scmp.lt.s32.totalorder %s7086_s4, %s7080_s24 }
 0x668   : > { %p7089_p0 = por %p7088_p1, %p7087_p13 }
 0x66a   : > { %p7090_p6 = pnand %p7089_p0, %p7083_p11 }
 0x6ce   : > { %v4479_v46 = vpop.permute.xlu1 %4478  ;;  %v4468_v57 = vpop.permute.xlu0 %4467 }
 0x6cf   : > { %4471 = vst.msk [vmem:[%s7919_s23] sm:$0x7f] %vm4470_vm4, %v4468_v57  ;;  %v6514_v57 = vpack.c.bf16 %v4866_v31, %v4865_v6  ;;  %v5084_v6 = vld [vmem:[#allocation16 + $0x488] sm:$0xff] }
 0x6d0   : > { %4482 = vst.msk [vmem:[%s7919_s23] sm:$0x7f] %vm4481_vm15, %v4479_v46  ;;  %v6472_v46 = vpack.c.bf16 %v4752_v44, %v4751_v5  ;;  %v4970_v5 = vld [vmem:[#allocation16 + $0x3a8] sm:$0xff]  ;;  %v5083_v44 = vld [vmem:[#allocation16 + $0x480] sm:$0xff] }
 0x6d2   : > { %v4484_v60 = vpop.permute.xlu1 %4483  ;;  %v4496_v18 = vpop.permute.xlu0 %4495 }
 0x6d3   : > { %4487 = vst.msk [vmem:[%s7919_s23] sm:$0x7f] %vm4486_vm1, %v4484_v60  ;;  %v4753_v60 = vld [vmem:[#allocation16 + $0x240] sm:$0xff] }
 0x6d4   : > { %4498 = vst.msk [vmem:[%s7919_s23 + $0x8] sm:$0x7f] %vm4470_vm4, %v4496_v18  ;;  %v4754_v18 = vld [vmem:[#allocation16 + $0x248] sm:$0xff] }
 0x6d5   : > { %v6475_v1 = vpack.c.bf16 %v4754_v18, %v4753_v60  ;;  %v4972_v60 = vld [vmem:[#allocation16 + $0x3b8] sm:$0xff]  ;;  %v5085_v18 = vld [vmem:[#allocation16 + $0x490] sm:$0xff] }
 0x6d6   : > { %v4506_v28 = vpop.permute.xlu0 %4505 }
 0x6d7   : > { %4508 = vst.msk [vmem:[%s7919_s23 + $0x8] sm:$0x7f] %vm4481_vm15, %v4506_v28  ;;  %v4867_v28 = vld [vmem:[#allocation16 + $0x320] sm:$0xff] }
 0x6d8   : > { %v6517_v9 = vpack.c.bf16 %v4868_v43, %v4867_v28  ;;  %v5086_v28 = vld [vmem:[#allocation16 + $0x498] sm:$0xff] }
 0x6de   : > { %v5548_v2 = vld [vmem:[%s7919_s23 + $0x1] ss:$8 sm:$0x3]  ;;  %v4509_v4 = vld [vmem:[%s7919_s23] ss:$8 sm:$0x3] }
 0x6df   : > { %v4573_v45 = vrot.slane %v5548_v2, %v7593_v25  ;;  %v4577_v63 = vrot.slane %v5548_v2, %v7596_v27  ;;  %v4656_v22 = vrot.slane %v4509_v4, %v7593_v25  ;;  %v4660_v10 = vrot.slane %v4509_v4, %v7596_v27  ;;  %v7950_v15 = vld [vmem:[%s7919_s23 + $0x2] ss:$8 sm:$0x3]  ;;  %v7953_v16 = vld [vmem:[%s7919_s23 + $0x3] ss:$8 sm:$0x3] }
 0x6e0   : > { %v4773_v21 = vrot.slane %v7950_v15, %v7596_v27  ;;  %v4887_v62 = vrot.slane %v7953_v16, %v7596_v27  ;;  %v4756_v2 = vld [vmem:[#allocation16 + $0x258] sm:$0xff]  ;;  %v4869_v4 = vld [vmem:[#allocation16 + $0x330] sm:$0xff]  ;;  %v4769_v51 = vrot.slane %v7950_v15, %v7593_v25  ;;  %v4883_v53 = vrot.slane %v7953_v16, %v7593_v25 }
 0x6e1   : > { %5549 = vmatprep.mubr.msk.f32.mxu0 %vm4579_vm2, %v4577_v63  ;;  %5550 = vmatprep.mubr.msk.f32.mxu1 %vm4579_vm2, %v4660_v10  ;;  %v4758_v63 = vld [vmem:[#allocation16 + $0x268] sm:$0xff]  ;;  %v7993_v50 = vld [vmem:[%s7919_s23 + $0x5] ss:$8 sm:$0x3] }
 0x6e2   : > { %4647 = vmatmul.mubr.f32.vlgmr.msra.gmra.mrb[12].mxu0 %v4573_v45  ;;  %4729 = vmatmul.mubr.f32.vlgmr.msra.gmra.mrb[20].mxu1 %v4656_v22  ;;  %v4757_v45 = vld [vmem:[#allocation16 + $0x260] sm:$0xff]  ;;  %v4872_v10 = vld [vmem:[#allocation16 + $0x348] sm:$0xff]  ;;  %v5115_v15 = vrot.slane %v7993_v50, %v7596_v27 }
 0x6e3   : > { %6452 = vmatpush1.bf16.msra.mxu0 %v6451_v13  ;;  %6494 = vmatpush1.bf16.msra.mxu1 %v6493_v7  ;;  %v4870_v13 = vld [vmem:[#allocation16 + $0x338] sm:$0xff]  ;;  %v6478_v7 = vpack.c.bf16 %v4756_v2, %v4755_v38  ;;  %v4871_v22 = vld [vmem:[#allocation16 + $0x340] sm:$0xff]  ;;  %v6481_v17 = vpack.c.bf16 %v4758_v63, %v4757_v45  ;;  %v4974_v38 = vld [vmem:[#allocation16 + $0x3c8] sm:$0xff] }
 0x6e4   : > { %5552 = vmatprep.mubr.msk.f32.mxu0 %vm4579_vm2, %v4773_v21  ;;  %5554 = vmatprep.mubr.msk.f32.mxu1 %vm4579_vm2, %v4887_v62  ;;  %v6520_v8 = vpack.c.bf16 %v4870_v13, %v4869_v4  ;;  %v6523_v29 = vpack.c.bf16 %v4872_v10, %v4871_v22  ;;  %v4760_v21 = vld [vmem:[#allocation16 + $0x278] sm:$0xff]  ;;  %v4873_v62 = vld [vmem:[#allocation16 + $0x350] sm:$0xff]  ;;  %v5087_v2 = vld [vmem:[#allocation16 + $0x4a0] sm:$0xff] }
 0x6e5   : > { %6453 = vmatprep.subr.bf16.mxu0 %v7179_v20  ;;  %6495 = vmatprep.subr.bf16.mxu1 %v7179_v20  ;;  %v5088_v4 = vld [vmem:[#allocation16 + $0x4a8] sm:$0xff]  ;;  %v4976_v45 = vld [vmem:[#allocation16 + $0x3d8] sm:$0xff]  ;;  %v5089_v63 = vld [vmem:[#allocation16 + $0x4b0] sm:$0xff] }
 0x6e6   : > { %v5090_v22 = vld [vmem:[#allocation16 + $0x4b8] sm:$0xff] }
 0x6e7   : > { %6455 = vmatpush1.bf16.msra.mxu0 %v6454_v23  ;;  %6497 = vmatpush1.bf16.msra.mxu1 %v6496_v24  ;;  %v4874_v23 = vld [vmem:[#allocation16 + $0x358] sm:$0xff]  ;;  %v6484_v24 = vpack.c.bf16 %v4760_v21, %v4759_v52  ;;  %v4978_v52 = vld [vmem:[#allocation16 + $0x3e8] sm:$0xff]  ;;  %v5091_v21 = vld [vmem:[#allocation16 + $0x4c0] sm:$0xff] }
 0x6e8   : > { %6456 = vmatprep.subr.bf16.mxu0 %v7179_v20  ;;  %6498 = vmatprep.subr.bf16.mxu1 %v7179_v20  ;;  %v6526_v3 = vpack.c.bf16 %v4874_v23, %v4873_v62  ;;  %v5092_v62 = vld [vmem:[#allocation16 + $0x4c8] sm:$0xff] }
 0x6eb   : > { %6458 = vmatpush1.bf16.msra.mxu0 %v6457_v58  ;;  %6500 = vmatpush1.bf16.msra.mxu1 %v6499_v36  ;;  %v4876_v58 = vld [vmem:[#allocation16 + $0x368] sm:$0xff]  ;;  %v6487_v36 = vpack.c.bf16 %v4762_v34, %v4761_v33  ;;  %v4980_v33 = vld [vmem:[#allocation16 + $0x3f8] sm:$0xff]  ;;  %v5093_v34 = vld [vmem:[#allocation16 + $0x4d0] sm:$0xff] }
 0x6ec   : > { %6459 = vmatprep.subr.bf16.mxu0 %v7179_v20  ;;  %6501 = vmatprep.subr.bf16.mxu1 %v7179_v20  ;;  %v6529_v61 = vpack.c.bf16 %v4876_v58, %v4875_v35  ;;  %v5094_v35 = vld [vmem:[#allocation16 + $0x4d8] sm:$0xff] }
 0x6ef   : > { %6461 = vmatpush1.bf16.msra.mxu0 %v6460_v39  ;;  %6503 = vmatpush1.bf16.msra.mxu1 %v6502_v40  ;;  %v4878_v39 = vld [vmem:[#allocation16 + $0x378] sm:$0xff]  ;;  %v6490_v40 = vpack.c.bf16 %v4764_v37, %v4763_v32  ;;  %v4982_v32 = vld [vmem:[#allocation16 + $0x408] sm:$0xff]  ;;  %v5095_v37 = vld [vmem:[#allocation16 + $0x4e0] sm:$0xff] }
 0x6f0   : > { %6462 = vmatprep.subr.bf16.mxu0 %v7179_v20  ;;  %6504 = vmatprep.subr.bf16.mxu1 %v7179_v20  ;;  %v6532_v41 = vpack.c.bf16 %v4878_v39, %v4877_v14  ;;  %v5096_v14 = vld [vmem:[#allocation16 + $0x4e8] sm:$0xff] }
 0x6f3   : > { %6464 = vmatpush1.bf16.msra.mxu0 %v6463_v47  ;;  %6506 = vmatpush1.bf16.msra.mxu1 %v6505_v48  ;;  %v5080_v47 = vld [vmem:[#allocation16 + $0x468] sm:$0xff]  ;;  %v7990_v48 = vld [vmem:[%s7919_s23 + $0x4] ss:$8 sm:$0x3] }
 0x6f4   : > { %6465 = vmatprep.subr.bf16.mxu0 %v7179_v20  ;;  %6507 = vmatprep.subr.bf16.mxu1 %v7179_v20  ;;  %v5001_v55 = vrot.slane %v7990_v48, %v7596_v27 }
 0x6f7   : > { %6467 = vmatpush1.bf16.msra.mxu0 %v6466_v26  ;;  %6509 = vmatpush1.bf16.msra.mxu1 %v6508_v54  ;;  %v6577_v26 = vpack.c.bf16 %v5080_v47, %v5079_v0  ;;  %v4967_v54 = vld [vmem:[#allocation16 + $0x390] sm:$0xff]  ;;  %v5098_v0 = vld [vmem:[#allocation16 + $0x4f8] sm:$0xff] }
 0x6f8   : > { %6468 = vmatprep.subr.bf16.mxu0 %v7179_v20  ;;  %6510 = vmatprep.subr.bf16.mxu1 %v7179_v20  ;;  %v6538_v16 = vpack.c.bf16 %v4968_v11, %v4967_v54  ;;  %v5100_v54 = vld [vmem:[#allocation16 + $0x508] sm:$0xff] }
 0x6fb   : > { %6470 = vmatpush1.bf16.msra.mxu0 %v6469_v12  ;;  %6512 = vmatpush1.bf16.msra.mxu1 %v6511_v59  ;;  %v6580_v12 = vpack.c.bf16 %v5082_v19, %v5081_v56  ;;  %v4969_v59 = vld [vmem:[#allocation16 + $0x3a0] sm:$0xff]  ;;  %v4987_v56 = vld [vmem:[#allocation16 + $0x430] sm:$0xff]  ;;  %v4988_v19 = vld [vmem:[#allocation16 + $0x438] sm:$0xff] }
 0x6fc   : > { %6471 = vmatprep.subr.bf16.mxu0 %v7179_v20  ;;  %6513 = vmatprep.subr.bf16.mxu1 %v7179_v20  ;;  %v6541_v31 = vpack.c.bf16 %v4970_v5, %v4969_v59  ;;  %v4989_v5 = vld [vmem:[#allocation16 + $0x440] sm:$0xff] }
 0x6ff   : > { %6473 = vmatpush1.bf16.msra.mxu0 %v6472_v46  ;;  %6515 = vmatpush1.bf16.msra.mxu1 %v6514_v57  ;;  %v6583_v46 = vpack.c.bf16 %v5084_v6, %v5083_v44  ;;  %v4971_v57 = vld [vmem:[#allocation16 + $0x3b0] sm:$0xff]  ;;  %v4990_v44 = vld [vmem:[#allocation16 + $0x448] sm:$0xff]  ;;  %v5103_v6 = vld [vmem:[#allocation16 + $0x520] sm:$0xff] }
 0x700   : > { %6474 = vmatprep.subr.bf16.mxu0 %v7179_v20  ;;  %6516 = vmatprep.subr.bf16.mxu1 %v7179_v20  ;;  %v6544_v43 = vpack.c.bf16 %v4972_v60, %v4971_v57  ;;  %v4991_v60 = vld [vmem:[#allocation16 + $0x450] sm:$0xff] }
 0x703   : > { %6476 = vmatpush1.bf16.msra.mxu0 %v6475_v1  ;;  %6518 = vmatpush1.bf16.msra.mxu1 %v6517_v9  ;;  %v6586_v1 = vpack.c.bf16 %v5086_v28, %v5085_v18  ;;  %v4973_v9 = vld [vmem:[#allocation16 + $0x3c0] sm:$0xff]  ;;  %v4992_v18 = vld [vmem:[#allocation16 + $0x458] sm:$0xff]  ;;  %v5105_v28 = vld [vmem:[#allocation16 + $0x530] sm:$0xff] }
 0x704   : > { %6477 = vmatprep.subr.bf16.mxu0 %v7179_v20  ;;  %6519 = vmatprep.subr.bf16.mxu1 %v7179_v20  ;;  %v6547_v13 = vpack.c.bf16 %v4974_v38, %v4973_v9  ;;  %v5193_v38 = vld [vmem:[#allocation16 + $0x540] sm:$0xff] }
 0x707   : > { %6479 = vmatpush1.bf16.msra.mxu0 %v6478_v7  ;;  %6521 = vmatpush1.bf16.msra.mxu1 %v6520_v8  ;;  %v6589_v7 = vpack.c.bf16 %v5088_v4, %v5087_v2  ;;  %v4975_v8 = vld [vmem:[#allocation16 + $0x3d0] sm:$0xff]  ;;  %v5194_v2 = vld [vmem:[#allocation16 + $0x548] sm:$0xff] }
 0x708   : > { %6480 = vmatprep.subr.bf16.mxu0 %v7179_v20  ;;  %6522 = vmatprep.subr.bf16.mxu1 %v7179_v20  ;;  %v6550_v10 = vpack.c.bf16 %v4976_v45, %v4975_v8  ;;  %v6619_v4 = vpack.c.bf16 %v5194_v2, %v5193_v38  ;;  %v5195_v8 = vld [vmem:[#allocation16 + $0x550] sm:$0xff]  ;;  %v5196_v45 = vld [vmem:[#allocation16 + $0x558] sm:$0xff]  ;;  %v5304_v2 = vld [vmem:[#allocation17] sm:$0x1] }
 0x70b   : > { %6482 = vmatpush1.bf16.msra.mxu0 %v6481_v17  ;;  %6524 = vmatpush1.bf16.msra.mxu1 %v6523_v29  ;;  %v6592_v17 = vpack.c.bf16 %v5090_v22, %v5089_v63  ;;  %v4977_v29 = vld [vmem:[#allocation16 + $0x3e0] sm:$0xff]  ;;  %v5111_v63 = vrot.slane %v7993_v50, %v7593_v25 }
 0x70c   : > { %6483 = vmatprep.subr.bf16.mxu0 %v7179_v20  ;;  %6525 = vmatprep.subr.bf16.mxu1 %v7179_v20  ;;  %v6553_v23 = vpack.c.bf16 %v4978_v52, %v4977_v29  ;;  %v5199_v52 = vld [vmem:[#allocation16 + $0x570] sm:$0xff] }
 0x70f   : > { %6485 = vmatpush1.bf16.msra.mxu0 %v6484_v24  ;;  %6527 = vmatpush1.bf16.msra.mxu1 %v6526_v3  ;;  %v6595_v24 = vpack.c.bf16 %v5092_v62, %v5091_v21  ;;  %v4979_v3 = vld [vmem:[#allocation16 + $0x3f0] sm:$0xff]  ;;  %v5200_v21 = vld [vmem:[#allocation16 + $0x578] sm:$0xff]  ;;  %v5202_v62 = vld [vmem:[#allocation16 + $0x588] sm:$0xff] }
 0x710   : > { %6486 = vmatprep.subr.bf16.mxu0 %v7179_v20  ;;  %6528 = vmatprep.subr.bf16.mxu1 %v7179_v20  ;;  %v6556_v58 = vpack.c.bf16 %v4980_v33, %v4979_v3  ;;  %v6628_v50 = vpack.c.bf16 %v5200_v21, %v5199_v52  ;;  %v5204_v3 = vld [vmem:[#allocation16 + $0x598] sm:$0xff] }
 0x713   : > { %6488 = vmatpush1.bf16.msra.mxu0 %v6487_v36  ;;  %6530 = vmatpush1.bf16.msra.mxu1 %v6529_v61  ;;  %v6598_v36 = vpack.c.bf16 %v5094_v35, %v5093_v34  ;;  %v4981_v61 = vld [vmem:[#allocation16 + $0x400] sm:$0xff]  ;;  %v5206_v35 = vld [vmem:[#allocation16 + $0x5a8] sm:$0xff] }
 0x714   : > { %6489 = vmatprep.subr.bf16.mxu0 %v7179_v20  ;;  %6531 = vmatprep.subr.bf16.mxu1 %v7179_v20  ;;  %v6559_v39 = vpack.c.bf16 %v4982_v32, %v4981_v61  ;;  %v5205_v34 = vld [vmem:[#allocation16 + $0x5a0] sm:$0xff]  ;;  %v5208_v61 = vld [vmem:[#allocation16 + $0x5b8] sm:$0xff] }
 0x717   : > { %6491 = vmatpush1.bf16.msra.mxu0 %v6490_v40  ;;  %6533 = vmatpush1.bf16.msra.mxu1 %v6532_v41  ;;  %v6601_v40 = vpack.c.bf16 %v5096_v14, %v5095_v37  ;;  %v4983_v41 = vld [vmem:[#allocation16 + $0x410] sm:$0xff]  ;;  %v5209_v37 = vld [vmem:[#allocation16 + $0x5c0] sm:$0xff]  ;;  %v5210_v14 = vld [vmem:[#allocation16 + $0x5c8] sm:$0xff] }
 0x718   : > { %6534 = vmatprep.subr.bf16.mxu0 %v7179_v20  ;;  %6576 = vmatprep.subr.bf16.mxu1 %v7179_v20  ;;  %v6562_v47 = vpack.c.bf16 %v4984_v30, %v4983_v41  ;;  %v5212_v41 = vld [vmem:[#allocation16 + $0x5d8] sm:$0xff] }
 0x71a   : > { %4842 = vmatmul.mubr.f32.vlgmr.msra.gmra.mrb[14].mxu0 %v4769_v51  ;;  %4956 = vmatmul.mubr.f32.vlgmr.msra.gmra.mrb[22].mxu1 %v4883_v53  ;;  %v4985_v51 = vld [vmem:[#allocation16 + $0x420] sm:$0xff]  ;;  %v4986_v53 = vld [vmem:[#allocation16 + $0x428] sm:$0xff] }
 0x71b   : > { %6536 = vmatpush1.bf16.msra.mxu0 %v6535_v49  ;;  %5556 = vmatprep.mubr.msk.f32.mxu0 %vm4579_vm2, %v5001_v55  ;;  %v6604_v49 = vpack.c.bf16 %v5098_v0, %v5097_v42  ;;  %v6565_v11 = vpack.c.bf16 %v4986_v53, %v4985_v51  ;;  %v5213_v42 = vld [vmem:[#allocation16 + $0x5e0] sm:$0xff]  ;;  %v5214_v0 = vld [vmem:[#allocation16 + $0x5e8] sm:$0xff]  ;;  %v5216_v51 = vld [vmem:[#allocation16 + $0x5f8] sm:$0xff] }
 0x71c   : > { %6578 = vmatpush1.bf16.msra.mxu1 %v6577_v26  ;;  %5558 = vmatprep.mubr.msk.f32.mxu1 %vm4579_vm2, %v5115_v15  ;;  %v5099_v26 = vld [vmem:[#allocation16 + $0x500] sm:$0xff]  ;;  %v5101_v15 = vld [vmem:[#allocation16 + $0x510] sm:$0xff] }
 0x71d   : > { %6537 = vmatprep.subr.bf16.mxu0 %v7179_v20  ;;  %6579 = vmatprep.subr.bf16.mxu1 %v7179_v20  ;;  %v6607_v55 = vpack.c.bf16 %v5100_v54, %v5099_v26  ;;  %v5217_v26 = vld [vmem:[#allocation16 + $0x600] sm:$0xff]  ;;  %v5218_v54 = vld [vmem:[#allocation16 + $0x608] sm:$0xff] }
 0x71f   : > { %6539 = vmatpush1.bf16.msra.mxu0 %v6538_v16  ;;  %v5102_v16 = vld [vmem:[#allocation16 + $0x518] sm:$0xff] }
 0x720   : > { %6581 = vmatpush1.bf16.msra.mxu1 %v6580_v12  ;;  %6540 = vmatprep.subr.bf16.mxu0 %v7179_v20  ;;  %v6568_v12 = vpack.c.bf16 %v4988_v19, %v4987_v56  ;;  %v6610_v59 = vpack.c.bf16 %v5102_v16, %v5101_v15  ;;  %v5220_v56 = vld [vmem:[#allocation16 + $0x618] sm:$0xff] }
 0x721   : > { %6582 = vmatprep.subr.bf16.mxu1 %v7179_v20 }
 0x723   : > { %6542 = vmatpush1.bf16.msra.mxu0 %v6541_v31  ;;  %v5104_v31 = vld [vmem:[#allocation16 + $0x528] sm:$0xff] }
 0x724   : > { %6584 = vmatpush1.bf16.msra.mxu1 %v6583_v46  ;;  %6543 = vmatprep.subr.bf16.mxu0 %v7179_v20  ;;  %v6571_v46 = vpack.c.bf16 %v4990_v44, %v4989_v5  ;;  %v6613_v57 = vpack.c.bf16 %v5104_v31, %v5103_v6 }
 0x725   : > { %6585 = vmatprep.subr.bf16.mxu1 %v7179_v20 }
 0x727   : > { %6545 = vmatpush1.bf16.msra.mxu0 %v6544_v43  ;;  %v5106_v43 = vld [vmem:[#allocation16 + $0x538] sm:$0xff] }
 0x728   : > { %6587 = vmatpush1.bf16.msra.mxu1 %v6586_v1  ;;  %6546 = vmatprep.subr.bf16.mxu0 %v7179_v20  ;;  %v6574_v1 = vpack.c.bf16 %v4992_v18, %v4991_v60  ;;  %v6616_v9 = vpack.c.bf16 %v5106_v43, %v5105_v28 }
 0x729   : > { %6588 = vmatprep.subr.bf16.mxu1 %v7179_v20 }
 0x72b   : > { %6548 = vmatpush1.bf16.msra.mxu0 %v6547_v13  ;;  %v8034_v13 = vld [vmem:[%s7919_s23 + $0x6] ss:$8 sm:$0x3] }
 0x72c   : > { %6590 = vmatpush1.bf16.msra.mxu1 %v6589_v7  ;;  %6549 = vmatprep.subr.bf16.mxu0 %v7179_v20  ;;  %v4997_v7 = vrot.slane %v7990_v48, %v7593_v25  ;;  %v5229_v22 = vrot.slane %v8034_v13, %v7596_v27  ;;  %v5198_v48 = vld [vmem:[#allocation16 + $0x568] sm:$0xff]  ;;  %v5201_v27 = vld [vmem:[#allocation16 + $0x580] sm:$0xff]  ;;  %v5225_v15 = vrot.slane %v8034_v13, %v7593_v25 }
 0x72d   : > { %6591 = vmatprep.subr.bf16.mxu1 %v7179_v20 }
 0x72f   : > { %6551 = vmatpush1.bf16.msra.mxu0 %v6550_v10  ;;  %v6622_v10 = vpack.c.bf16 %v5196_v45, %v5195_v8 }
 0x730   : > { %6593 = vmatpush1.bf16.msra.mxu1 %v6592_v17  ;;  %6552 = vmatprep.subr.bf16.mxu0 %v7179_v20  ;;  %v5197_v17 = vld [vmem:[#allocation16 + $0x560] sm:$0xff] }
 0x731   : > { %6594 = vmatprep.subr.bf16.mxu1 %v7179_v20  ;;  %v6625_v29 = vpack.c.bf16 %v5198_v48, %v5197_v17 }
 0x733   : > { %6554 = vmatpush1.bf16.msra.mxu0 %v6553_v23  ;;  %v6631_v23 = vpack.c.bf16 %v5202_v62, %v5201_v27 }
 0x734   : > { %6596 = vmatpush1.bf16.msra.mxu1 %v6595_v24  ;;  %6555 = vmatprep.subr.bf16.mxu0 %v7179_v20  ;;  %v5203_v24 = vld [vmem:[#allocation16 + $0x590] sm:$0xff] }
 0x735   : > { %6597 = vmatprep.subr.bf16.mxu1 %v7179_v20  ;;  %v6634_v33 = vpack.c.bf16 %v5204_v3, %v5203_v24 }
 0x737   : > { %6557 = vmatpush1.bf16.msra.mxu0 %v6556_v58  ;;  %v6637_v58 = vpack.c.bf16 %v5206_v35, %v5205_v34 }
 0x738   : > { %6599 = vmatpush1.bf16.msra.mxu1 %v6598_v36  ;;  %6558 = vmatprep.subr.bf16.mxu0 %v7179_v20  ;;  %v5207_v36 = vld [vmem:[#allocation16 + $0x5b0] sm:$0xff] }
 0x739   : > { %6600 = vmatprep.subr.bf16.mxu1 %v7179_v20  ;;  %v6640_v32 = vpack.c.bf16 %v5208_v61, %v5207_v36 }
 0x73b   : > { %6560 = vmatpush1.bf16.msra.mxu0 %v6559_v39  ;;  %v6643_v39 = vpack.c.bf16 %v5210_v14, %v5209_v37 }
 0x73c   : > { %6602 = vmatpush1.bf16.msra.mxu1 %v6601_v40  ;;  %6561 = vmatprep.subr.bf16.mxu0 %v7179_v20  ;;  %v5211_v40 = vld [vmem:[#allocation16 + $0x5d0] sm:$0xff] }
 0x73d   : > { %6603 = vmatprep.subr.bf16.mxu1 %v7179_v20  ;;  %v6646_v30 = vpack.c.bf16 %v5212_v41, %v5211_v40 }
 0x73f   : > { %6563 = vmatpush1.bf16.msra.mxu0 %v6562_v47  ;;  %v6649_v47 = vpack.c.bf16 %v5214_v0, %v5213_v42 }
 0x740   : > { %6605 = vmatpush1.bf16.msra.mxu1 %v6604_v49  ;;  %6564 = vmatprep.subr.bf16.mxu0 %v7179_v20  ;;  %v5215_v49 = vld [vmem:[#allocation16 + $0x5f0] sm:$0xff] }
 0x741   : > { %6606 = vmatprep.subr.bf16.mxu1 %v7179_v20  ;;  %v6652_v53 = vpack.c.bf16 %v5216_v51, %v5215_v49 }
 0x743   : > { %6566 = vmatpush1.bf16.msra.mxu0 %v6565_v11  ;;  %v6655_v11 = vpack.c.bf16 %v5218_v54, %v5217_v26 }
 0x744   : > { %6608 = vmatpush1.bf16.msra.mxu1 %v6607_v55  ;;  %6567 = vmatprep.subr.bf16.mxu0 %v7179_v20  ;;  %v5219_v55 = vld [vmem:[#allocation16 + $0x610] sm:$0xff] }
 0x745   : > { %6609 = vmatprep.subr.bf16.mxu1 %v7179_v20  ;;  %v6658_v19 = vpack.c.bf16 %v5220_v56, %v5219_v55 }
 0x747   : > { %6569 = vmatpush1.bf16.msra.mxu0 %v6568_v12 }
 0x748   : > { %6611 = vmatpush1.bf16.msra.mxu1 %v6610_v59  ;;  %6570 = vmatprep.subr.bf16.mxu0 %v7179_v20 }
 0x749   : > { %6612 = vmatprep.subr.bf16.mxu1 %v7179_v20 }
 0x74b   : > { %6572 = vmatpush1.bf16.msra.mxu0 %v6571_v46 }
 0x74c   : > { %6614 = vmatpush1.bf16.msra.mxu1 %v6613_v57  ;;  %6573 = vmatprep.subr.bf16.mxu0 %v7179_v20 }
 0x74d   : > { %6615 = vmatprep.subr.bf16.mxu1 %v7179_v20 }
 0x74f   : > { %6575 = vmatpush1.bf16.msra.mxu0 %v6574_v1 }
 0x750   : > { %6617 = vmatpush1.bf16.msra.mxu1 %v6616_v9  ;;  %6618 = vmatprep.subr.bf16.mxu0 %v7179_v20 }
 0x752   : > { %5070 = vmatmul.mubr.f32.vlgmr.msra.gmra.mrb[16].mxu0 %v4997_v7 }
 0x753   : > { %5184 = vmatmul.mubr.f32.vlgmr.msra.gmra.mrb[24].mxu1 %v5111_v63  ;;  %6620 = vmatpush1.bf16.msra.mxu0 %v6619_v4 }
 0x754   : > { %5560 = vmatprep.mubr.msk.f32.mxu0 %vm4579_vm2, %v5229_v22  ;;  %6621 = vmatprep.subr.bf16.mxu0 %v7179_v20 }
 0x757   : > { %6623 = vmatpush1.bf16.msra.mxu0 %v6622_v10 }
 0x758   : > { %6624 = vmatprep.subr.bf16.mxu0 %v7179_v20 }
 0x75b   : > { %6626 = vmatpush1.bf16.msra.mxu0 %v6625_v29 }
 0x75c   : > { %6627 = vmatprep.subr.bf16.mxu0 %v7179_v20 }
 0x75f   : > { %6629 = vmatpush1.bf16.msra.mxu0 %v6628_v50 }
 0x760   : > { %6630 = vmatprep.subr.bf16.mxu0 %v7179_v20 }
 0x763   : > { %6632 = vmatpush1.bf16.msra.mxu0 %v6631_v23 }
 0x764   : > { %6633 = vmatprep.subr.bf16.mxu0 %v7179_v20 }
 0x767   : > { %6635 = vmatpush1.bf16.msra.mxu0 %v6634_v33 }
 0x768   : > { %6636 = vmatprep.subr.bf16.mxu0 %v7179_v20 }
 0x76b   : > { %6638 = vmatpush1.bf16.msra.mxu0 %v6637_v58 }
 0x76c   : > { %6639 = vmatprep.subr.bf16.mxu0 %v7179_v20 }
 0x76f   : > { %6641 = vmatpush1.bf16.msra.mxu0 %v6640_v32 }
 0x770   : > { %6642 = vmatprep.subr.bf16.mxu0 %v7179_v20 }
 0x773   : > { %6644 = vmatpush1.bf16.msra.mxu0 %v6643_v39 }
 0x774   : > { %6645 = vmatprep.subr.bf16.mxu0 %v7179_v20 }
 0x777   : > { %6647 = vmatpush1.bf16.msra.mxu0 %v6646_v30 }
 0x778   : > { %6648 = vmatprep.subr.bf16.mxu0 %v7179_v20 }
 0x77b   : > { %6650 = vmatpush1.bf16.msra.mxu0 %v6649_v47 }
 0x77c   : > { %6651 = vmatprep.subr.bf16.mxu0 %v7179_v20 }
 0x77f   : > { %6653 = vmatpush1.bf16.msra.mxu0 %v6652_v53 }
 0x780   : > { %6654 = vmatprep.subr.bf16.mxu0 %v7179_v20 }
 0x783   : > { %6656 = vmatpush1.bf16.msra.mxu0 %v6655_v11 }
 0x784   : > { %6657 = vmatprep.subr.bf16.mxu0 %v7179_v20 }
 0x787   : > { %6659 = vmatpush1.bf16.msra.mxu0 %v6658_v19 }
 0x78a   : > { %5298 = vmatmul.mubr.f32.vlgmr.msra.gmra.mrb[18].mxu0 %v5225_v15 }
 0x7b5   : > { %v4648_v16 = vpop.f32.mrb[12].mxu0  ;;  %v4730_v12 = vpop.f32.mrb[20].mxu1 }
 0x7b6   : > { %v4731_v59 = vadd.f32 %v4730_v12, %v4648_v16  ;;  %v4650_v5 = vpop.f32.mrb[13].mxu0  ;;  %v4732_v44 = vpop.f32.mrb[21].mxu1 }
 0x7ed   : > { %v4843_v6 = vpop.f32.mrb[14].mxu0  ;;  %v4957_v31 = vpop.f32.mrb[22].mxu1 }
 0x7ee   : > { %v4847_v46 = vadd.f32 %v4843_v6, %v4731_v59  ;;  %v4845_v57 = vpop.f32.mrb[15].mxu0  ;;  %v4959_v60 = vpop.f32.mrb[23].mxu1 }
 0x7f0   : > { %v4961_v18 = vadd.f32 %v4957_v31, %v4847_v46 }
 0x825   : > { %v5071_v28 = vpop.f32.mrb[16].mxu0 }
 0x826   : > { %v5075_v20 = vadd.f32 %v5071_v28, %v4961_v18  ;;  %v5185_v43 = vpop.f32.mrb[24].mxu1  ;;  %v5073_v1 = vpop.f32.mrb[17].mxu0 }
 0x827   : > { %v5187_v9 = vpop.f32.mrb[25].mxu1 }
 0x828   : > { %v5189_v25 = vadd.f32 %v5185_v43, %v5075_v20 }
 0x85d   : > { %v5299_v38 = vpop.f32.mrb[18].mxu0 }
 0x85e   : > { %v5303_v4 = vadd.f32 %v5299_v38, %v5189_v25  ;;  %v5301_v13 = vpop.f32.mrb[19].mxu0 }
 0x860   : > { %v5305_v7 = vadd.f32 %v5304_v2, %v5303_v4 }
 0x862   : > { %5306 = vst [vmem:[%s387_s17] sm:$0x1] %v5305_v7 }
 0x863   : > { %7093 = shalt.err (!%p7090_p6)
}
 0x864   : > { %s7094_s11 = scalar_lea.hbm %s8064_s10, 16  ;;  %s7098_s26 = scalar_lea.hbm %s8114_s8, 32 }
 0x865   : > { %p7095_p5 = scmp.ne.s32.totalorder %s8064_s10, %s7094_s11  ;;  %p7099_p10 = scmp.lt.u32.totalorder %s8064_s10, %s8114_s8 }
 0x866   : > { %p7100_p2 = scmp.lt.u32.totalorder %s7098_s26, %s7094_s11  ;;  %p7102_p4 = scmp.lt.u32.totalorder %s7094_s11, %s8064_s10 }
 0x867   : > { %p7096_p9 = pnand %p7095_p5, %p8146_p7 }
 0x868   : > { %p7101_p3 = por %p7100_p2, %p7099_p10 }
 0x869   : > { %p7097_p12 = pneg %p7096_p9 }
 0x86a   : > { %p7103_p8 = por %p7102_p4, %p7101_p3 }
 0x86c   : > { %p7104_p11 = pnand %p7103_p8, %p7097_p12 }
 0x86e   : > { %7107 = shalt.err (!%p7104_p11)
}
 0x86f   : > { %6820 = dma.vmem_to_hbm [thread:$0]  (%p8146_p7), %s8066_s22, 16, %s8064_s10, %s5313_s21  }
 0x870 PF: > { %s8147_s20 = sld [smem:[#allocation28_spill]]  ;;  %p6857_p13 = scmp.ge.s32.totalorder %s7158_s30, 2 }
 0x871   : > { %s5348_s23 = sand.u32 1, %s7146_s27  }
 0x872   : > { %s5349_s25 = scalar_lea.sflag [#allocation10], %s5348_s23 }
 0x876   : > { %p8148_p1 = scmp.ne.s32.totalorder %s8147_s20, 0 }
 0x878   : > { %p6842_p0 = pnand %p6857_p13, %p8148_p1 }
 0x87a   : > { %7141 = dma.done.wait (!%p6842_p0), %s5349_s25, 16  }
 0x87b   : > { %7143 = vsyncadd (!%p6842_p0), %s5349_s25, 4294967280  ;;  %s8149_s30 = sld [smem:[#allocation26_spill]]  ;;  %s8150_s19 = sld [smem:[#allocation25_spill]] }
 0x87c   : > { %s8151_s29 = sld [smem:[#allocation27_spill]]  ;;  %s8152_s27 = smov %s7150_s28 }
 0x881   : > { %p23_p6 = scmp.ge.s32.totalorder %s8149_s30, 4   ;;  %s8153_s28 = smov %s8150_s19 }
 0x883   :  { %25 = sbr.rel (!%p23_p6) target bundleno = 10 (0xa), region = 199 }
 0x88a   :  { %5353 = vsyncpa [#allocation9], 1 }
 0x88b   :  { %5355 = vsyncpa [#allocation9 + $0x1], 1 }
 0x88c   :  { %5356 = vsyncpa [#allocation12], 1 }
 0x88d   :  { %5357 = vsyncpa [#allocation15], 1 }
 0x88e   :  { %5358 = vsyncpa [#allocation18], 1 }
 0x88f   :  { %5359 = vsyncpa [#allocation10], 1 }
 0x890   :  { %5361 = vsyncpa [#allocation10 + $0x1], 1 }

</bundles_post_ra>
